<compile_context>
chip_gen: v5e
topology: v5e:2x2
jax: 0.10.0
libtpu: 0.0.40
codegen_flags: <defaults>
</compile_context>

<pallas_src>
import functools

import jax
import jax.numpy as jnp
from jax.experimental import pallas as pl
from jax.experimental.pallas import tpu as pltpu


C_PAD = 128      # hidden channels zero-embedded into 128 lanes (lane-dense)
NCLS_PAD = 128   # logits zero-embedded into 128 lanes (dense stores, full MXU cols)
_OFF = 8         # interior column offset inside the padded scratch (sublane aligned)


# ----------------------------- fused Pallas kernel -------------------------- #

def _fused_forward_kernel(patch_ref, stem_w_ref, stem_b_ref,
                          b1_w_ref, b1_b_ref, b2_w_ref, b2_b_ref,
                          fc_w_ref, fc_b_ref, out_ref,
                          hpad1_ref, hpad2_ref, *, H, W, Cp, n_pad, inv_hw):
    HW = H * W

    # Zero the padded scratch so the 1-pixel halo around the interior acts as
    # the conv zero-padding.  (Scratch persists across grid steps -> zero each
    # step unconditionally; it is cheap and megacore-safe.)
    hpad1_ref[...] = jnp.zeros_like(hpad1_ref)
    hpad2_ref[...] = jnp.zeros_like(hpad2_ref)

    def conv_taps(src_ref, w_ref):
        """3x3 conv as 9 shifted (HW, Cp) @ (Cp, Cp) bf16 MXU dots, f32 acc."""
        acc = jnp.zeros((HW, Cp), jnp.float32)
        for dh in range(3):
            for dw in range(3):
                t = dh * 3 + dw
                xt = src_ref[pl.ds(dh, H), pl.ds(_OFF - 1 + dw, W), :]
                xt = xt.reshape(HW, Cp).astype(jnp.bfloat16)
                acc = acc + jnp.dot(xt, w_ref[pl.ds(t * Cp, Cp), :],
                                    preferred_element_type=jnp.float32)
        return acc

    def store_interior(dst_ref, val):
        # interior rows [1, 1+H), columns [_OFF, _OFF+W): aligned, full-tile store
        dst_ref[pl.ds(1, H), pl.ds(_OFF, W), :] = val.reshape(H, W, Cp)

    # ---- stem conv3x3 (Cin -> Cp) + bias + ReLU: one GEMM over the tiny im2col
    h = jnp.dot(patch_ref[...], stem_w_ref[...],
                preferred_element_type=jnp.float32)              # (HW, Cp) f32
    h = jnp.maximum(h + stem_b_ref[...], 0.0)
    store_interior(hpad1_ref, h)                                 # = residual identity

    # ---- basic block conv1 + bias + ReLU (taps read from hpad1)
    h1 = jnp.maximum(conv_taps(hpad1_ref, b1_w_ref) + b1_b_ref[...], 0.0)
    store_interior(hpad2_ref, h1)

    # ---- basic block conv2, fused bias + residual-add + ReLU epilogue
    identity = hpad1_ref[pl.ds(1, H), pl.ds(_OFF, W), :].reshape(HW, Cp)
    h2 = jnp.maximum(conv_taps(hpad2_ref, b2_w_ref) + b2_b_ref[...] + identity, 0.0)

    # ---- AdaptiveAvgPool2d(1) fused: column-sum over HW, times hoisted 1/(H*W)
    feats = jnp.sum(h2, axis=0, keepdims=True) * inv_hw          # (1, Cp) f32

    # ---- fc head (lane-padded to n_pad cols); broadcast to 8 sublanes so the
    #      single HBM store per image is a dense (8, 128) tile.
    logits = jnp.dot(feats.astype(jnp.bfloat16), fc_w_ref[...],
                     preferred_element_type=jnp.float32) + fc_b_ref[...]
    out_ref[...] = jnp.broadcast_to(logits, (8, n_pad))


# ------------------------------ JAX wrapper --------------------------------- #

def classification_model_forward(x_nchw, params, num_classes):
    """Mirrors ClassificationModel.forward: backbone conv features ->
    AdaptiveAvgPool2d(1) -> Linear(num_classes).  One fused Pallas kernel."""
    N, Cin, H, W = x_nchw.shape
    Cp = params["b1_b"].shape[1]      # padded hidden width (128)
    Np = params["fc_b"].shape[1]      # padded logits width (128)

    # NCHW -> NHWC; im2col ONLY for the tiny stem (9*Cin = 36 columns).  The
    # heavy hidden-channel convs are done in-kernel via shifted-tap dots.
    x = jnp.transpose(x_nchw, (0, 2, 3, 1))
    xp = jnp.pad(x, ((0, 0), (1, 1), (1, 1), (0, 0)))
    cols = [xp[:, dh:dh + H, dw:dw + W, :] for dh in range(3) for dw in range(3)]
    patches = jnp.concatenate(cols, axis=-1).reshape(N, H * W, 9 * Cin)
    patches = patches.astype(jnp.bfloat16)                       # bf16 MXU operand

    wp = _OFF + W + 8                 # padded scratch width; interior at [_OFF, _OFF+W)

    kernel = functools.partial(_fused_forward_kernel,
                               H=H, W=W, Cp=Cp, n_pad=Np, inv_hw=1.0 / (H * W))

    out = pl.pallas_call(
        kernel,
        out_shape=jax.ShapeDtypeStruct((N, 8, Np), jnp.float32),
        grid=(N,),
        in_specs=[
            pl.BlockSpec((None, H * W, 9 * Cin), lambda b: (b, 0, 0)),  # stem patches
            pl.BlockSpec((9 * Cin, Cp), lambda b: (0, 0)),              # stem_w (bf16)
            pl.BlockSpec((1, Cp), lambda b: (0, 0)),                    # stem_b (f32)
            pl.BlockSpec((9 * Cp, Cp), lambda b: (0, 0)),               # b1_w
            pl.BlockSpec((1, Cp), lambda b: (0, 0)),                    # b1_b
            pl.BlockSpec((9 * Cp, Cp), lambda b: (0, 0)),               # b2_w
            pl.BlockSpec((1, Cp), lambda b: (0, 0)),                    # b2_b
            pl.BlockSpec((Cp, Np), lambda b: (0, 0)),                   # fc_w
            pl.BlockSpec((1, Np), lambda b: (0, 0)),                    # fc_b
        ],
        out_specs=pl.BlockSpec((None, 8, Np), lambda b: (b, 0, 0)),
        scratch_shapes=[
            pltpu.VMEM((H + 2, wp, Cp), jnp.float32),   # padded stem output (identity)
            pltpu.VMEM((H + 2, wp, Cp), jnp.float32),   # padded conv1 output
        ],
        compiler_params=pltpu.CompilerParams(
            dimension_semantics=("parallel",),          # batch across TCs on v7x
            vmem_limit_bytes=32 * 1024 * 1024),
    )(patches, params["stem_w"], params["stem_b"],
      params["b1_w"], params["b1_b"], params["b2_w"], params["b2_b"],
      params["fc_w"], params["fc_b"])

    # drop the sublane broadcast and the zero-padded logit lanes
    return out[:, 0, :num_classes]                                # [N, num_classes]


# ------------------------------- parameters --------------------------------- #

def init_params(key, c_in, c_hidden, num_classes):
    ks = jax.random.split(key, 4)

    def w_init(k, fan_in, shape):
        return jax.random.normal(k, shape, jnp.float32) * (2.0 / fan_in) ** 0.5

    # logical weights, PyTorch tap layout [(dh*3+dw), cin, cout]
    stem = w_init(ks[0], 9 * c_in, (9, c_in, c_hidden))
    b1 = w_init(ks[1], 9 * c_hidden, (9, c_hidden, c_hidden))
    b2 = w_init(ks[2], 9 * c_hidden, (9, c_hidden, c_hidden))
    fc = w_init(ks[3], c_hidden, (c_hidden, num_classes))

    # zero-embed into 128-lane padded buffers: padded rows/cols are zero, so the
    # padded computation is numerically identical to the logical 32-channel /
    # 10-class model while keeping every store and MXU column lane-dense.
    stem_p = jnp.zeros((9, c_in, C_PAD), jnp.float32).at[:, :, :c_hidden].set(stem)
    b1_p = jnp.zeros((9, C_PAD, C_PAD), jnp.float32).at[:, :c_hidden, :c_hidden].set(b1)
    b2_p = jnp.zeros((9, C_PAD, C_PAD), jnp.float32).at[:, :c_hidden, :c_hidden].set(b2)
    fc_p = jnp.zeros((C_PAD, NCLS_PAD), jnp.float32).at[:c_hidden, :num_classes].set(fc)

    return {
        # bf16 MXU operands; f32 biases (epilogue math stays f32 on every chip)
        "stem_w": stem_p.reshape(9 * c_in, C_PAD).astype(jnp.bfloat16),
        "stem_b": jnp.zeros((1, C_PAD), jnp.float32),
        "b1_w": b1_p.reshape(9 * C_PAD, C_PAD).astype(jnp.bfloat16),
        "b1_b": jnp.zeros((1, C_PAD), jnp.float32),
        "b2_w": b2_p.reshape(9 * C_PAD, C_PAD).astype(jnp.bfloat16),
        "b2_b": jnp.zeros((1, C_PAD), jnp.float32),
        "fc_w": fc_p.astype(jnp.bfloat16),
        "fc_b": jnp.zeros((1, NCLS_PAD), jnp.float32),
    }


# --------------------------------- driver ----------------------------------- #

if __name__ == "__main__":
    key = jax.random.PRNGKey(0)
    k_param, k_x = jax.random.split(key)

    batch, c_in, spatial = 2, 4, 16
    c_hidden, num_classes = 32, 10

    params = init_params(k_param, c_in, c_hidden, num_classes)
    x = jax.random.normal(k_x, (batch, c_in, spatial, spatial), jnp.float32)  # NCHW

    fwd = jax.jit(lambda inp: classification_model_forward(inp, params, num_classes))
    logits = fwd(x)
    jax.block_until_ready(logits)

    assert logits.shape == (batch, num_classes)
    assert logits.dtype == jnp.float32
    print("KERNEL_OK")
</pallas_src>

<mosaic_0001>
module attributes {stable_mosaic.version = 11 : i64} {
  func.func @_fused_forward_kernel(%arg0: i32, %arg1: memref<1x256x36xbf16, #tpu.memory_space<vmem>>, %arg2: memref<36x128xbf16, #tpu.memory_space<vmem>>, %arg3: memref<1x128xf32, #tpu.memory_space<vmem>>, %arg4: memref<1152x128xbf16, #tpu.memory_space<vmem>>, %arg5: memref<1x128xf32, #tpu.memory_space<vmem>>, %arg6: memref<1152x128xbf16, #tpu.memory_space<vmem>>, %arg7: memref<1x128xf32, #tpu.memory_space<vmem>>, %arg8: memref<128x128xbf16, #tpu.memory_space<vmem>>, %arg9: memref<1x128xf32, #tpu.memory_space<vmem>>, %arg10: memref<1x8x128xf32, #tpu.memory_space<vmem>>, %arg11: memref<18x32x128xf32, #tpu.memory_space<vmem>>, %arg12: memref<18x32x128xf32, #tpu.memory_space<vmem>>) attributes {dimension_semantics = [#tpu.dimension_semantics<parallel>], iteration_bounds = array<i64: 2>, scalar_prefetch = 0 : i64, scratch_operands = 2 : i64, tpu.core_type = #tpu.core_type<tc>, window_params = [{transform_indices = @transform_0, window_bounds = array<i64: 1, 256, 36>}, {pipeline_mode = #tpu.pipeline_mode<synchronous>, transform_indices = @transform_1, window_bounds = array<i64: 36, 128>}, {pipeline_mode = #tpu.pipeline_mode<synchronous>, transform_indices = @transform_2, window_bounds = array<i64: 1, 128>}, {pipeline_mode = #tpu.pipeline_mode<synchronous>, transform_indices = @transform_3, window_bounds = array<i64: 1152, 128>}, {pipeline_mode = #tpu.pipeline_mode<synchronous>, transform_indices = @transform_4, window_bounds = array<i64: 1, 128>}, {pipeline_mode = #tpu.pipeline_mode<synchronous>, transform_indices = @transform_5, window_bounds = array<i64: 1152, 128>}, {pipeline_mode = #tpu.pipeline_mode<synchronous>, transform_indices = @transform_6, window_bounds = array<i64: 1, 128>}, {pipeline_mode = #tpu.pipeline_mode<synchronous>, transform_indices = @transform_7, window_bounds = array<i64: 128, 128>}, {pipeline_mode = #tpu.pipeline_mode<synchronous>, transform_indices = @transform_8, window_bounds = array<i64: 1, 128>}, {transform_indices = @transform_9, window_bounds = array<i64: 1, 8, 128>}]} {
    %cst = arith.constant 0.000000e+00 : f32
    %0 = vector.broadcast %cst : f32 to vector<18x32x128xf32>
    %c0 = arith.constant 0 : index
    %c0_0 = arith.constant 0 : index
    %c0_1 = arith.constant 0 : index
    %1 = vector.load %arg11[%c0, %c0_0, %c0_1] : memref<18x32x128xf32, #tpu.memory_space<vmem>>, vector<18x32x128xf32>
    tpu.vector_store %arg11[%c0, %c0_0, %c0_1], %0 {strides = array<i32>} : memref<18x32x128xf32, #tpu.memory_space<vmem>>, vector<18x32x128xf32>,
    %cst_2 = arith.constant 0.000000e+00 : f32
    %2 = vector.broadcast %cst_2 : f32 to vector<18x32x128xf32>
    %c0_3 = arith.constant 0 : index
    %c0_4 = arith.constant 0 : index
    %c0_5 = arith.constant 0 : index
    %3 = vector.load %arg12[%c0_3, %c0_4, %c0_5] : memref<18x32x128xf32, #tpu.memory_space<vmem>>, vector<18x32x128xf32>
    tpu.vector_store %arg12[%c0_3, %c0_4, %c0_5], %2 {strides = array<i32>} : memref<18x32x128xf32, #tpu.memory_space<vmem>>, vector<18x32x128xf32>,
    %c0_6 = arith.constant 0 : index
    %c0_7 = arith.constant 0 : index
    %c0_8 = arith.constant 0 : index
    %4 = vector.load %arg1[%c0_6, %c0_7, %c0_8] : memref<1x256x36xbf16, #tpu.memory_space<vmem>>, vector<1x256x36xbf16>
    %5 = vector.shape_cast %4 : vector<1x256x36xbf16> to vector<256x36xbf16>
    %c0_9 = arith.constant 0 : index
    %c0_10 = arith.constant 0 : index
    %6 = vector.load %arg2[%c0_9, %c0_10] : memref<36x128xbf16, #tpu.memory_space<vmem>>, vector<36x128xbf16>
    %cst_11 = arith.constant dense<0.000000e+00> : vector<256x128xf32>
    %7 = tpu.matmul %5, %6, %cst_11 {dimension_numbers = #tpu.dot_dimension_numbers<[1], [0], [0], [1], [0, 0, 1, 1], [], []>} : vector<256x36xbf16>, vector<36x128xbf16>, vector<256x128xf32> -> vector<256x128xf32>
    %c0_12 = arith.constant 0 : index
    %c0_13 = arith.constant 0 : index
    %8 = vector.load %arg3[%c0_12, %c0_13] : memref<1x128xf32, #tpu.memory_space<vmem>>, vector<1x128xf32>
    %9 = vector.broadcast %8 : vector<1x128xf32> to vector<256x128xf32>
    %10 = arith.addf %7, %9 : vector<256x128xf32>
    %cst_14 = arith.constant 0.000000e+00 : f32
    %11 = vector.broadcast %cst_14 : f32 to vector<256x128xf32>
    %12 = arith.maximumf %10, %11 : vector<256x128xf32>
    %13 = vector.shape_cast %12 : vector<256x128xf32> to vector<16x16x128xf32>
    %c1 = arith.constant 1 : index
    %c8 = arith.constant 8 : index
    %c0_15 = arith.constant 0 : index
    %14 = vector.load %arg11[%c1, %c8, %c0_15] : memref<18x32x128xf32, #tpu.memory_space<vmem>>, vector<16x16x128xf32>
    tpu.vector_store %arg11[%c1, %c8, %c0_15], %13 {strides = array<i32>} : memref<18x32x128xf32, #tpu.memory_space<vmem>>, vector<16x16x128xf32>,
    %cst_16 = arith.constant 0.000000e+00 : f32
    %15 = vector.broadcast %cst_16 : f32 to vector<256x128xf32>
    %c0_17 = arith.constant 0 : index
    %c7 = arith.constant 7 : index
    %c0_18 = arith.constant 0 : index
    %16 = vector.load %arg11[%c0_17, %c7, %c0_18] : memref<18x32x128xf32, #tpu.memory_space<vmem>>, vector<16x16x128xf32>
    %17 = vector.shape_cast %16 : vector<16x16x128xf32> to vector<256x128xf32>
    %18 = arith.truncf %17 : vector<256x128xf32> to vector<256x128xbf16>
    %c0_19 = arith.constant 0 : index
    %c0_20 = arith.constant 0 : index
    %19 = vector.load %arg4[%c0_19, %c0_20] : memref<1152x128xbf16, #tpu.memory_space<vmem>>, vector<128x128xbf16>
    %cst_21 = arith.constant dense<0.000000e+00> : vector<256x128xf32>
    %20 = tpu.matmul %18, %19, %cst_21 {dimension_numbers = #tpu.dot_dimension_numbers<[1], [0], [0], [1], [0, 0, 1, 1], [], []>} : vector<256x128xbf16>, vector<128x128xbf16>, vector<256x128xf32> -> vector<256x128xf32>
    %21 = arith.addf %15, %20 : vector<256x128xf32>
    %c0_22 = arith.constant 0 : index
    %c8_23 = arith.constant 8 : index
    %c0_24 = arith.constant 0 : index
    %22 = vector.load %arg11[%c0_22, %c8_23, %c0_24] : memref<18x32x128xf32, #tpu.memory_space<vmem>>, vector<16x16x128xf32>
    %23 = vector.shape_cast %22 : vector<16x16x128xf32> to vector<256x128xf32>
    %24 = arith.truncf %23 : vector<256x128xf32> to vector<256x128xbf16>
    %c128 = arith.constant 128 : index
    %c0_25 = arith.constant 0 : index
    %25 = vector.load %arg4[%c128, %c0_25] : memref<1152x128xbf16, #tpu.memory_space<vmem>>, vector<128x128xbf16>
    %cst_26 = arith.constant dense<0.000000e+00> : vector<256x128xf32>
    %26 = tpu.matmul %24, %25, %cst_26 {dimension_numbers = #tpu.dot_dimension_numbers<[1], [0], [0], [1], [0, 0, 1, 1], [], []>} : vector<256x128xbf16>, vector<128x128xbf16>, vector<256x128xf32> -> vector<256x128xf32>
    %27 = arith.addf %21, %26 : vector<256x128xf32>
    %c0_27 = arith.constant 0 : index
    %c9 = arith.constant 9 : index
    %c0_28 = arith.constant 0 : index
    %28 = vector.load %arg11[%c0_27, %c9, %c0_28] : memref<18x32x128xf32, #tpu.memory_space<vmem>>, vector<16x16x128xf32>
    %29 = vector.shape_cast %28 : vector<16x16x128xf32> to vector<256x128xf32>
    %30 = arith.truncf %29 : vector<256x128xf32> to vector<256x128xbf16>
    %c256 = arith.constant 256 : index
    %c0_29 = arith.constant 0 : index
    %31 = vector.load %arg4[%c256, %c0_29] : memref<1152x128xbf16, #tpu.memory_space<vmem>>, vector<128x128xbf16>
    %cst_30 = arith.constant dense<0.000000e+00> : vector<256x128xf32>
    %32 = tpu.matmul %30, %31, %cst_30 {dimension_numbers = #tpu.dot_dimension_numbers<[1], [0], [0], [1], [0, 0, 1, 1], [], []>} : vector<256x128xbf16>, vector<128x128xbf16>, vector<256x128xf32> -> vector<256x128xf32>
    %33 = arith.addf %27, %32 : vector<256x128xf32>
    %c1_31 = arith.constant 1 : index
    %c7_32 = arith.constant 7 : index
    %c0_33 = arith.constant 0 : index
    %34 = vector.load %arg11[%c1_31, %c7_32, %c0_33] : memref<18x32x128xf32, #tpu.memory_space<vmem>>, vector<16x16x128xf32>
    %35 = vector.shape_cast %34 : vector<16x16x128xf32> to vector<256x128xf32>
    %36 = arith.truncf %35 : vector<256x128xf32> to vector<256x128xbf16>
    %c384 = arith.constant 384 : index
    %c0_34 = arith.constant 0 : index
    %37 = vector.load %arg4[%c384, %c0_34] : memref<1152x128xbf16, #tpu.memory_space<vmem>>, vector<128x128xbf16>
    %cst_35 = arith.constant dense<0.000000e+00> : vector<256x128xf32>
    %38 = tpu.matmul %36, %37, %cst_35 {dimension_numbers = #tpu.dot_dimension_numbers<[1], [0], [0], [1], [0, 0, 1, 1], [], []>} : vector<256x128xbf16>, vector<128x128xbf16>, vector<256x128xf32> -> vector<256x128xf32>
    %39 = arith.addf %33, %38 : vector<256x128xf32>
    %c1_36 = arith.constant 1 : index
    %c8_37 = arith.constant 8 : index
    %c0_38 = arith.constant 0 : index
    %40 = vector.load %arg11[%c1_36, %c8_37, %c0_38] : memref<18x32x128xf32, #tpu.memory_space<vmem>>, vector<16x16x128xf32>
    %41 = vector.shape_cast %40 : vector<16x16x128xf32> to vector<256x128xf32>
    %42 = arith.truncf %41 : vector<256x128xf32> to vector<256x128xbf16>
    %c512 = arith.constant 512 : index
    %c0_39 = arith.constant 0 : index
    %43 = vector.load %arg4[%c512, %c0_39] : memref<1152x128xbf16, #tpu.memory_space<vmem>>, vector<128x128xbf16>
    %cst_40 = arith.constant dense<0.000000e+00> : vector<256x128xf32>
    %44 = tpu.matmul %42, %43, %cst_40 {dimension_numbers = #tpu.dot_dimension_numbers<[1], [0], [0], [1], [0, 0, 1, 1], [], []>} : vector<256x128xbf16>, vector<128x128xbf16>, vector<256x128xf32> -> vector<256x128xf32>
    %45 = arith.addf %39, %44 : vector<256x128xf32>
    %c1_41 = arith.constant 1 : index
    %c9_42 = arith.constant 9 : index
    %c0_43 = arith.constant 0 : index
    %46 = vector.load %arg11[%c1_41, %c9_42, %c0_43] : memref<18x32x128xf32, #tpu.memory_space<vmem>>, vector<16x16x128xf32>
    %47 = vector.shape_cast %46 : vector<16x16x128xf32> to vector<256x128xf32>
    %48 = arith.truncf %47 : vector<256x128xf32> to vector<256x128xbf16>
    %c640 = arith.constant 640 : index
    %c0_44 = arith.constant 0 : index
    %49 = vector.load %arg4[%c640, %c0_44] : memref<1152x128xbf16, #tpu.memory_space<vmem>>, vector<128x128xbf16>
    %cst_45 = arith.constant dense<0.000000e+00> : vector<256x128xf32>
    %50 = tpu.matmul %48, %49, %cst_45 {dimension_numbers = #tpu.dot_dimension_numbers<[1], [0], [0], [1], [0, 0, 1, 1], [], []>} : vector<256x128xbf16>, vector<128x128xbf16>, vector<256x128xf32> -> vector<256x128xf32>
    %51 = arith.addf %45, %50 : vector<256x128xf32>
    %c2 = arith.constant 2 : index
    %c7_46 = arith.constant 7 : index
    %c0_47 = arith.constant 0 : index
    %52 = vector.load %arg11[%c2, %c7_46, %c0_47] : memref<18x32x128xf32, #tpu.memory_space<vmem>>, vector<16x16x128xf32>
    %53 = vector.shape_cast %52 : vector<16x16x128xf32> to vector<256x128xf32>
    %54 = arith.truncf %53 : vector<256x128xf32> to vector<256x128xbf16>
    %c768 = arith.constant 768 : index
    %c0_48 = arith.constant 0 : index
    %55 = vector.load %arg4[%c768, %c0_48] : memref<1152x128xbf16, #tpu.memory_space<vmem>>, vector<128x128xbf16>
    %cst_49 = arith.constant dense<0.000000e+00> : vector<256x128xf32>
    %56 = tpu.matmul %54, %55, %cst_49 {dimension_numbers = #tpu.dot_dimension_numbers<[1], [0], [0], [1], [0, 0, 1, 1], [], []>} : vector<256x128xbf16>, vector<128x128xbf16>, vector<256x128xf32> -> vector<256x128xf32>
    %57 = arith.addf %51, %56 : vector<256x128xf32>
    %c2_50 = arith.constant 2 : index
    %c8_51 = arith.constant 8 : index
    %c0_52 = arith.constant 0 : index
    %58 = vector.load %arg11[%c2_50, %c8_51, %c0_52] : memref<18x32x128xf32, #tpu.memory_space<vmem>>, vector<16x16x128xf32>
    %59 = vector.shape_cast %58 : vector<16x16x128xf32> to vector<256x128xf32>
    %60 = arith.truncf %59 : vector<256x128xf32> to vector<256x128xbf16>
    %c896 = arith.constant 896 : index
    %c0_53 = arith.constant 0 : index
    %61 = vector.load %arg4[%c896, %c0_53] : memref<1152x128xbf16, #tpu.memory_space<vmem>>, vector<128x128xbf16>
    %cst_54 = arith.constant dense<0.000000e+00> : vector<256x128xf32>
    %62 = tpu.matmul %60, %61, %cst_54 {dimension_numbers = #tpu.dot_dimension_numbers<[1], [0], [0], [1], [0, 0, 1, 1], [], []>} : vector<256x128xbf16>, vector<128x128xbf16>, vector<256x128xf32> -> vector<256x128xf32>
    %63 = arith.addf %57, %62 : vector<256x128xf32>
    %c2_55 = arith.constant 2 : index
    %c9_56 = arith.constant 9 : index
    %c0_57 = arith.constant 0 : index
    %64 = vector.load %arg11[%c2_55, %c9_56, %c0_57] : memref<18x32x128xf32, #tpu.memory_space<vmem>>, vector<16x16x128xf32>
    %65 = vector.shape_cast %64 : vector<16x16x128xf32> to vector<256x128xf32>
    %66 = arith.truncf %65 : vector<256x128xf32> to vector<256x128xbf16>
    %c1024 = arith.constant 1024 : index
    %c0_58 = arith.constant 0 : index
    %67 = vector.load %arg4[%c1024, %c0_58] : memref<1152x128xbf16, #tpu.memory_space<vmem>>, vector<128x128xbf16>
    %cst_59 = arith.constant dense<0.000000e+00> : vector<256x128xf32>
    %68 = tpu.matmul %66, %67, %cst_59 {dimension_numbers = #tpu.dot_dimension_numbers<[1], [0], [0], [1], [0, 0, 1, 1], [], []>} : vector<256x128xbf16>, vector<128x128xbf16>, vector<256x128xf32> -> vector<256x128xf32>
    %69 = arith.addf %63, %68 : vector<256x128xf32>
    %c0_60 = arith.constant 0 : index
    %c0_61 = arith.constant 0 : index
    %70 = vector.load %arg5[%c0_60, %c0_61] : memref<1x128xf32, #tpu.memory_space<vmem>>, vector<1x128xf32>
    %71 = vector.broadcast %70 : vector<1x128xf32> to vector<256x128xf32>
    %72 = arith.addf %69, %71 : vector<256x128xf32>
    %cst_62 = arith.constant 0.000000e+00 : f32
    %73 = vector.broadcast %cst_62 : f32 to vector<256x128xf32>
    %74 = arith.maximumf %72, %73 : vector<256x128xf32>
    %75 = vector.shape_cast %74 : vector<256x128xf32> to vector<16x16x128xf32>
    %c1_63 = arith.constant 1 : index
    %c8_64 = arith.constant 8 : index
    %c0_65 = arith.constant 0 : index
    %76 = vector.load %arg12[%c1_63, %c8_64, %c0_65] : memref<18x32x128xf32, #tpu.memory_space<vmem>>, vector<16x16x128xf32>
    tpu.vector_store %arg12[%c1_63, %c8_64, %c0_65], %75 {strides = array<i32>} : memref<18x32x128xf32, #tpu.memory_space<vmem>>, vector<16x16x128xf32>,
    %c1_66 = arith.constant 1 : index
    %c8_67 = arith.constant 8 : index
    %c0_68 = arith.constant 0 : index
    %77 = vector.load %arg11[%c1_66, %c8_67, %c0_68] : memref<18x32x128xf32, #tpu.memory_space<vmem>>, vector<16x16x128xf32>
    %78 = vector.shape_cast %77 : vector<16x16x128xf32> to vector<256x128xf32>
    %cst_69 = arith.constant 0.000000e+00 : f32
    %79 = vector.broadcast %cst_69 : f32 to vector<256x128xf32>
    %c0_70 = arith.constant 0 : index
    %c7_71 = arith.constant 7 : index
    %c0_72 = arith.constant 0 : index
    %80 = vector.load %arg12[%c0_70, %c7_71, %c0_72] : memref<18x32x128xf32, #tpu.memory_space<vmem>>, vector<16x16x128xf32>
    %81 = vector.shape_cast %80 : vector<16x16x128xf32> to vector<256x128xf32>
    %82 = arith.truncf %81 : vector<256x128xf32> to vector<256x128xbf16>
    %c0_73 = arith.constant 0 : index
    %c0_74 = arith.constant 0 : index
    %83 = vector.load %arg6[%c0_73, %c0_74] : memref<1152x128xbf16, #tpu.memory_space<vmem>>, vector<128x128xbf16>
    %cst_75 = arith.constant dense<0.000000e+00> : vector<256x128xf32>
    %84 = tpu.matmul %82, %83, %cst_75 {dimension_numbers = #tpu.dot_dimension_numbers<[1], [0], [0], [1], [0, 0, 1, 1], [], []>} : vector<256x128xbf16>, vector<128x128xbf16>, vector<256x128xf32> -> vector<256x128xf32>
    %85 = arith.addf %79, %84 : vector<256x128xf32>
    %c0_76 = arith.constant 0 : index
    %c8_77 = arith.constant 8 : index
    %c0_78 = arith.constant 0 : index
    %86 = vector.load %arg12[%c0_76, %c8_77, %c0_78] : memref<18x32x128xf32, #tpu.memory_space<vmem>>, vector<16x16x128xf32>
    %87 = vector.shape_cast %86 : vector<16x16x128xf32> to vector<256x128xf32>
    %88 = arith.truncf %87 : vector<256x128xf32> to vector<256x128xbf16>
    %c128_79 = arith.constant 128 : index
    %c0_80 = arith.constant 0 : index
    %89 = vector.load %arg6[%c128_79, %c0_80] : memref<1152x128xbf16, #tpu.memory_space<vmem>>, vector<128x128xbf16>
    %cst_81 = arith.constant dense<0.000000e+00> : vector<256x128xf32>
    %90 = tpu.matmul %88, %89, %cst_81 {dimension_numbers = #tpu.dot_dimension_numbers<[1], [0], [0], [1], [0, 0, 1, 1], [], []>} : vector<256x128xbf16>, vector<128x128xbf16>, vector<256x128xf32> -> vector<256x128xf32>
    %91 = arith.addf %85, %90 : vector<256x128xf32>
    %c0_82 = arith.constant 0 : index
    %c9_83 = arith.constant 9 : index
    %c0_84 = arith.constant 0 : index
    %92 = vector.load %arg12[%c0_82, %c9_83, %c0_84] : memref<18x32x128xf32, #tpu.memory_space<vmem>>, vector<16x16x128xf32>
    %93 = vector.shape_cast %92 : vector<16x16x128xf32> to vector<256x128xf32>
    %94 = arith.truncf %93 : vector<256x128xf32> to vector<256x128xbf16>
    %c256_85 = arith.constant 256 : index
    %c0_86 = arith.constant 0 : index
    %95 = vector.load %arg6[%c256_85, %c0_86] : memref<1152x128xbf16, #tpu.memory_space<vmem>>, vector<128x128xbf16>
    %cst_87 = arith.constant dense<0.000000e+00> : vector<256x128xf32>
    %96 = tpu.matmul %94, %95, %cst_87 {dimension_numbers = #tpu.dot_dimension_numbers<[1], [0], [0], [1], [0, 0, 1, 1], [], []>} : vector<256x128xbf16>, vector<128x128xbf16>, vector<256x128xf32> -> vector<256x128xf32>
    %97 = arith.addf %91, %96 : vector<256x128xf32>
    %c1_88 = arith.constant 1 : index
    %c7_89 = arith.constant 7 : index
    %c0_90 = arith.constant 0 : index
    %98 = vector.load %arg12[%c1_88, %c7_89, %c0_90] : memref<18x32x128xf32, #tpu.memory_space<vmem>>, vector<16x16x128xf32>
    %99 = vector.shape_cast %98 : vector<16x16x128xf32> to vector<256x128xf32>
    %100 = arith.truncf %99 : vector<256x128xf32> to vector<256x128xbf16>
    %c384_91 = arith.constant 384 : index
    %c0_92 = arith.constant 0 : index
    %101 = vector.load %arg6[%c384_91, %c0_92] : memref<1152x128xbf16, #tpu.memory_space<vmem>>, vector<128x128xbf16>
    %cst_93 = arith.constant dense<0.000000e+00> : vector<256x128xf32>
    %102 = tpu.matmul %100, %101, %cst_93 {dimension_numbers = #tpu.dot_dimension_numbers<[1], [0], [0], [1], [0, 0, 1, 1], [], []>} : vector<256x128xbf16>, vector<128x128xbf16>, vector<256x128xf32> -> vector<256x128xf32>
    %103 = arith.addf %97, %102 : vector<256x128xf32>
    %c1_94 = arith.constant 1 : index
    %c8_95 = arith.constant 8 : index
    %c0_96 = arith.constant 0 : index
    %104 = vector.load %arg12[%c1_94, %c8_95, %c0_96] : memref<18x32x128xf32, #tpu.memory_space<vmem>>, vector<16x16x128xf32>
    %105 = vector.shape_cast %104 : vector<16x16x128xf32> to vector<256x128xf32>
    %106 = arith.truncf %105 : vector<256x128xf32> to vector<256x128xbf16>
    %c512_97 = arith.constant 512 : index
    %c0_98 = arith.constant 0 : index
    %107 = vector.load %arg6[%c512_97, %c0_98] : memref<1152x128xbf16, #tpu.memory_space<vmem>>, vector<128x128xbf16>
    %cst_99 = arith.constant dense<0.000000e+00> : vector<256x128xf32>
    %108 = tpu.matmul %106, %107, %cst_99 {dimension_numbers = #tpu.dot_dimension_numbers<[1], [0], [0], [1], [0, 0, 1, 1], [], []>} : vector<256x128xbf16>, vector<128x128xbf16>, vector<256x128xf32> -> vector<256x128xf32>
    %109 = arith.addf %103, %108 : vector<256x128xf32>
    %c1_100 = arith.constant 1 : index
    %c9_101 = arith.constant 9 : index
    %c0_102 = arith.constant 0 : index
    %110 = vector.load %arg12[%c1_100, %c9_101, %c0_102] : memref<18x32x128xf32, #tpu.memory_space<vmem>>, vector<16x16x128xf32>
    %111 = vector.shape_cast %110 : vector<16x16x128xf32> to vector<256x128xf32>
    %112 = arith.truncf %111 : vector<256x128xf32> to vector<256x128xbf16>
    %c640_103 = arith.constant 640 : index
    %c0_104 = arith.constant 0 : index
    %113 = vector.load %arg6[%c640_103, %c0_104] : memref<1152x128xbf16, #tpu.memory_space<vmem>>, vector<128x128xbf16>
    %cst_105 = arith.constant dense<0.000000e+00> : vector<256x128xf32>
    %114 = tpu.matmul %112, %113, %cst_105 {dimension_numbers = #tpu.dot_dimension_numbers<[1], [0], [0], [1], [0, 0, 1, 1], [], []>} : vector<256x128xbf16>, vector<128x128xbf16>, vector<256x128xf32> -> vector<256x128xf32>
    %115 = arith.addf %109, %114 : vector<256x128xf32>
    %c2_106 = arith.constant 2 : index
    %c7_107 = arith.constant 7 : index
    %c0_108 = arith.constant 0 : index
    %116 = vector.load %arg12[%c2_106, %c7_107, %c0_108] : memref<18x32x128xf32, #tpu.memory_space<vmem>>, vector<16x16x128xf32>
    %117 = vector.shape_cast %116 : vector<16x16x128xf32> to vector<256x128xf32>
    %118 = arith.truncf %117 : vector<256x128xf32> to vector<256x128xbf16>
    %c768_109 = arith.constant 768 : index
    %c0_110 = arith.constant 0 : index
    %119 = vector.load %arg6[%c768_109, %c0_110] : memref<1152x128xbf16, #tpu.memory_space<vmem>>, vector<128x128xbf16>
    %cst_111 = arith.constant dense<0.000000e+00> : vector<256x128xf32>
    %120 = tpu.matmul %118, %119, %cst_111 {dimension_numbers = #tpu.dot_dimension_numbers<[1], [0], [0], [1], [0, 0, 1, 1], [], []>} : vector<256x128xbf16>, vector<128x128xbf16>, vector<256x128xf32> -> vector<256x128xf32>
    %121 = arith.addf %115, %120 : vector<256x128xf32>
    %c2_112 = arith.constant 2 : index
    %c8_113 = arith.constant 8 : index
    %c0_114 = arith.constant 0 : index
    %122 = vector.load %arg12[%c2_112, %c8_113, %c0_114] : memref<18x32x128xf32, #tpu.memory_space<vmem>>, vector<16x16x128xf32>
    %123 = vector.shape_cast %122 : vector<16x16x128xf32> to vector<256x128xf32>
    %124 = arith.truncf %123 : vector<256x128xf32> to vector<256x128xbf16>
    %c896_115 = arith.constant 896 : index
    %c0_116 = arith.constant 0 : index
    %125 = vector.load %arg6[%c896_115, %c0_116] : memref<1152x128xbf16, #tpu.memory_space<vmem>>, vector<128x128xbf16>
    %cst_117 = arith.constant dense<0.000000e+00> : vector<256x128xf32>
    %126 = tpu.matmul %124, %125, %cst_117 {dimension_numbers = #tpu.dot_dimension_numbers<[1], [0], [0], [1], [0, 0, 1, 1], [], []>} : vector<256x128xbf16>, vector<128x128xbf16>, vector<256x128xf32> -> vector<256x128xf32>
    %127 = arith.addf %121, %126 : vector<256x128xf32>
    %c2_118 = arith.constant 2 : index
    %c9_119 = arith.constant 9 : index
    %c0_120 = arith.constant 0 : index
    %128 = vector.load %arg12[%c2_118, %c9_119, %c0_120] : memref<18x32x128xf32, #tpu.memory_space<vmem>>, vector<16x16x128xf32>
    %129 = vector.shape_cast %128 : vector<16x16x128xf32> to vector<256x128xf32>
    %130 = arith.truncf %129 : vector<256x128xf32> to vector<256x128xbf16>
    %c1024_121 = arith.constant 1024 : index
    %c0_122 = arith.constant 0 : index
    %131 = vector.load %arg6[%c1024_121, %c0_122] : memref<1152x128xbf16, #tpu.memory_space<vmem>>, vector<128x128xbf16>
    %cst_123 = arith.constant dense<0.000000e+00> : vector<256x128xf32>
    %132 = tpu.matmul %130, %131, %cst_123 {dimension_numbers = #tpu.dot_dimension_numbers<[1], [0], [0], [1], [0, 0, 1, 1], [], []>} : vector<256x128xbf16>, vector<128x128xbf16>, vector<256x128xf32> -> vector<256x128xf32>
    %133 = arith.addf %127, %132 : vector<256x128xf32>
    %c0_124 = arith.constant 0 : index
    %c0_125 = arith.constant 0 : index
    %134 = vector.load %arg7[%c0_124, %c0_125] : memref<1x128xf32, #tpu.memory_space<vmem>>, vector<1x128xf32>
    %135 = vector.broadcast %134 : vector<1x128xf32> to vector<256x128xf32>
    %136 = arith.addf %133, %135 : vector<256x128xf32>
    %137 = arith.addf %136, %78 : vector<256x128xf32>
    %cst_126 = arith.constant 0.000000e+00 : f32
    %138 = vector.broadcast %cst_126 : f32 to vector<256x128xf32>
    %139 = arith.maximumf %137, %138 : vector<256x128xf32>
    %cst_127 = arith.constant dense<0.000000e+00> : vector<128xf32>
    %140 = vector.multi_reduction <add>, %139, %cst_127 [0] : vector<256x128xf32> to vector<128xf32>
    %141 = vector.shape_cast %140 : vector<128xf32> to vector<1x128xf32>
    %cst_128 = arith.constant 3.906250e-03 : f32
    %142 = vector.broadcast %cst_128 : f32 to vector<1x128xf32>
    %143 = arith.mulf %141, %142 : vector<1x128xf32>
    %144 = arith.truncf %143 : vector<1x128xf32> to vector<1x128xbf16>
    %c0_129 = arith.constant 0 : index
    %c0_130 = arith.constant 0 : index
    %145 = vector.load %arg8[%c0_129, %c0_130] : memref<128x128xbf16, #tpu.memory_space<vmem>>, vector<128x128xbf16>
    %cst_131 = arith.constant dense<0.000000e+00> : vector<1x128xf32>
    %146 = tpu.matmul %144, %145, %cst_131 {dimension_numbers = #tpu.dot_dimension_numbers<[1], [0], [0], [1], [0, 0, 1, 1], [], []>} : vector<1x128xbf16>, vector<128x128xbf16>, vector<1x128xf32> -> vector<1x128xf32>
    %c0_132 = arith.constant 0 : index
    %c0_133 = arith.constant 0 : index
    %147 = vector.load %arg9[%c0_132, %c0_133] : memref<1x128xf32, #tpu.memory_space<vmem>>, vector<1x128xf32>
    %148 = arith.addf %146, %147 : vector<1x128xf32>
    %149 = vector.shape_cast %148 : vector<1x128xf32> to vector<1x128xf32>
    %150 = vector.broadcast %149 : vector<1x128xf32> to vector<8x128xf32>
    %c0_134 = arith.constant 0 : index
    %c0_135 = arith.constant 0 : index
    %c0_136 = arith.constant 0 : index
    %151 = vector.load %arg10[%c0_134, %c0_135, %c0_136] : memref<1x8x128xf32, #tpu.memory_space<vmem>>, vector<1x8x128xf32>
    %152 = vector.shape_cast %151 : vector<1x8x128xf32> to vector<8x128xf32>
    %153 = vector.shape_cast %150 : vector<8x128xf32> to vector<1x8x128xf32>
    tpu.vector_store %arg10[%c0_134, %c0_135, %c0_136], %153 {strides = array<i32>} : memref<1x8x128xf32, #tpu.memory_space<vmem>>, vector<1x8x128xf32>,
    return
  }
  func.func @transform_0(%arg0: i32) -> (i32, i32, i32) {
    %c0_i32 = arith.constant 0 : i32
    %c0_i32_0 = arith.constant 0 : i32
    %c0_i32_1 = arith.constant 0 : i32
    return %arg0, %c0_i32, %c0_i32_0 : i32, i32, i32
  }
  func.func @transform_1(%arg0: i32) -> (i32, i32) {
    %c0_i32 = arith.constant 0 : i32
    %c0_i32_0 = arith.constant 0 : i32
    %c0_i32_1 = arith.constant 0 : i32
    return %c0_i32, %c0_i32_0 : i32, i32
  }
  func.func @transform_2(%arg0: i32) -> (i32, i32) {
    %c0_i32 = arith.constant 0 : i32
    %c0_i32_0 = arith.constant 0 : i32
    %c0_i32_1 = arith.constant 0 : i32
    return %c0_i32, %c0_i32_0 : i32, i32
  }
  func.func @transform_3(%arg0: i32) -> (i32, i32) {
    %c0_i32 = arith.constant 0 : i32
    %c0_i32_0 = arith.constant 0 : i32
    %c0_i32_1 = arith.constant 0 : i32
    return %c0_i32, %c0_i32_0 : i32, i32
  }
  func.func @transform_4(%arg0: i32) -> (i32, i32) {
    %c0_i32 = arith.constant 0 : i32
    %c0_i32_0 = arith.constant 0 : i32
    %c0_i32_1 = arith.constant 0 : i32
    return %c0_i32, %c0_i32_0 : i32, i32
  }
  func.func @transform_5(%arg0: i32) -> (i32, i32) {
    %c0_i32 = arith.constant 0 : i32
    %c0_i32_0 = arith.constant 0 : i32
    %c0_i32_1 = arith.constant 0 : i32
    return %c0_i32, %c0_i32_0 : i32, i32
  }
  func.func @transform_6(%arg0: i32) -> (i32, i32) {
    %c0_i32 = arith.constant 0 : i32
    %c0_i32_0 = arith.constant 0 : i32
    %c0_i32_1 = arith.constant 0 : i32
    return %c0_i32, %c0_i32_0 : i32, i32
  }
  func.func @transform_7(%arg0: i32) -> (i32, i32) {
    %c0_i32 = arith.constant 0 : i32
    %c0_i32_0 = arith.constant 0 : i32
    %c0_i32_1 = arith.constant 0 : i32
    return %c0_i32, %c0_i32_0 : i32, i32
  }
  func.func @transform_8(%arg0: i32) -> (i32, i32) {
    %c0_i32 = arith.constant 0 : i32
    %c0_i32_0 = arith.constant 0 : i32
    %c0_i32_1 = arith.constant 0 : i32
    return %c0_i32, %c0_i32_0 : i32, i32
  }
  func.func @transform_9(%arg0: i32) -> (i32, i32, i32) {
    %c0_i32 = arith.constant 0 : i32
    %c0_i32_0 = arith.constant 0 : i32
    %c0_i32_1 = arith.constant 0 : i32
    return %arg0, %c0_i32, %c0_i32_0 : i32, i32, i32
  }
}

</mosaic_0001>

<bundles_post_ra>
// kernel: _lambda_.1
= control target key start
LH: loop header
LB: loop body
LE: loop exit
PB: predicated region body
PF: predicated region fallthrough
CT: control target
= control target key end

     0   :  { %s6263_s30 = smov 0   ;;  %s8706_s0 = inlined_call_operand.vmem [shape: bf16[2,256,36], index: 0, kind: input, shape index: {}]   ;;  %s8707_s1 = inlined_call_operand.vmem [shape: bf16[36,128], index: 1, kind: input, shape index: {}]   ;;  %s8708_s2 = inlined_call_operand.vmem [shape: f32[1,128], index: 2, kind: input, shape index: {}, may-alias: {2,4,6,8}]   ;;  %s8709_s3 = inlined_call_operand.vmem [shape: bf16[1152,128], index: 3, kind: input, shape index: {}]   ;;  %s8710_s4 = inlined_call_operand.vmem [shape: f32[1,128], index: 4, kind: input, shape index: {}, may-alias: {2,4,6,8}]   ;;  %s8711_s5 = inlined_call_operand.vmem [shape: bf16[1152,128], index: 5, kind: input, shape index: {}]   ;;  %s8712_s6 = inlined_call_operand.vmem [shape: f32[1,128], index: 6, kind: input, shape index: {}, may-alias: {2,4,6,8}]   ;;  %s8713_s7 = inlined_call_operand.vmem [shape: bf16[128,128], index: 7, kind: input, shape index: {}]   ;;  %s8714_s8 = inlined_call_operand.vmem [shape: f32[1,128], index: 8, kind: input, shape index: {}, may-alias: {2,4,6,8}]   ;;  %s8715_s9 = inlined_call_operand.vmem [shape: f32[2,8,128], index: 9, kind: output, shape index: {}]  }
   0x1 LB: > { %s5292_s10 = sadd.s32 4294967295, %s6209_s30   ;;  %p5296_p0 = scmp.ge.s32.totalorder %s6209_s30, 1  ;;  %s6209_s30 = sphi %s6263_s30, %s19_s30  }
   0x2   : > { %p287_p1 = scmp.lt.s32.totalorder %s6209_s30, 3 }
   0x4   : > { %p288_p2 = pnand %p5296_p0, %p287_p1 }
   0x6   : > { %291 = sbr.rel (%p288_p2) target bundleno = 1922 (0x782), region = 56 }
   0xb   : > { %v512_v0 = vld [vmem:[%s8707_s1 + $0x10] sm:$0x3]  ;;  %p322_p3 = scmp.lt.s32.totalorder %s5292_s10, 1  ;;  %vm661_vm0 = vcmask 1041408   ;;  %v6016_v4 = vld [vmem:[%s8707_s1 + $0x8] sm:$0xff]  ;;  %v6015_v5 = vld [vmem:[%s8707_s1] sm:$0xff] }
   0xc   : > { %v606_v1 = vunpack.c.l.b16 %v512_v0  ;;  %vm612_vm1 = vcmask 293888   ;;  %v6032_v10 = vld [vmem:[%s8709_s3 + $0x78] sm:$0xff]  ;;  %v6031_v12 = vld [vmem:[%s8709_s3 + $0x70] sm:$0xff]  ;;  %v6030_v14 = vld [vmem:[%s8709_s3 + $0x68] sm:$0xff]  ;;  %v6211_v23 = vmov 0.0   ;;  %v6212_v29 = vmov 0.0|0.0  }
   0xd   : > { %s9102_s10 = smov (!%p322_p3, %s5292_s10), 1  ;;  %995 = vmatpush.bf16.msra.mxu1 %v6032_v10  ;;  %v6307_v13 = vld [vmem:[%s8709_s3 + $0x38] sm:$0xff]  ;;  %v6316_v15 = vld [vmem:[%s8709_s3 + $0x30] sm:$0xff]  ;;  %v6322_v16 = vld [vmem:[%s8709_s3 + $0x28] sm:$0xff]  ;;  %332 = vst [vmem:[#allocation2] sm:$0xff] %v6211_v23 }
   0xe   : > { %v609_v2 = vpack.c.b16 %v606_v1, %v606_v1  ;;  %s5998_s15 = sshll.u32 %s9102_s10, 7  ;;  %1132 = vmatpush.bf16.msra.mxu2 %v6307_v13  ;;  %v6029_v17 = vld [vmem:[%s8709_s3 + $0x60] sm:$0xff]  ;;  %v6028_v18 = vld [vmem:[%s8709_s3 + $0x58] sm:$0xff]  ;;  %v6027_v21 = vld [vmem:[%s8709_s3 + $0x50] sm:$0xff]  ;;  %333 = vst [vmem:[#allocation2 + $0x8] sm:$0xff] %v6211_v23  ;;  %s5299_s14 = sshll.u32 %s9102_s10, 3 }
   0xf   : > { %s6286_s20 = scalar_lea.vmem %s8706_s0, %s5998_s15  ;;  %v6335_v20 = vld [vmem:[%s8709_s3 + $0x20] sm:$0xff]  ;;  %v6345_v22 = vld [vmem:[%s8709_s3 + $0x18] sm:$0xff]  ;;  %334 = vst [vmem:[#allocation2 + $0x10] sm:$0xff] %v6211_v23  ;;  %v6026_v24 = vld [vmem:[%s8709_s3 + $0x48] sm:$0xff]  ;;  %s330_s17 = scalar_lea.vmem %s8715_s9, %s5299_s14 }
  0x10   : > { %v663_v3 = vsel %vm661_vm0, %v609_v2, 0  ;;  %v5999_v6 = vld [vmem:[%s6286_s20] sm:$0xff]  ;;  %v6000_v7 = vld [vmem:[%s6286_s20 + $0x8] sm:$0xff]  ;;  %v6001_v8 = vld [vmem:[%s6286_s20 + $0x10] sm:$0xff]  ;;  %335 = vst [vmem:[#allocation2 + $0x18] sm:$0xff] %v6211_v23 }
  0x11   : > { %670 = vmatpush.bf16.msra.mxu0 %v663_v3  ;;  %6169 = vmatpush.bf16.msra.mxu3 %v663_v3  ;;  %v6002_v9 = vld [vmem:[%s6286_s20 + $0x18] sm:$0xff]  ;;  %v6003_v11 = vld [vmem:[%s6286_s20 + $0x20] sm:$0xff]  ;;  %v6004_v19 = vld [vmem:[%s6286_s20 + $0x28] sm:$0xff]  ;;  %336 = vst [vmem:[#allocation2 + $0x20] sm:$0xff] %v6211_v23 }
  0x12   : > { %996 = vmatpush.bf16.msra.mxu1 %v6031_v12  ;;  %1133 = vmatpush.bf16.msra.mxu2 %v6316_v15  ;;  %v6358_v25 = vld [vmem:[%s8709_s3 + $0x10] sm:$0xff]  ;;  %339 = vst [vmem:[#allocation2 + $0x38] sm:$0xff] %v6211_v23  ;;  %v6025_v26 = vld [vmem:[%s8709_s3 + $0x40] sm:$0xff]  ;;  %v6374_v27 = vld [vmem:[%s8709_s3 + $0x8] sm:$0xff] }
  0x13   : > { %340 = vst [vmem:[#allocation2 + $0x40] sm:$0xff] %v6211_v23  ;;  %v6005_v28 = vld [vmem:[%s6286_s20 + $0x30] sm:$0xff]  ;;  %v6385_v30 = vld [vmem:[%s8709_s3] sm:$0xff]  ;;  %v6006_v34 = vld [vmem:[%s6286_s20 + $0x38] sm:$0xff] }
  0x14   : > { %343 = vst [vmem:[#allocation2 + $0x58] sm:$0xff] %v6211_v23  ;;  %v6420_v35 = vld [vmem:[%s8708_s2] ss:$0 sm:$0xff]  ;;  %v6008_v44 = vld [vmem:[%s6286_s20 + $0x48] sm:$0xff]  ;;  %v6009_v52 = vld [vmem:[%s6286_s20 + $0x50] sm:$0xff] }
  0x15   : > { %671 = vmatpush.bf16.msra.mxu0 %v6016_v4  ;;  %6170 = vmatpush.bf16.msra.mxu3 %v6016_v4  ;;  %344 = vst [vmem:[#allocation2 + $0x60] sm:$0xff] %v6211_v23  ;;  %v819_v31 = vld [vmem:[#allocation2 + $0x7] sm:$0xff]  ;;  %v6048_v53 = vld [vmem:[%s8709_s3 + $0xf8] sm:$0xff]  ;;  %v6047_v0 = vld [vmem:[%s8709_s3 + $0xf0] sm:$0xff] }
  0x16   : > { %997 = vmatpush.bf16.msra.mxu1 %v6030_v14  ;;  %1134 = vmatpush.bf16.msra.mxu2 %v6322_v16  ;;  %347 = vst [vmem:[#allocation2 + $0x78] sm:$0xff] %v6211_v23  ;;  %v820_v32 = vld [vmem:[#allocation2 + $0xf] sm:$0xff]  ;;  %v6007_v36 = vld [vmem:[%s6286_s20 + $0x40] sm:$0xff]  ;;  %v6010_v1 = vld [vmem:[%s6286_s20 + $0x58] sm:$0xff] }
  0x17   : > { %348 = vst [vmem:[#allocation2 + $0x80] sm:$0xff] %v6211_v23  ;;  %v851_v33 = vpack.c.bf16 %v820_v32, %v819_v31  ;;  %v6046_v3 = vld [vmem:[%s8709_s3 + $0xe8] sm:$0xff] }
  0x18   : > { %351 = vst [vmem:[#allocation2 + $0x98] sm:$0xff] %v6211_v23  ;;  %v6012_v4 = vld [vmem:[%s6286_s20 + $0x68] sm:$0xff] }
  0x19   : > { %672 = vmatpush.bf16.msra.mxu0 %v6015_v5  ;;  %6171 = vmatpush.bf16.msra.mxu3 %v6015_v5  ;;  %352 = vst [vmem:[#allocation2 + $0xa0] sm:$0xff] %v6211_v23 }
  0x1a   : > { %998 = vmatpush.bf16.msra.mxu1 %v6029_v17  ;;  %1135 = vmatpush.bf16.msra.mxu2 %v6335_v20  ;;  %355 = vst [vmem:[#allocation2 + $0xb8] sm:$0xff] %v6211_v23 }
  0x1b   : > { %356 = vst [vmem:[#allocation2 + $0xc0] sm:$0xff] %v6211_v23 }
  0x1c   : > { %5372 = vmatmul.msk.bf16.vlgmr.msra.gmra.mxu0 %vm612_vm1, %v5999_v6  ;;  %359 = vst [vmem:[#allocation2 + $0xd8] sm:$0xff] %v6211_v23  ;;  %5385 = vmatmul.msk.bf16.vlgmr.msra.gmra.mxu3 %vm612_vm1, %v6012_v4 }
  0x1d   : > { %6172 = vmatpush.bf16.msrb.mxu3 %v6032_v10  ;;  %360 = vst [vmem:[#allocation2 + $0xe0] sm:$0xff] %v6211_v23  ;;  %1566 = vmatpush.bf16.msrb.mxu0 %v6048_v53  ;;  %v6044_v10 = vld [vmem:[%s8709_s3 + $0xd8] sm:$0xff] }
  0x1e   : > { %999 = vmatpush.bf16.msra.mxu1 %v6028_v18  ;;  %1136 = vmatpush.bf16.msra.mxu2 %v6345_v22  ;;  %363 = vst [vmem:[#allocation2 + $0xf8] sm:$0xff] %v6211_v23 }
  0x1f   : > { %364 = vst [vmem:[#allocation2 + $0x100] sm:$0xff] %v6211_v23 }
  0x20   : > { %367 = vst [vmem:[#allocation2 + $0x118] sm:$0xff] %v6211_v23 }
  0x21   : > { %6173 = vmatpush.bf16.msrb.mxu3 %v6031_v12  ;;  %368 = vst [vmem:[#allocation2 + $0x120] sm:$0xff] %v6211_v23  ;;  %1567 = vmatpush.bf16.msrb.mxu0 %v6047_v0 }
  0x22   : > { %1000 = vmatpush.bf16.msra.mxu1 %v6027_v21  ;;  %1137 = vmatpush.bf16.msra.mxu2 %v6358_v25  ;;  %371 = vst [vmem:[#allocation2 + $0x138] sm:$0xff] %v6211_v23 }
  0x23   : > { %372 = vst [vmem:[#allocation2 + $0x140] sm:$0xff] %v6211_v23 }
  0x24   : > { %375 = vst [vmem:[#allocation2 + $0x158] sm:$0xff] %v6211_v23 }
  0x25   : > { %6174 = vmatpush.bf16.msrb.mxu3 %v6030_v14  ;;  %376 = vst [vmem:[#allocation2 + $0x160] sm:$0xff] %v6211_v23  ;;  %1568 = vmatpush.bf16.msrb.mxu0 %v6046_v3  ;;  %v6056_v3 = vld [vmem:[%s8709_s3 + $0x138] sm:$0xff] }
  0x26   : > { %1001 = vmatpush.bf16.msra.mxu1 %v6026_v24  ;;  %1138 = vmatpush.bf16.msra.mxu2 %v6374_v27  ;;  %379 = vst [vmem:[#allocation2 + $0x178] sm:$0xff] %v6211_v23 }
  0x27   : > { %380 = vst [vmem:[#allocation2 + $0x180] sm:$0xff] %v6211_v23 }
  0x28   : > { %383 = vst [vmem:[#allocation2 + $0x198] sm:$0xff] %v6211_v23 }
  0x29   : > { %6175 = vmatpush.bf16.msrb.mxu3 %v6029_v17  ;;  %384 = vst [vmem:[#allocation2 + $0x1a0] sm:$0xff] %v6211_v23 }
  0x2a   : > { %1002 = vmatpush.bf16.msra.mxu1 %v6025_v26  ;;  %1139 = vmatpush.bf16.msra.mxu2 %v6385_v30  ;;  %387 = vst [vmem:[#allocation2 + $0x1b8] sm:$0xff] %v6211_v23 }
  0x2b   : > { %388 = vst [vmem:[#allocation2 + $0x1c0] sm:$0xff] %v6211_v23 }
  0x2c   : > { %5373 = vmatmul.msk.bf16.gmra.mxu0 %vm612_vm1, %v6000_v7  ;;  %391 = vst [vmem:[#allocation2 + $0x1d8] sm:$0xff] %v6211_v23  ;;  %v6045_v7 = vld [vmem:[%s8709_s3 + $0xe0] sm:$0xff] }
  0x2d   : > { %6176 = vmatpush.bf16.msrb.mxu3 %v6028_v18  ;;  %1003 = vmatmul.bf16.vlgmr.msra.gmra.mxu1 %v6212_v29  ;;  %392 = vst [vmem:[#allocation2 + $0x1e0] sm:$0xff] %v6211_v23  ;;  %v6011_v18 = vld [vmem:[%s6286_s20 + $0x60] sm:$0xff] }
  0x2e   : > { %1140 = vmatmul.bf16.vlgmr.msra.gmra.mxu2 %v851_v33  ;;  %395 = vst [vmem:[#allocation2 + $0x1f8] sm:$0xff] %v6211_v23  ;;  %1569 = vmatpush.bf16.msrb.mxu0 %v6045_v7 }
  0x2f   : > { %396 = vst [vmem:[#allocation2 + $0x200] sm:$0xff] %v6211_v23  ;;  %1799 = vmatpush.bf16.msrb.mxu1 %v6056_v3  ;;  %v6049_v3 = vld [vmem:[%s8709_s3 + $0x100] sm:$0xff] }
  0x30   : > { %399 = vst [vmem:[#allocation2 + $0x218] sm:$0xff] %v6211_v23 }
  0x31   : > { %6177 = vmatpush.bf16.msrb.mxu3 %v6027_v21  ;;  %400 = vst [vmem:[#allocation2 + $0x220] sm:$0xff] %v6211_v23 }
  0x32   : > { %401 = vst [vmem:[#allocation2 + $0x228] sm:$0xff] %v6211_v23  ;;  %1570 = vmatpush.bf16.msrb.mxu0 %v6044_v10 }
  0x33   : > { %402 = vst [vmem:[#allocation2 + $0x230] sm:$0xff] %v6211_v23 }
  0x34   : > { %403 = vst [vmem:[#allocation2 + $0x238] sm:$0xff] %v6211_v23 }
  0x35   : > { %6178 = vmatpush.bf16.msrb.mxu3 %v6026_v24  ;;  %404 = vst [vmem:[#allocation3] sm:$0xff] %v6211_v23 }
  0x36   : > { %405 = vst [vmem:[#allocation3 + $0x8] sm:$0xff] %v6211_v23 }
  0x37   : > { %406 = vst [vmem:[#allocation3 + $0x10] sm:$0xff] %v6211_v23 }
  0x38   : > { %407 = vst [vmem:[#allocation3 + $0x18] sm:$0xff] %v6211_v23 }
  0x39   : > { %6179 = vmatpush.bf16.msrb.mxu3 %v6025_v26  ;;  %408 = vst [vmem:[#allocation3 + $0x20] sm:$0xff] %v6211_v23  ;;  %v6041_v26 = vld [vmem:[%s8709_s3 + $0xc0] sm:$0xff] }
  0x3a   : > { %411 = vst [vmem:[#allocation3 + $0x38] sm:$0xff] %v6211_v23 }
  0x3b   : > { %412 = vst [vmem:[#allocation3 + $0x40] sm:$0xff] %v6211_v23 }
  0x3c   : > { %5374 = vmatmul.msk.bf16.gmra.mxu0 %vm612_vm1, %v6001_v8  ;;  %415 = vst [vmem:[#allocation3 + $0x58] sm:$0xff] %v6211_v23 }
  0x3d   : > { %416 = vst [vmem:[#allocation3 + $0x60] sm:$0xff] %v6211_v23  ;;  %6180 = vmatpush.bf16.msra.mxu3 %v6307_v13 }
  0x3e   : > { %419 = vst [vmem:[#allocation3 + $0x78] sm:$0xff] %v6211_v23 }
  0x3f   : > { %420 = vst [vmem:[#allocation3 + $0x80] sm:$0xff] %v6211_v23 }
  0x40   : > { %423 = vst [vmem:[#allocation3 + $0x98] sm:$0xff] %v6211_v23 }
  0x41   : > { %424 = vst [vmem:[#allocation3 + $0xa0] sm:$0xff] %v6211_v23  ;;  %6181 = vmatpush.bf16.msra.mxu3 %v6316_v15  ;;  %v6043_v15 = vld [vmem:[%s8709_s3 + $0xd0] sm:$0xff] }
  0x42   : > { %427 = vst [vmem:[#allocation3 + $0xb8] sm:$0xff] %v6211_v23  ;;  %1571 = vmatpush.bf16.msrb.mxu0 %v6043_v15 }
  0x43   : > { %428 = vst [vmem:[#allocation3 + $0xc0] sm:$0xff] %v6211_v23 }
  0x44   : > { %431 = vst [vmem:[#allocation3 + $0xd8] sm:$0xff] %v6211_v23 }
  0x45   : > { %432 = vst [vmem:[#allocation3 + $0xe0] sm:$0xff] %v6211_v23  ;;  %6182 = vmatpush.bf16.msra.mxu3 %v6322_v16 }
  0x46   : > { %435 = vst [vmem:[#allocation3 + $0xf8] sm:$0xff] %v6211_v23 }
  0x47   : > { %436 = vst [vmem:[#allocation3 + $0x100] sm:$0xff] %v6211_v23 }
  0x48   : > { %439 = vst [vmem:[#allocation3 + $0x118] sm:$0xff] %v6211_v23 }
  0x49   : > { %440 = vst [vmem:[#allocation3 + $0x120] sm:$0xff] %v6211_v23  ;;  %6183 = vmatpush.bf16.msra.mxu3 %v6335_v20 }
  0x4a   : > { %443 = vst [vmem:[#allocation3 + $0x138] sm:$0xff] %v6211_v23 }
  0x4b   : > { %444 = vst [vmem:[#allocation3 + $0x140] sm:$0xff] %v6211_v23 }
  0x4c   : > { %5375 = vmatmul.msk.bf16.gmra.mxu0 %vm612_vm1, %v6002_v9  ;;  %447 = vst [vmem:[#allocation3 + $0x158] sm:$0xff] %v6211_v23 }
  0x4d   : > { %448 = vst [vmem:[#allocation3 + $0x160] sm:$0xff] %v6211_v23  ;;  %6184 = vmatpush.bf16.msra.mxu3 %v6345_v22 }
  0x4e   : > { %451 = vst [vmem:[#allocation3 + $0x178] sm:$0xff] %v6211_v23 }
  0x4f   : > { %452 = vst [vmem:[#allocation3 + $0x180] sm:$0xff] %v6211_v23 }
  0x50   : > { %455 = vst [vmem:[#allocation3 + $0x198] sm:$0xff] %v6211_v23 }
  0x51   : > { %456 = vst [vmem:[#allocation3 + $0x1a0] sm:$0xff] %v6211_v23  ;;  %6185 = vmatpush.bf16.msra.mxu3 %v6358_v25 }
  0x52   : > { %459 = vst [vmem:[#allocation3 + $0x1b8] sm:$0xff] %v6211_v23 }
  0x53   : > { %460 = vst [vmem:[#allocation3 + $0x1c0] sm:$0xff] %v6211_v23 }
  0x54   : > { %463 = vst [vmem:[#allocation3 + $0x1d8] sm:$0xff] %v6211_v23 }
  0x55   : > { %464 = vst [vmem:[#allocation3 + $0x1e0] sm:$0xff] %v6211_v23  ;;  %6186 = vmatpush.bf16.msra.mxu3 %v6374_v27 }
  0x56   : > { %467 = vst [vmem:[#allocation3 + $0x1f8] sm:$0xff] %v6211_v23 }
  0x57   : > { %468 = vst [vmem:[#allocation3 + $0x200] sm:$0xff] %v6211_v23 }
  0x58   : > { %471 = vst [vmem:[#allocation3 + $0x218] sm:$0xff] %v6211_v23 }
  0x59   : > { %472 = vst [vmem:[#allocation3 + $0x220] sm:$0xff] %v6211_v23  ;;  %6187 = vmatpush.bf16.msra.mxu3 %v6385_v30 }
  0x5a   : > { %473 = vst [vmem:[#allocation3 + $0x228] sm:$0xff] %v6211_v23 }
  0x5b   : > { %474 = vst [vmem:[#allocation3 + $0x230] sm:$0xff] %v6211_v23 }
  0x5c   : > { %5376 = vmatmul.msk.bf16.gmra.mxu0 %vm612_vm1, %v6003_v11  ;;  %475 = vst [vmem:[#allocation3 + $0x238] sm:$0xff] %v6211_v23  ;;  %v6042_v23 = vld [vmem:[%s8709_s3 + $0xc8] sm:$0xff] }
  0x5d   : > { %1572 = vmatpush.bf16.msrb.mxu0 %v6042_v23 }
  0x61   : > { %1573 = vmatpush.bf16.msrb.mxu0 %v6041_v26 }
  0x6c   : > { %5377 = vmatmul.msk.bf16.gmra.mxu0 %vm612_vm1, %v6004_v19  ;;  %v6013_v19 = vld [vmem:[%s6286_s20 + $0x70] sm:$0xff] }
  0x6d   : > { %5386 = vmatmul.msk.bf16.gmra.mxu3 %vm612_vm1, %v6013_v19 }
  0x7c   : > { %5378 = vmatmul.msk.bf16.gmra.mxu0 %vm612_vm1, %v6005_v28 }
  0x8c   : > { %5379 = vmatmul.msk.bf16.gmra.mxu0 %vm612_vm1, %v6006_v34 }
  0x99   : > { %v674_v37 = vpop.f32.mrf.mxu0 }
  0x9a   : > { %v675_v38 = vadd.f32 %v6420_v35, %v674_v37 }
  0x9c   : > { %v754_v39 = vmax.f32 %v675_v38, 0.0  ;;  %5380 = vmatmul.msk.bf16.gmra.mxu0 %vm612_vm1, %v6007_v36 }
  0x9e   : > { %787 = vst [vmem:[#allocation2 + $0x28] sm:$0xff] %v754_v39 }
  0xa1   : > { %v676_v40 = vpop.f32.mrf.mxu0 }
  0xa2   : > { %v677_v41 = vadd.f32 %v6420_v35, %v676_v40 }
  0xa4   : > { %v6440_v42 = vmax.f32 %v677_v41, 0.0 }
  0xa5   : > { %v821_v60 = vld [vmem:[#allocation2 + $0x27] sm:$0xff] }
  0xa6   : > { %v916_v43 = vpack.c.bf16 %v6440_v42, %v754_v39  ;;  %788 = vst [vmem:[#allocation2 + $0x30] sm:$0xff] %v6440_v42 }
  0xa8   : > { %1008 = vmatmul.bf16.gmra.mxu1 %v916_v43 }
  0xa9   : > { %v679_v45 = vpop.f32.mrf.mxu0 }
  0xaa   : > { %v680_v46 = vadd.f32 %v6420_v35, %v679_v45 }
  0xac   : > { %5381 = vmatmul.msk.bf16.gmra.mxu0 %vm612_vm1, %v6008_v44  ;;  %v756_v49 = vmax.f32 %v680_v46, 0.0 }
  0xad   : > { %v822_v61 = vld [vmem:[#allocation2 + $0x2f] sm:$0xff] }
  0xae   : > { %789 = vst [vmem:[#allocation2 + $0x48] sm:$0xff] %v756_v49  ;;  %v6483_v62 = vpack.c.bf16 %v822_v61, %v821_v60 }
  0xb0   : > { %1145 = vmatmul.bf16.gmra.mxu2 %v6483_v62 }
  0xb1   : > { %v681_v47 = vpop.f32.mrf.mxu0 }
  0xb2   : > { %v682_v48 = vadd.f32 %v6420_v35, %v681_v47 }
  0xb4   : > { %v757_v50 = vmax.f32 %v682_v48, 0.0 }
  0xb5   : > { %v823_v12 = vld [vmem:[#allocation2 + $0x47] sm:$0xff] }
  0xb6   : > { %v6465_v51 = vpack.c.bf16 %v757_v50, %v756_v49  ;;  %790 = vst [vmem:[#allocation2 + $0x50] sm:$0xff] %v757_v50 }
  0xb8   : > { %1013 = vmatmul.bf16.gmra.mxu1 %v6465_v51 }
  0xb9   : > { %v684_v54 = vpop.f32.mrf.mxu0 }
  0xba   : > { %v685_v55 = vadd.f32 %v6420_v35, %v684_v54 }
  0xbc   : > { %5382 = vmatmul.msk.bf16.gmra.mxu0 %vm612_vm1, %v6009_v52  ;;  %v758_v56 = vmax.f32 %v685_v55, 0.0 }
  0xbd   : > { %v824_v8 = vld [vmem:[#allocation2 + $0x4f] sm:$0xff] }
  0xbe   : > { %791 = vst [vmem:[#allocation2 + $0x68] sm:$0xff] %v758_v56  ;;  %v853_v13 = vpack.c.bf16 %v824_v8, %v823_v12 }
  0xc0   : > { %1150 = vmatmul.bf16.gmra.mxu2 %v853_v13 }
  0xc1   : > { %v686_v57 = vpop.f32.mrf.mxu0 }
  0xc2   : > { %v687_v58 = vadd.f32 %v6420_v35, %v686_v57 }
  0xc4   : > { %v759_v59 = vmax.f32 %v687_v58, 0.0 }
  0xc5   : > { %v825_v31 = vld [vmem:[#allocation2 + $0x67] sm:$0xff] }
  0xc6   : > { %792 = vst [vmem:[#allocation2 + $0x70] sm:$0xff] %v759_v59  ;;  %v6485_v63 = vpack.c.bf16 %v759_v59, %v758_v56  ;;  %v1004_v59 = vpop.f32.mrf.mxu1 }
  0xc8   : > { %1018 = vmatmul.bf16.gmra.mxu1 %v6485_v63 }
  0xc9   : > { %v689_v2 = vpop.f32.mrf.mxu0 }
  0xca   : > { %v690_v5 = vadd.f32 %v6420_v35, %v689_v2  ;;  %v1141_v2 = vpop.f32.mrf.mxu2 }
  0xcc   : > { %v760_v6 = vmax.f32 %v690_v5, 0.0  ;;  %5383 = vmatmul.msk.bf16.gmra.mxu0 %vm612_vm1, %v6010_v1  ;;  %v6555_v5 = vadd.f32 %v1141_v2, %v1004_v59  ;;  %v6060_v59 = vld [vmem:[%s8709_s3 + $0x158] sm:$0xff]  ;;  %v6059_v2 = vld [vmem:[%s8709_s3 + $0x150] sm:$0xff] }
  0xcd   : > { %v826_v28 = vld [vmem:[#allocation2 + $0x6f] sm:$0xff] }
  0xce   : > { %793 = vst [vmem:[#allocation2 + $0x88] sm:$0xff] %v760_v6  ;;  %v854_v32 = vpack.c.bf16 %v826_v28, %v825_v31  ;;  %v6558_v7 = vpop.f32.mrf.mxu1 }
  0xd0   : > { %1155 = vmatmul.bf16.gmra.mxu2 %v854_v32 }
  0xd1   : > { %v691_v9 = vpop.f32.mrf.mxu0 }
  0xd2   : > { %v692_v11 = vadd.f32 %v6420_v35, %v691_v9 }
  0xd4   : > { %v761_v14 = vmax.f32 %v692_v11, 0.0 }
  0xd5   : > { %v827_v27 = vld [vmem:[#allocation2 + $0x87] sm:$0xff] }
  0xd6   : > { %794 = vst [vmem:[#allocation2 + $0x90] sm:$0xff] %v761_v14  ;;  %v6510_v17 = vpack.c.bf16 %v761_v14, %v760_v6 }
  0xd8   : > { %1023 = vmatmul.bf16.gmra.mxu1 %v6510_v17 }
  0xd9   : > { %v694_v21 = vpop.f32.mrf.mxu0 }
  0xda   : > { %v695_v16 = vadd.f32 %v6420_v35, %v694_v21 }
  0xdc   : > { %v762_v24 = vmax.f32 %v695_v16, 0.0  ;;  %5384 = vmatmul.msk.bf16.gmra.mxu0 %vm612_vm1, %v6011_v18 }
  0xdd   : > { %v828_v25 = vld [vmem:[#allocation2 + $0x8f] sm:$0xff] }
  0xde   : > { %795 = vst [vmem:[#allocation2 + $0xa8] sm:$0xff] %v762_v24  ;;  %v855_v40 = vpack.c.bf16 %v828_v25, %v827_v27  ;;  %v6054_v25 = vld [vmem:[%s8709_s3 + $0x128] sm:$0xff]  ;;  %v6063_v27 = vld [vmem:[%s8709_s3 + $0x170] sm:$0xff] }
  0xe0   : > { %1160 = vmatmul.bf16.gmra.mxu2 %v855_v40 }
  0xe1   : > { %v696_v29 = vpop.f32.mrf.mxu0 }
  0xe2   : > { %v697_v20 = vadd.f32 %v6420_v35, %v696_v29 }
  0xe4   : > { %v763_v33 = vmax.f32 %v697_v20, 0.0  ;;  %v6055_v20 = vld [vmem:[%s8709_s3 + $0x130] sm:$0xff] }
  0xe5   : > { %v829_v49 = vld [vmem:[#allocation2 + $0xa7] sm:$0xff]  ;;  %1800 = vmatpush.bf16.msrb.mxu1 %v6055_v20  ;;  %v739_v20 = vpop.f32.mrf.mxu3 }
  0xe6   : > { %796 = vst [vmem:[#allocation2 + $0xb0] sm:$0xff] %v763_v33  ;;  %v6532_v34 = vpack.c.bf16 %v763_v33, %v762_v24 }
  0xe8   : > { %1028 = vmatmul.bf16.gmra.mxu1 %v6532_v34 }
  0xe9   : > { %v699_v22 = vpop.f32.mrf.mxu0  ;;  %1801 = vmatpush.bf16.msrb.mxu1 %v6054_v25 }
  0xea   : > { %v700_v36 = vadd.f32 %v6420_v35, %v699_v22 }
  0xec   : > { %v764_v37 = vmax.f32 %v700_v36, 0.0  ;;  %1574 = vmatmul.bf16.vlgmr.msrb.gmra.mxu0 %v6483_v62  ;;  %v6014_v36 = vld [vmem:[%s6286_s20 + $0x78] sm:$0xff] }
  0xed   : > { %v830_v46 = vld [vmem:[#allocation2 + $0xaf] sm:$0xff]  ;;  %5387 = vmatmul.msk.bf16.gmra.mxu3 %vm612_vm1, %v6014_v36 }
  0xee   : > { %797 = vst [vmem:[#allocation2 + $0xc8] sm:$0xff] %v764_v37  ;;  %v856_v50 = vpack.c.bf16 %v830_v46, %v829_v49  ;;  %v6607_v46 = vpop.f32.mrf.mxu2 }
  0xf0   : > { %1165 = vmatmul.bf16.gmra.mxu2 %v856_v50 }
  0xf1   : > { %v701_v38 = vpop.f32.mrf.mxu0 }
  0xf2   : > { %v702_v39 = vadd.f32 %v6420_v35, %v701_v38 }
  0xf4   : > { %v765_v41 = vmax.f32 %v702_v39, 0.0 }
  0xf5   : > { %v831_v61 = vld [vmem:[#allocation2 + $0xc7] sm:$0xff] }
  0xf6   : > { %798 = vst [vmem:[#allocation2 + $0xd0] sm:$0xff] %v765_v41  ;;  %v6539_v43 = vpack.c.bf16 %v765_v41, %v764_v37  ;;  %v6064_v37 = vld [vmem:[%s8709_s3 + $0x178] sm:$0xff] }
  0xf7   : > { %2032 = vmatpush.bf16.msrb.mxu2 %v6064_v37 }
  0xf8   : > { %1033 = vmatmul.bf16.gmra.mxu1 %v6539_v43 }
  0xf9   : > { %v704_v30 = vpop.f32.mrf.mxu0 }
  0xfa   : > { %v705_v44 = vadd.f32 %v6420_v35, %v704_v30 }
  0xfb   : > { %2033 = vmatpush.bf16.msrb.mxu2 %v6063_v27  ;;  %v741_v27 = vpop.f32.mrf.mxu3 }
  0xfc   : > { %v766_v45 = vmax.f32 %v705_v44, 0.0  ;;  %1579 = vmatmul.bf16.gmra.mxu0 %v853_v13  ;;  %v6062_v44 = vld [vmem:[%s8709_s3 + $0x168] sm:$0xff] }
  0xfd   : > { %v832_v57 = vld [vmem:[#allocation2 + $0xcf] sm:$0xff] }
  0xfe   : > { %799 = vst [vmem:[#allocation2 + $0xe8] sm:$0xff] %v766_v45  ;;  %v857_v62 = vpack.c.bf16 %v832_v57, %v831_v61 }
  0xff   : > { %2034 = vmatpush.bf16.msrb.mxu2 %v6062_v44  ;;  %v742_v44 = vadd.f32 %v6420_v35, %v741_v27 }
 0x100   : > { %1170 = vmatmul.bf16.gmra.mxu2 %v857_v62 }
 0x101   : > { %v706_v47 = vpop.f32.mrf.mxu0 }
 0x102   : > { %v707_v48 = vadd.f32 %v6420_v35, %v706_v47 }
 0x104   : > { %v767_v52 = vmax.f32 %v707_v48, 0.0 }
 0x105   : > { %v833_v12 = vld [vmem:[#allocation2 + $0xe7] sm:$0xff] }
 0x106   : > { %800 = vst [vmem:[#allocation2 + $0xf0] sm:$0xff] %v767_v52  ;;  %v6544_v53 = vpack.c.bf16 %v767_v52, %v766_v45  ;;  %v6052_v45 = vld [vmem:[%s8709_s3 + $0x118] sm:$0xff]  ;;  %v6061_v52 = vld [vmem:[%s8709_s3 + $0x160] sm:$0xff] }
 0x107   : > { %2035 = vmatpush.bf16.msrb.mxu2 %v6061_v52 }
 0x108   : > { %1038 = vmatmul.bf16.gmra.mxu1 %v6544_v53 }
 0x109   : > { %v709_v54 = vpop.f32.mrf.mxu0 }
 0x10a   : > { %v710_v55 = vadd.f32 %v6420_v35, %v709_v54  ;;  %v6051_v54 = vld [vmem:[%s8709_s3 + $0x110] sm:$0xff] }
 0x10b   : > { %2036 = vmatpush.bf16.msrb.mxu2 %v6060_v59 }
 0x10c   : > { %v768_v56 = vmax.f32 %v710_v55, 0.0  ;;  %1584 = vmatmul.bf16.gmra.mxu0 %v854_v32 }
 0x10d   : > { %v834_v9 = vld [vmem:[#allocation2 + $0xef] sm:$0xff] }
 0x10e   : > { %801 = vst [vmem:[#allocation2 + $0x108] sm:$0xff] %v768_v56  ;;  %v6561_v13 = vpack.c.bf16 %v834_v9, %v833_v12  ;;  %v6058_v9 = vld [vmem:[%s8709_s3 + $0x148] sm:$0xff] }
 0x10f   : > { %2037 = vmatpush.bf16.msrb.mxu2 %v6059_v2 }
 0x110   : > { %1175 = vmatmul.bf16.gmra.mxu2 %v6561_v13 }
 0x111   : > { %v711_v58 = vpop.f32.mrf.mxu0 }
 0x112   : > { %v712_v60 = vadd.f32 %v6420_v35, %v711_v58 }
 0x113   : > { %2038 = vmatpush.bf16.msrb.mxu2 %v6058_v9 }
 0x114   : > { %v769_v0 = vmax.f32 %v712_v60, 0.0  ;;  %v6050_v60 = vld [vmem:[%s8709_s3 + $0x108] sm:$0xff] }
 0x115   : > { %v835_v29 = vld [vmem:[#allocation2 + $0x107] sm:$0xff] }
 0x116   : > { %802 = vst [vmem:[#allocation2 + $0x110] sm:$0xff] %v769_v0  ;;  %v6549_v1 = vpack.c.bf16 %v769_v0, %v768_v56 }
 0x118   : > { %1043 = vmatmul.bf16.gmra.mxu1 %v6549_v1 }
 0x119   : > { %v714_v4 = vpop.f32.mrf.mxu0 }
 0x11a   : > { %v715_v6 = vadd.f32 %v6420_v35, %v714_v4 }
 0x11c   : > { %v770_v8 = vmax.f32 %v715_v6, 0.0  ;;  %1589 = vmatmul.bf16.gmra.mxu0 %v855_v40  ;;  %v6053_v40 = vld [vmem:[%s8709_s3 + $0x120] sm:$0xff] }
 0x11d   : > { %v836_v24 = vld [vmem:[#allocation2 + $0x10f] sm:$0xff]  ;;  %1802 = vmatpush.bf16.msrb.mxu1 %v6053_v40 }
 0x11e   : > { %803 = vst [vmem:[#allocation2 + $0x128] sm:$0xff] %v770_v8  ;;  %v6576_v31 = vpack.c.bf16 %v836_v24, %v835_v29  ;;  %v1687_v24 = vld [vmem:[#allocation2 + $0x28] sm:$0xff] }
 0x11f   : > { %v1719_v29 = vpack.c.bf16 %v6440_v42, %v1687_v24 }
 0x120   : > { %1180 = vmatmul.bf16.gmra.mxu2 %v6576_v31 }
 0x121   : > { %v716_v10 = vpop.f32.mrf.mxu0  ;;  %1803 = vmatpush.bf16.msrb.mxu1 %v6052_v45 }
 0x122   : > { %v717_v11 = vadd.f32 %v6420_v35, %v716_v10 }
 0x124   : > { %v771_v14 = vmax.f32 %v717_v11, 0.0 }
 0x125   : > { %v6563_v15 = vpop.f32.mrf.mxu1  ;;  %1804 = vmatpush.bf16.msrb.mxu1 %v6051_v54 }
 0x126   : > { %804 = vst [vmem:[#allocation2 + $0x130] sm:$0xff] %v771_v14  ;;  %v6565_v18 = vpack.c.bf16 %v771_v14, %v770_v8 }
 0x128   : > { %1048 = vmatmul.bf16.gmra.mxu1 %v6565_v18 }
 0x129   : > { %v719_v19 = vpop.f32.mrf.mxu0  ;;  %1805 = vmatpush.bf16.msrb.mxu1 %v6050_v60 }
 0x12a   : > { %v720_v21 = vadd.f32 %v6420_v35, %v719_v19 }
 0x12c   : > { %v772_v23 = vmax.f32 %v720_v21, 0.0  ;;  %1594 = vmatmul.bf16.gmra.mxu0 %v856_v50  ;;  %v837_v50 = vld [vmem:[#allocation2 + $0x127] sm:$0xff] }
 0x12d   : > { %v6570_v16 = vpop.f32.mrf.mxu1  ;;  %v838_v47 = vld [vmem:[#allocation2 + $0x12f] sm:$0xff]  ;;  %1806 = vmatpush.bf16.msrb.mxu1 %v6049_v3 }
 0x12e   : > { %805 = vst [vmem:[#allocation2 + $0x148] sm:$0xff] %v772_v23  ;;  %v6616_v55 = vpack.c.bf16 %v838_v47, %v837_v50 }
 0x130   : > { %1185 = vmatmul.bf16.gmra.mxu2 %v6616_v55 }
 0x131   : > { %v721_v26 = vpop.f32.mrf.mxu0 }
 0x132   : > { %v722_v28 = vadd.f32 %v6420_v35, %v721_v26 }
 0x133   : > { %v1146_v0 = vpop.f32.mrf.mxu2 }
 0x134   : > { %v773_v32 = vmax.f32 %v722_v28, 0.0  ;;  %v6638_v4 = vadd.f32 %v1146_v0, %v6563_v15 }
 0x135   : > { %v6578_v33 = vpop.f32.mrf.mxu1  ;;  %v839_v15 = vld [vmem:[#allocation2 + $0x147] sm:$0xff] }
 0x136   : > { %806 = vst [vmem:[#allocation2 + $0x150] sm:$0xff] %v773_v32  ;;  %v6580_v22 = vpack.c.bf16 %v773_v32, %v772_v23 }
 0x138   : > { %1053 = vmatmul.bf16.gmra.mxu1 %v6580_v22 }
 0x139   : > { %v724_v38 = vpop.f32.mrf.mxu0 }
 0x13a   : > { %v725_v39 = vadd.f32 %v6420_v35, %v724_v38 }
 0x13b   : > { %v1148_v14 = vpop.f32.mrf.mxu2 }
 0x13c   : > { %v774_v41 = vmax.f32 %v725_v39, 0.0  ;;  %1599 = vmatmul.bf16.gmra.mxu0 %v857_v62  ;;  %v6651_v19 = vadd.f32 %v1148_v14, %v6570_v16  ;;  %v740_v16 = vadd.f32 %v6420_v35, %v739_v20  ;;  %v1922_v20 = vld [vmem:[#allocation2 + $0x49] sm:$0xff] }
 0x13d   : > { %v6599_v30 = vpop.f32.mrf.mxu1  ;;  %v840_v10 = vld [vmem:[#allocation2 + $0x14f] sm:$0xff] }
 0x13e   : > { %807 = vst [vmem:[#allocation2 + $0x168] sm:$0xff] %v774_v41  ;;  %v6653_v21 = vpack.c.bf16 %v840_v10, %v839_v15  ;;  %v780_v25 = vmax.f32 %v740_v16, 0.0  ;;  %v1920_v10 = vld [vmem:[#allocation2 + $0x29] sm:$0xff] }
 0x140   : > { %1190 = vmatmul.bf16.gmra.mxu2 %v6653_v21  ;;  %813 = vst [vmem:[#allocation2 + $0x1c8] sm:$0xff] %v780_v25 }
 0x141   : > { %v726_v48 = vpop.f32.mrf.mxu0 }
 0x142   : > { %v727_v49 = vadd.f32 %v6420_v35, %v726_v48 }
 0x143   : > { %v1151_v37 = vpop.f32.mrf.mxu2 }
 0x144   : > { %v775_v56 = vmax.f32 %v727_v49, 0.0  ;;  %v6665_v38 = vadd.f32 %v1151_v37, %v6578_v33  ;;  %v781_v49 = vmax.f32 %v742_v44, 0.0 }
 0x145   : > { %v6618_v57 = vpop.f32.mrf.mxu1  ;;  %v841_v48 = vld [vmem:[#allocation2 + $0x167] sm:$0xff] }
 0x146   : > { %808 = vst [vmem:[#allocation2 + $0x170] sm:$0xff] %v775_v56  ;;  %v6620_v58 = vpack.c.bf16 %v775_v56, %v774_v41  ;;  %v744_v56 = vpop.f32.mrf.mxu3  ;;  %v6692_v15 = vpack.c.bf16 %v781_v49, %v780_v25 }
 0x147   : > { %814 = vst [vmem:[#allocation2 + $0x1d0] sm:$0xff] %v781_v49  ;;  %v745_v60 = vadd.f32 %v6420_v35, %v744_v56 }
 0x148   : > { %1058 = vmatmul.bf16.gmra.mxu1 %v6620_v58 }
 0x149   : > { %v729_v61 = vpop.f32.mrf.mxu0 }
 0x14a   : > { %v730_v62 = vadd.f32 %v6420_v35, %v729_v61 }
 0x14b   : > { %v1153_v47 = vpop.f32.mrf.mxu2 }
 0x14c   : > { %v776_v6 = vmax.f32 %v730_v62, 0.0  ;;  %1604 = vmatmul.bf16.gmra.mxu0 %v6561_v13  ;;  %v6057_v13 = vld [vmem:[%s8709_s3 + $0x140] sm:$0xff]  ;;  %v6671_v50 = vadd.f32 %v1153_v47, %v6599_v30  ;;  %v782_v30 = vmax.f32 %v745_v60, 0.0  ;;  %v6040_v47 = vld [vmem:[%s8709_s3 + $0xb8] sm:$0xff]  ;;  %v6039_v60 = vld [vmem:[%s8709_s3 + $0xb0] sm:$0xff] }
 0x14d   : > { %v6641_v8 = vpop.f32.mrf.mxu1  ;;  %2039 = vmatpush.bf16.msrb.mxu2 %v6057_v13  ;;  %v842_v40 = vld [vmem:[#allocation2 + $0x16f] sm:$0xff] }
 0x14e   : > { %809 = vst [vmem:[#allocation2 + $0x188] sm:$0xff] %v776_v6  ;;  %v862_v33 = vpack.c.bf16 %v842_v40, %v841_v48  ;;  %v746_v2 = vpop.f32.mrf.mxu3  ;;  %v1924_v40 = vld [vmem:[#allocation2 + $0x69] sm:$0xff] }
 0x14f   : > { %815 = vst [vmem:[#allocation2 + $0x1e8] sm:$0xff] %v782_v30 }
 0x150   : > { %1195 = vmatmul.bf16.gmra.mxu2 %v862_v33 }
 0x151   : > { %v731_v11 = vpop.f32.mrf.mxu0 }
 0x152   : > { %v732_v12 = vadd.f32 %v6420_v35, %v731_v11  ;;  %v1921_v11 = vld [vmem:[#allocation2 + $0x31] sm:$0xff] }
 0x153   : > { %v1156_v61 = vpop.f32.mrf.mxu2 }
 0x154   : > { %v777_v23 = vmax.f32 %v732_v12, 0.0  ;;  %v6681_v62 = vadd.f32 %v1156_v61, %v6618_v57  ;;  %v6690_v57 = vpack.c.bf16 %v1921_v11, %v1920_v10 }
 0x155   : > { %v6655_v26 = vpop.f32.mrf.mxu1  ;;  %v1476_v48 = vld [vmem:[#allocation2 + $0x187] sm:$0xff] }
 0x156   : > { %810 = vst [vmem:[#allocation2 + $0x190] sm:$0xff] %v777_v23  ;;  %v6657_v28 = vpack.c.bf16 %v777_v23, %v776_v6  ;;  %v747_v6 = vadd.f32 %v6420_v35, %v746_v2  ;;  %v1926_v2 = vld [vmem:[#allocation2 + $0x89] sm:$0xff] }
 0x158   : > { %1063 = vmatmul.bf16.vlgmr.msrb.gmra.mxu3 %v6657_v28  ;;  %1807 = vmatmul.bf16.vlgmr.msrb.gmra.mxu1 %v1719_v29 }
 0x159   : > { %v734_v32 = vpop.f32.mrf.mxu0  ;;  %1333 = vmatpush.bf16.msrb.mxu3 %v6040_v47  ;;  %v1481_v47 = vld [vmem:[#allocation2 + $0x1cf] sm:$0xff] }
 0x15a   : > { %v735_v36 = vadd.f32 %v6420_v35, %v734_v32  ;;  %v1923_v32 = vld [vmem:[#allocation2 + $0x51] sm:$0xff] }
 0x15b   : > { %v1158_v9 = vpop.f32.mrf.mxu2  ;;  %v6707_v37 = vpack.c.bf16 %v1923_v32, %v1922_v20  ;;  %v6037_v32 = vld [vmem:[%s8709_s3 + $0xa0] sm:$0xff] }
 0x15c   : > { %v778_v39 = vmax.f32 %v735_v36, 0.0  ;;  %1609 = vmatmul.bf16.gmra.mxu0 %v6576_v31  ;;  %v6688_v12 = vadd.f32 %v1158_v9, %v6641_v8 }
 0x15d   : > { %v1026_v42 = vpop.f32.mrf.mxu1  ;;  %v1477_v44 = vld [vmem:[#allocation2 + $0x18f] sm:$0xff]  ;;  %1334 = vmatpush.bf16.msrb.mxu3 %v6039_v60 }
 0x15e   : > { %811 = vst [vmem:[#allocation2 + $0x1a8] sm:$0xff] %v778_v39 }
 0x160   : > { %2040 = vmatmul.bf16.vlgmr.msrb.gmra.mxu2 %v6690_v57 }
 0x161   : > { %v736_v41 = vpop.f32.mrf.mxu0 }
 0x162   : > { %v737_v45 = vadd.f32 %v6420_v35, %v736_v41  ;;  %v1925_v41 = vld [vmem:[#allocation2 + $0x71] sm:$0xff] }
 0x163   : > { %v1161_v13 = vpop.f32.mrf.mxu2 }
 0x164   : > { %v779_v52 = vmax.f32 %v737_v45, 0.0  ;;  %v6700_v23 = vadd.f32 %v1161_v13, %v6655_v26 }
 0x165   : > { %v1029_v31 = vpop.f32.mrf.mxu1  ;;  %v1478_v11 = vld [vmem:[#allocation2 + $0x1a7] sm:$0xff] }
 0x166   : > { %812 = vst [vmem:[#allocation2 + $0x1b0] sm:$0xff] %v779_v52  ;;  %v6673_v54 = vpack.c.bf16 %v779_v52, %v778_v39  ;;  %v1497_v52 = vpack.c.bf16 %v1477_v44, %v1476_v48  ;;  %v1480_v44 = vld [vmem:[#allocation2 + $0x1c7] sm:$0xff] }
 0x167   : > { %v1499_v60 = vpack.c.bf16 %v1481_v47, %v1480_v44  ;;  %v6034_v47 = vld [vmem:[%s8709_s3 + $0x88] sm:$0xff] }
 0x168   : > { %1068 = vmatmul.bf16.gmra.mxu3 %v6673_v54  ;;  %1812 = vmatmul.bf16.gmra.mxu1 %v6465_v51  ;;  %v783_v51 = vmax.f32 %v747_v6, 0.0  ;;  %v1927_v6 = vld [vmem:[#allocation2 + $0x91] sm:$0xff] }
 0x169   : > { %v6676_v59 = vpop.f32.mrf.mxu0 }
 0x16a   : > { %816 = vst [vmem:[#allocation2 + $0x1f0] sm:$0xff] %v783_v51  ;;  %v6709_v25 = vpack.c.bf16 %v783_v51, %v782_v30 }
 0x16b   : > { %v1163_v29 = vpop.f32.mrf.mxu2 }
 0x16c   : > { %1614 = vmatmul.bf16.gmra.mxu0 %v6616_v55  ;;  %v6705_v16 = vadd.f32 %v1163_v29, %v1026_v42 }
 0x16d   : > { %v1031_v0 = vpop.f32.mrf.mxu1  ;;  %v1479_v9 = vld [vmem:[#allocation2 + $0x1af] sm:$0xff] }
 0x16e   : > { %v1498_v13 = vpack.c.bf16 %v1479_v9, %v1478_v11 }
 0x170   : > { %2045 = vmatmul.bf16.gmra.mxu2 %v6707_v37 }
 0x171   : > { %v6684_v3 = vpop.f32.mrf.mxu0 }
 0x175   : > { %v1034_v14 = vpop.f32.mrf.mxu1 }
 0x178   : > { %1073 = vmatmul.bf16.gmra.mxu3 %v6692_v15  ;;  %1817 = vmatmul.bf16.gmra.mxu1 %v6485_v63 }
 0x179   : > { %v6696_v55 = vpop.f32.mrf.mxu0 }
 0x17a   : > { %8717 = vst [vmem:[#allocation4_spill] sm:$0xff] %v6696_v55 }
 0x17c   : > { %1619 = vmatmul.bf16.gmra.mxu0 %v6653_v21  ;;  %v1166_v21 = vpop.f32.mrf.mxu2 }
 0x17d   : > { %v1036_v8 = vpop.f32.mrf.mxu1  ;;  %v6716_v26 = vadd.f32 %v1166_v21, %v1029_v31 }
 0x181   : > { %v6703_v24 = vpop.f32.mrf.mxu0 }
 0x182   : > { %8718 = vst [vmem:[#allocation5_spill] sm:$0xff] %v6703_v24  ;;  %v2394_v24 = vld [vmem:[#allocation2 + $0xb0] sm:$0xff] }
 0x184   : > { %v1168_v27 = vpop.f32.mrf.mxu2 }
 0x185   : > { %v1039_v36 = vpop.f32.mrf.mxu1  ;;  %v6720_v45 = vadd.f32 %v1168_v27, %v1031_v0  ;;  %v1928_v27 = vld [vmem:[#allocation2 + $0xa9] sm:$0xff] }
 0x188   : > { %1078 = vmatmul.bf16.gmra.mxu3 %v6709_v25  ;;  %1822 = vmatmul.bf16.gmra.mxu1 %v6510_v17  ;;  %v6725_v17 = vpack.c.bf16 %v1925_v41, %v1924_v40  ;;  %v1929_v41 = vld [vmem:[#allocation2 + $0xb1] sm:$0xff] }
 0x189   : > { %v6713_v63 = vpop.f32.mrf.mxu0 }
 0x18a   : > { %8719 = vst [vmem:[#allocation6_spill] sm:$0xff] %v6713_v63  ;;  %2050 = vmatmul.bf16.gmra.mxu2 %v6725_v17 }
 0x18c   : > { %1624 = vmatmul.bf16.gmra.mxu0 %v862_v33  ;;  %v1171_v31 = vpop.f32.mrf.mxu2 }
 0x18d   : > { %v1041_v39 = vpop.f32.mrf.mxu1  ;;  %v6731_v56 = vadd.f32 %v1171_v31, %v1034_v14  ;;  %v6745_v14 = vpack.c.bf16 %v1927_v6, %v1926_v2  ;;  %v6767_v31 = vpack.c.bf16 %v1929_v41, %v1928_v27  ;;  %v749_v2 = vpop.f32.mrf.mxu3  ;;  %v6035_v6 = vld [vmem:[%s8709_s3 + $0x90] sm:$0xff] }
 0x18e   : > { %v750_v9 = vadd.f32 %v6420_v35, %v749_v2  ;;  %v1483_v27 = vld [vmem:[#allocation2 + $0x1ef] sm:$0xff] }
 0x191   : > { %v6718_v42 = vpop.f32.mrf.mxu0 }
 0x192   : > { %8720 = vst [vmem:[#allocation7_spill] sm:$0xff] %v6718_v42  ;;  %v1939_v42 = vld [vmem:[#allocation2 + $0x151] sm:$0xff] }
 0x194   : > { %v1173_v0 = vpop.f32.mrf.mxu2 }
 0x195   : > { %v1044_v49 = vpop.f32.mrf.mxu1  ;;  %v6738_v10 = vadd.f32 %v1173_v0, %v1036_v8  ;;  %v751_v44 = vpop.f32.mrf.mxu3 }
 0x198   : > { %1200 = vmatmul.bf16.vlgmr.msra.gmra.mxu3 %v1497_v52  ;;  %1827 = vmatmul.bf16.gmra.mxu1 %v6532_v34  ;;  %v6038_v34 = vld [vmem:[%s8709_s3 + $0xa8] sm:$0xff] }
 0x199   : > { %v6728_v33 = vpop.f32.mrf.mxu0  ;;  %1335 = vmatpush.bf16.msrb.mxu3 %v6038_v34 }
 0x19a   : > { %8721 = vst [vmem:[#allocation8_spill] sm:$0xff] %v6728_v33  ;;  %2055 = vmatmul.bf16.gmra.mxu2 %v6745_v14 }
 0x19c   : > { %1629 = vmatmul.bf16.gmra.mxu0 %v1497_v52  ;;  %v1176_v8 = vpop.f32.mrf.mxu2 }
 0x19d   : > { %v1046_v61 = vpop.f32.mrf.mxu1  ;;  %v6751_v20 = vadd.f32 %v1176_v8, %v1039_v36  ;;  %1336 = vmatpush.bf16.msrb.mxu3 %v6037_v32  ;;  %v6036_v36 = vld [vmem:[%s8709_s3 + $0x98] sm:$0xff]  ;;  %v1930_v8 = vld [vmem:[#allocation2 + $0xc9] sm:$0xff] }
 0x1a1   : > { %v6736_v30 = vpop.f32.mrf.mxu0  ;;  %1337 = vmatpush.bf16.msrb.mxu3 %v6036_v36  ;;  %v752_v36 = vadd.f32 %v6420_v35, %v751_v44 }
 0x1a2   : > { %8722 = vst [vmem:[#allocation9_spill] sm:$0xff] %v6736_v30  ;;  %v1937_v30 = vld [vmem:[#allocation2 + $0x131] sm:$0xff] }
 0x1a4   : > { %v1178_v40 = vpop.f32.mrf.mxu2 }
 0x1a5   : > { %v6743_v51 = vpop.f32.mrf.mxu1  ;;  %v6758_v48 = vadd.f32 %v1178_v40, %v1041_v39  ;;  %1338 = vmatpush.bf16.msrb.mxu3 %v6035_v6  ;;  %v6080_v40 = vld [vmem:[%s8709_s3 + $0x1f8] sm:$0xff]  ;;  %v6794_v6 = vmax.f32 %v752_v36, 0.0  ;;  %v1932_v36 = vld [vmem:[#allocation2 + $0xe9] sm:$0xff] }
 0x1a6   : > { %2499 = vmatpush.bf16.msra.mxu0 %v6080_v40  ;;  %v1222_v40 = vld [vmem:[#allocation2 + $0x11] sm:$0xff] }
 0x1a7   : > { %818 = vst [vmem:[#allocation2 + $0x210] sm:$0xff] %v6794_v6 }
 0x1a8   : > { %1205 = vmatmul.bf16.gmra.mxu3 %v1498_v13  ;;  %1832 = vmatmul.bf16.gmra.mxu1 %v6539_v43 }
 0x1a9   : > { %v6749_v29 = vpop.f32.mrf.mxu0  ;;  %1339 = vmatpush.bf16.msrb.mxu3 %v6034_v47 }
 0x1aa   : > { %8723 = vst [vmem:[#allocation10_spill] sm:$0xff] %v6749_v29  ;;  %2060 = vmatmul.bf16.gmra.mxu2 %v6767_v31 }
 0x1ac   : > { %1634 = vmatmul.bf16.gmra.mxu0 %v1498_v13  ;;  %v1181_v0 = vpop.f32.mrf.mxu2  ;;  %v784_v13 = vmax.f32 %v750_v9, 0.0 }
 0x1ad   : > { %v6756_v21 = vpop.f32.mrf.mxu1  ;;  %v6771_v39 = vadd.f32 %v1181_v0, %v1044_v49  ;;  %v1482_v49 = vld [vmem:[#allocation2 + $0x1e7] sm:$0xff] }
 0x1ae   : > { %817 = vst [vmem:[#allocation2 + $0x208] sm:$0xff] %v784_v13  ;;  %v1500_v2 = vpack.c.bf16 %v1483_v27, %v1482_v49  ;;  %v6805_v35 = vpack.c.bf16 %v6794_v6, %v784_v13  ;;  %v1221_v13 = vld [vmem:[#allocation2 + $0x9] sm:$0xff] }
 0x1b1   : > { %v6760_v43 = vpop.f32.mrf.mxu0 }
 0x1b2   : > { %8724 = vst [vmem:[#allocation11_spill] sm:$0xff] %v6760_v43 }
 0x1b4   : > { %v1183_v32 = vpop.f32.mrf.mxu2 }
 0x1b5   : > { %v6765_v52 = vpop.f32.mrf.mxu1  ;;  %v6784_v41 = vadd.f32 %v1183_v32, %v1046_v61  ;;  %v6079_v61 = vld [vmem:[%s8709_s3 + $0x1f0] sm:$0xff]  ;;  %v6033_v32 = vld [vmem:[%s8709_s3 + $0x80] sm:$0xff] }
 0x1b6   : > { %2500 = vmatpush.bf16.msra.mxu0 %v6079_v61  ;;  %1340 = vmatpush.bf16.msrb.mxu3 %v6033_v32  ;;  %v1933_v61 = vld [vmem:[#allocation2 + $0xf1] sm:$0xff] }
 0x1b8   : > { %1210 = vmatmul.bf16.gmra.mxu3 %v1499_v60  ;;  %1837 = vmatmul.bf16.gmra.mxu1 %v6544_v53  ;;  %v1931_v53 = vld [vmem:[#allocation2 + $0xd1] sm:$0xff] }
 0x1b9   : > { %v6779_v11 = vpop.f32.mrf.mxu0  ;;  %v6792_v0 = vpack.c.bf16 %v1931_v53, %v1930_v8  ;;  %v6078_v53 = vld [vmem:[%s8709_s3 + $0x1e8] sm:$0xff] }
 0x1ba   : > { %8725 = vst [vmem:[#allocation12_spill] sm:$0xff] %v6779_v11  ;;  %2501 = vmatpush.bf16.msra.mxu0 %v6078_v53  ;;  %v6829_v53 = vpack.c.bf16 %v1933_v61, %v1932_v36  ;;  %v6074_v36 = vld [vmem:[%s8709_s3 + $0x1c8] sm:$0xff]  ;;  %v6088_v61 = vld [vmem:[%s8709_s3 + $0x238] sm:$0xff] }
 0x1bb   : > { %2065 = vmatmul.bf16.gmra.mxu2 %v6792_v0  ;;  %2732 = vmatpush.bf16.msra.mxu1 %v6088_v61  ;;  %v2387_v61 = vld [vmem:[#allocation2 + $0x48] sm:$0xff] }
 0x1bc   : > { %1639 = vmatmul.bf16.gmra.mxu0 %v1499_v60  ;;  %v1186_v8 = vpop.f32.mrf.mxu2 }
 0x1bd   : > { %v6777_v34 = vpop.f32.mrf.mxu1  ;;  %v6814_v49 = vadd.f32 %v1186_v8, %v6743_v51  ;;  %v6076_v51 = vld [vmem:[%s8709_s3 + $0x1d8] sm:$0xff]  ;;  %v1253_v8 = vpack.c.bf16 %v1222_v40, %v1221_v13 }
 0x1c1   : > { %v6800_v9 = vpop.f32.mrf.mxu0 }
 0x1c2   : > { %8726 = vst [vmem:[#allocation13_spill] sm:$0xff] %v6800_v9  ;;  %v1485_v9 = vld [vmem:[#allocation2 + $0x20f] sm:$0xff] }
 0x1c4   : > { %v1188_v47 = vpop.f32.mrf.mxu2 }
 0x1c5   : > { %v6790_v60 = vpop.f32.mrf.mxu1 }
 0x1c8   : > { %1215 = vmatmul.bf16.gmra.mxu3 %v1500_v2  ;;  %1842 = vmatmul.bf16.gmra.mxu1 %v6549_v1  ;;  %v6077_v1 = vld [vmem:[%s8709_s3 + $0x1e0] sm:$0xff] }
 0x1c9   : > { %2502 = vmatpush.bf16.msra.mxu0 %v6077_v1  ;;  %v6821_v44 = vpop.f32.mrf.mxu0  ;;  %v1484_v1 = vld [vmem:[#allocation2 + $0x207] sm:$0xff] }
 0x1ca   : > { %8727 = vst [vmem:[#allocation14_spill] sm:$0xff] %v6821_v44  ;;  %v6075_v44 = vld [vmem:[%s8709_s3 + $0x1d0] sm:$0xff]  ;;  %v1501_v13 = vpack.c.bf16 %v1485_v9, %v1484_v1 }
 0x1cb   : > { %2070 = vmatmul.bf16.gmra.mxu2 %v6829_v53  ;;  %v1934_v1 = vld [vmem:[#allocation2 + $0x109] sm:$0xff] }
 0x1cc   : > { %1644 = vmatmul.bf16.gmra.mxu0 %v1500_v2  ;;  %v6827_v2 = vadd.f32 %v1188_v47, %v6756_v21  ;;  %v6072_v21 = vld [vmem:[%s8709_s3 + $0x1b8] sm:$0xff]  ;;  %v1191_v40 = vpop.f32.mrf.mxu2 }
 0x1cd   : > { %v6816_v27 = vpop.f32.mrf.mxu1  ;;  %2503 = vmatpush.bf16.msra.mxu0 %v6076_v51  ;;  %2266 = vmatpush.bf16.msra.mxu3 %v6072_v21  ;;  %v6850_v51 = vadd.f32 %v1191_v40, %v6765_v52  ;;  %v1935_v21 = vld [vmem:[#allocation2 + $0x111] sm:$0xff] }
 0x1ce   : > { %v6864_v40 = vpack.c.bf16 %v1935_v21, %v1934_v1 }
 0x1d1   : > { %2504 = vmatpush.bf16.msra.mxu0 %v6075_v44 }
 0x1d4   : > { %v1193_v44 = vpop.f32.mrf.mxu2 }
 0x1d5   : > { %v6831_v32 = vpop.f32.mrf.mxu1  ;;  %2505 = vmatpush.bf16.msra.mxu0 %v6074_v36  ;;  %v6862_v52 = vadd.f32 %v1193_v44, %v6777_v34 }
 0x1d8   : > { %1341 = vmatmul.bf16.vlgmr.msrb.gmra.mxu3 %v1253_v8  ;;  %1847 = vmatmul.bf16.gmra.mxu1 %v6565_v18  ;;  %v6852_v8 = vpop.f32.mrf.mxu0  ;;  %v6073_v18 = vld [vmem:[%s8709_s3 + $0x1c0] sm:$0xff] }
 0x1d9   : > { %8728 = vst [vmem:[#allocation15_spill] sm:$0xff] %v6852_v8  ;;  %2506 = vmatpush.bf16.msra.mxu0 %v6073_v18  ;;  %v2388_v8 = vld [vmem:[#allocation2 + $0x50] sm:$0xff] }
 0x1da   : > { %v2419_v18 = vpack.c.bf16 %v2388_v8, %v2387_v61  ;;  %v2390_v61 = vld [vmem:[#allocation2 + $0x70] sm:$0xff] }
 0x1db   : > { %v6841_v47 = vpop.f32.mrf.mxu3  ;;  %2075 = vmatmul.bf16.gmra.mxu2 %v6864_v40 }
 0x1dc   : > { %1649 = vmatmul.bf16.gmra.mxu0 %v1501_v13  ;;  %v1196_v43 = vpop.f32.mrf.mxu2 }
 0x1dd   : > { %v6857_v9 = vpop.f32.mrf.mxu1  ;;  %v6876_v34 = vadd.f32 %v1196_v43, %v6790_v60  ;;  %v6071_v43 = vld [vmem:[%s8709_s3 + $0x1b0] sm:$0xff]  ;;  %v2389_v60 = vld [vmem:[#allocation2 + $0x68] sm:$0xff] }
 0x1de   : > { %8729 = vst [vmem:[#allocation16_spill] sm:$0xff] %v6857_v9  ;;  %2267 = vmatpush.bf16.msra.mxu3 %v6071_v43  ;;  %v2392_v43 = vld [vmem:[#allocation2 + $0x90] sm:$0xff] }
 0x1e0   : > { %v6866_v13 = vpop.f32.mrf.mxu0 }
 0x1e1   : > { %8730 = vst [vmem:[#allocation17_spill] sm:$0xff] %v6866_v13  ;;  %v1936_v13 = vld [vmem:[#allocation2 + $0x129] sm:$0xff] }
 0x1e3   : > { %v6859_v11 = vpop.f32.mrf.mxu3 }
 0x1e4   : > { %v1198_v21 = vpop.f32.mrf.mxu2 }
 0x1e5   : > { %v6868_v36 = vpop.f32.mrf.mxu1 }
 0x1e6   : > { %8731 = vst [vmem:[#allocation18_spill] sm:$0xff] %v6868_v36  ;;  %v1942_v36 = vld [vmem:[#allocation2 + $0x189] sm:$0xff] }
 0x1e8   : > { %1346 = vmatmul.bf16.gmra.mxu3 %v6690_v57  ;;  %1852 = vmatmul.bf16.gmra.mxu1 %v6580_v22  ;;  %v6880_v1 = vpop.f32.mrf.mxu0  ;;  %v6885_v57 = vadd.f32 %v1198_v21, %v6816_v27  ;;  %v6887_v22 = vpack.c.bf16 %v1937_v30, %v1936_v13  ;;  %v2420_v27 = vpack.c.bf16 %v2390_v61, %v2389_v60  ;;  %v6087_v13 = vld [vmem:[%s8709_s3 + $0x230] sm:$0xff]  ;;  %v2391_v60 = vld [vmem:[#allocation2 + $0x88] sm:$0xff] }
 0x1e9   : > { %8733 = vst [vmem:[#allocation20_spill] sm:$0xff] %v6880_v1  ;;  %2733 = vmatpush.bf16.msra.mxu1 %v6087_v13  ;;  %v1938_v1 = vld [vmem:[#allocation2 + $0x149] sm:$0xff] }
 0x1eb   : > { %v6873_v29 = vpop.f32.mrf.mxu3  ;;  %2080 = vmatmul.bf16.gmra.mxu2 %v6887_v22 }
 0x1ec   : > { %2507 = vmatmul.bf16.vlgmr.msra.gmra.mxu0 %v2419_v18 }
 0x1ed   : > { %v6878_v44 = vpop.f32.mrf.mxu1 }
 0x1ee   : > { %8732 = vst [vmem:[#allocation19_spill] sm:$0xff] %v6878_v44 }
 0x1f0   : > { %v6897_v18 = vpop.f32.mrf.mxu0 }
 0x1f1   : > { %8735 = vst [vmem:[#allocation22_spill] sm:$0xff] %v6897_v18 }
 0x1f3   : > { %v6882_v33 = vpop.f32.mrf.mxu3 }
 0x1f5   : > { %v6889_v8 = vpop.f32.mrf.mxu1 }
 0x1f6   : > { %8734 = vst [vmem:[#allocation21_spill] sm:$0xff] %v6889_v8 }
 0x1f8   : > { %1351 = vmatmul.bf16.gmra.mxu3 %v6707_v37  ;;  %1857 = vmatmul.bf16.gmra.mxu1 %v6620_v58  ;;  %v6908_v63 = vpop.f32.mrf.mxu0  ;;  %v6910_v58 = vpack.c.bf16 %v1939_v42, %v1938_v1  ;;  %v1940_v42 = vld [vmem:[#allocation2 + $0x169] sm:$0xff]  ;;  %v1941_v1 = vld [vmem:[#allocation2 + $0x171] sm:$0xff] }
 0x1f9   : > { %8737 = vst [vmem:[#allocation24_spill] sm:$0xff] %v6908_v63 }
 0x1fb   : > { %v6899_v30 = vpop.f32.mrf.mxu3  ;;  %2085 = vmatmul.bf16.gmra.mxu2 %v6910_v58 }
 0x1fc   : > { %2512 = vmatmul.bf16.gmra.mxu0 %v2420_v27  ;;  %v2421_v27 = vpack.c.bf16 %v2392_v43, %v2391_v60  ;;  %v6070_v43 = vld [vmem:[%s8709_s3 + $0x1a8] sm:$0xff] }
 0x1fd   : > { %v6904_v21 = vpop.f32.mrf.mxu1  ;;  %v2393_v60 = vld [vmem:[#allocation2 + $0xa8] sm:$0xff]  ;;  %2268 = vmatpush.bf16.msra.mxu3 %v6070_v43 }
 0x1fe   : > { %8736 = vst [vmem:[#allocation23_spill] sm:$0xff] %v6904_v21 }
 0x200   : > { %v6919_v18 = vpop.f32.mrf.mxu0 }
 0x201   : > { %8739 = vst [vmem:[#allocation26_spill] sm:$0xff] %v6919_v18 }
 0x203   : > { %v6906_v8 = vpop.f32.mrf.mxu3 }
 0x205   : > { %v6912_v61 = vpop.f32.mrf.mxu1 }
 0x206   : > { %8738 = vst [vmem:[#allocation25_spill] sm:$0xff] %v6912_v61  ;;  %v6925_v61 = vpack.c.bf16 %v1941_v1, %v1940_v42  ;;  %v6086_v1 = vld [vmem:[%s8709_s3 + $0x228] sm:$0xff] }
 0x207   : > { %2734 = vmatpush.bf16.msra.mxu1 %v6086_v1 }
 0x208   : > { %1356 = vmatmul.bf16.gmra.mxu3 %v6725_v17  ;;  %1862 = vmatmul.bf16.gmra.mxu1 %v6657_v28  ;;  %v6930_v28 = vpop.f32.mrf.mxu0 }
 0x209   : > { %8742 = vst [vmem:[#allocation29_spill] sm:$0xff] %v6930_v28 }
 0x20b   : > { %v6917_v13 = vpop.f32.mrf.mxu3  ;;  %2090 = vmatmul.bf16.gmra.mxu2 %v6925_v61 }
 0x20c   : > { %2517 = vmatmul.bf16.gmra.mxu0 %v2421_v27  ;;  %v2422_v27 = vpack.c.bf16 %v2394_v24, %v2393_v60 }
 0x20d   : > { %v6921_v21 = vpop.f32.mrf.mxu1 }
 0x20e   : > { %8740 = vst [vmem:[#allocation27_spill] sm:$0xff] %v6921_v21 }
 0x210   : > { %v6947_v21 = vpop.f32.mrf.mxu0 }
 0x211   : > { %8745 = vst [vmem:[#allocation32_spill] sm:$0xff] %v6947_v21 }
 0x213   : > { %v6923_v63 = vpop.f32.mrf.mxu3 }
 0x215   : > { %v6927_v44 = vpop.f32.mrf.mxu1 }
 0x216   : > { %8741 = vst [vmem:[#allocation28_spill] sm:$0xff] %v6927_v44  ;;  %v6945_v44 = vpop.f32.mrf.mxu2 }
 0x217   : > { %8744 = vst [vmem:[#allocation31_spill] sm:$0xff] %v6945_v44 }
 0x218   : > { %1361 = vmatmul.bf16.gmra.mxu3 %v6745_v14  ;;  %1867 = vmatmul.bf16.gmra.mxu1 %v6673_v54  ;;  %v1943_v54 = vld [vmem:[#allocation2 + $0x191] sm:$0xff] }
 0x219   : > { %v6952_v60 = vpack.c.bf16 %v1943_v54, %v1942_v36  ;;  %v1944_v54 = vld [vmem:[#allocation2 + $0x1a9] sm:$0xff] }
 0x21b   : > { %v1201_v42 = vpop.f32.mrf.mxu3  ;;  %2095 = vmatmul.bf16.gmra.mxu2 %v6952_v60 }
 0x21c   : > { %2522 = vmatmul.bf16.gmra.mxu0 %v2422_v27  ;;  %v6941_v18 = vadd.f32 %v1201_v42, %v6841_v47  ;;  %v2396_v27 = vld [vmem:[#allocation2 + $0xd0] sm:$0xff]  ;;  %v2395_v47 = vld [vmem:[#allocation2 + $0xc8] sm:$0xff] }
 0x21d   : > { %v6943_v28 = vpop.f32.mrf.mxu1  ;;  %v2423_v42 = vpack.c.bf16 %v2396_v27, %v2395_v47 }
 0x21e   : > { %8743 = vst [vmem:[#allocation30_spill] sm:$0xff] %v6943_v28  ;;  %v6959_v1 = vpop.f32.mrf.mxu2  ;;  %v6961_v28 = vpop.f32.mrf.mxu0 }
 0x21f   : > { %8747 = vst [vmem:[#allocation34_spill] sm:$0xff] %v6961_v28 }
 0x223   : > { %v1203_v24 = vpop.f32.mrf.mxu3 }
 0x224   : > { %v6950_v43 = vadd.f32 %v1203_v24, %v6859_v11  ;;  %v1945_v24 = vld [vmem:[#allocation2 + $0x1b1] sm:$0xff] }
 0x225   : > { %v6954_v55 = vpop.f32.mrf.mxu1  ;;  %v6975_v27 = vpack.c.bf16 %v1945_v24, %v1944_v54  ;;  %v6085_v54 = vld [vmem:[%s8709_s3 + $0x220] sm:$0xff] }
 0x226   : > { %8746 = vst [vmem:[#allocation33_spill] sm:$0xff] %v6954_v55  ;;  %v6971_v44 = vpop.f32.mrf.mxu2  ;;  %2735 = vmatpush.bf16.msra.mxu1 %v6085_v54 }
 0x227   : > { %8749 = vst [vmem:[#allocation36_spill] sm:$0xff] %v6971_v44 }
 0x228   : > { %1366 = vmatmul.bf16.gmra.mxu3 %v6767_v31  ;;  %1872 = vmatmul.bf16.gmra.mxu1 %v6692_v15  ;;  %v6973_v15 = vpop.f32.mrf.mxu0 }
 0x229   : > { %8750 = vst [vmem:[#allocation37_spill] sm:$0xff] %v6973_v15 }
 0x22b   : > { %v1206_v21 = vpop.f32.mrf.mxu3  ;;  %2100 = vmatmul.bf16.gmra.mxu2 %v6975_v27 }
 0x22c   : > { %2527 = vmatmul.bf16.gmra.mxu0 %v2423_v42  ;;  %v6964_v11 = vadd.f32 %v1206_v21, %v6873_v29  ;;  %v2398_v42 = vld [vmem:[#allocation2 + $0xf0] sm:$0xff]  ;;  %v6069_v29 = vld [vmem:[%s8709_s3 + $0x1a0] sm:$0xff]  ;;  %v2397_v21 = vld [vmem:[#allocation2 + $0xe8] sm:$0xff] }
 0x22d   : > { %v6966_v36 = vpop.f32.mrf.mxu1  ;;  %2269 = vmatpush.bf16.msra.mxu3 %v6069_v29  ;;  %v1946_v29 = vld [vmem:[#allocation2 + $0x1c9] sm:$0xff] }
 0x22e   : > { %8748 = vst [vmem:[#allocation35_spill] sm:$0xff] %v6966_v36  ;;  %v6993_v28 = vpop.f32.mrf.mxu2  ;;  %v2399_v36 = vld [vmem:[#allocation2 + $0x108] sm:$0xff] }
 0x22f   : > { %8753 = vst [vmem:[#allocation40_spill] sm:$0xff] %v6993_v28  ;;  %v1948_v28 = vld [vmem:[#allocation2 + $0x1e9] sm:$0xff] }
 0x233   : > { %v1208_v55 = vpop.f32.mrf.mxu3 }
 0x234   : > { %v6969_v9 = vadd.f32 %v1208_v55, %v6882_v33  ;;  %v2424_v55 = vpack.c.bf16 %v2398_v42, %v2397_v21  ;;  %v6998_v42 = vpop.f32.mrf.mxu0  ;;  %v1947_v21 = vld [vmem:[#allocation2 + $0x1d1] sm:$0xff] }
 0x235   : > { %v6977_v47 = vpop.f32.mrf.mxu1  ;;  %8754 = vst [vmem:[#allocation41_spill] sm:$0xff] %v6998_v42 }
 0x236   : > { %8751 = vst [vmem:[#allocation38_spill] sm:$0xff] %v6977_v47  ;;  %v7015_v42 = vpop.f32.mrf.mxu2 }
 0x237   : > { %8756 = vst [vmem:[#allocation43_spill] sm:$0xff] %v7015_v42 }
 0x238   : > { %1371 = vmatmul.bf16.gmra.mxu3 %v6792_v0  ;;  %1877 = vmatmul.bf16.gmra.mxu1 %v6709_v25  ;;  %v6084_v25 = vld [vmem:[%s8709_s3 + $0x218] sm:$0xff] }
 0x239   : > { %2736 = vmatpush.bf16.msra.mxu1 %v6084_v25  ;;  %v6082_v25 = vld [vmem:[%s8709_s3 + $0x208] sm:$0xff] }
 0x23b   : > { %v1211_v33 = vpop.f32.mrf.mxu3 }
 0x23c   : > { %2532 = vmatmul.bf16.gmra.mxu0 %v2424_v55  ;;  %v6989_v24 = vadd.f32 %v1211_v33, %v6899_v30  ;;  %v6083_v30 = vld [vmem:[%s8709_s3 + $0x210] sm:$0xff]  ;;  %v7006_v33 = vpack.c.bf16 %v1947_v21, %v1946_v29  ;;  %v6081_v21 = vld [vmem:[%s8709_s3 + $0x200] sm:$0xff] }
 0x23d   : > { %v6991_v15 = vpop.f32.mrf.mxu1  ;;  %2737 = vmatpush.bf16.msra.mxu1 %v6083_v30 }
 0x23e   : > { %8752 = vst [vmem:[#allocation39_spill] sm:$0xff] %v6991_v15  ;;  %v2400_v15 = vld [vmem:[#allocation2 + $0x110] sm:$0xff]  ;;  %2105 = vmatmul.bf16.gmra.mxu2 %v7006_v33  ;;  %v7028_v42 = vpop.f32.mrf.mxu2 }
 0x23f   : > { %8759 = vst [vmem:[#allocation46_spill] sm:$0xff] %v7028_v42 }
 0x241   : > { %2738 = vmatpush.bf16.msra.mxu1 %v6082_v25 }
 0x243   : > { %v1213_v47 = vpop.f32.mrf.mxu3 }
 0x244   : > { %v7004_v55 = vadd.f32 %v1213_v47, %v6906_v8  ;;  %v7018_v8 = vpop.f32.mrf.mxu0  ;;  %v2425_v47 = vpack.c.bf16 %v2400_v15, %v2399_v36  ;;  %v6068_v36 = vld [vmem:[%s8709_s3 + $0x198] sm:$0xff] }
 0x245   : > { %v7008_v54 = vpop.f32.mrf.mxu1  ;;  %8757 = vst [vmem:[#allocation44_spill] sm:$0xff] %v7018_v8  ;;  %2739 = vmatpush.bf16.msra.mxu1 %v6081_v21  ;;  %2270 = vmatpush.bf16.msra.mxu3 %v6068_v36  ;;  %v2401_v21 = vld [vmem:[#allocation2 + $0x128] sm:$0xff] }
 0x246   : > { %8755 = vst [vmem:[#allocation42_spill] sm:$0xff] %v7008_v54  ;;  %v1950_v36 = vld [vmem:[#allocation2 + $0x209] sm:$0xff] }
 0x248   : > { %1376 = vmatmul.bf16.gmra.mxu3 %v6829_v53  ;;  %1882 = vmatmul.bf16.gmra.mxu1 %v6805_v35  ;;  %v1949_v35 = vld [vmem:[#allocation2 + $0x1f1] sm:$0xff] }
 0x24b   : > { %v1216_v29 = vpop.f32.mrf.mxu3 }
 0x24c   : > { %2537 = vmatmul.bf16.gmra.mxu0 %v2425_v47  ;;  %v7024_v30 = vadd.f32 %v1216_v29, %v6917_v13  ;;  %v7033_v15 = vpop.f32.mrf.mxu0  ;;  %v7038_v13 = vpack.c.bf16 %v1949_v35, %v1948_v28  ;;  %v2402_v29 = vld [vmem:[#allocation2 + $0x130] sm:$0xff]  ;;  %v1144_v35 = vadd.f32 %v6607_v46, %v6558_v7  ;;  %v2403_v7 = vld [vmem:[#allocation2 + $0x148] sm:$0xff] }
 0x24d   : > { %v7026_v54 = vpop.f32.mrf.mxu1  ;;  %8760 = vst [vmem:[#allocation47_spill] sm:$0xff] %v7033_v15  ;;  %v2426_v8 = vpack.c.bf16 %v2402_v29, %v2401_v21  ;;  %v2404_v29 = vld [vmem:[#allocation2 + $0x150] sm:$0xff] }
 0x24e   : > { %8758 = vst [vmem:[#allocation45_spill] sm:$0xff] %v7026_v54  ;;  %2110 = vmatmul.bf16.gmra.mxu2 %v7038_v13  ;;  %v2427_v46 = vpack.c.bf16 %v2404_v29, %v2403_v7  ;;  %v2406_v29 = vld [vmem:[#allocation2 + $0x170] sm:$0xff] }
 0x253   : > { %v1218_v44 = vpop.f32.mrf.mxu3 }
 0x254   : > { %v7036_v25 = vadd.f32 %v1218_v44, %v6923_v63  ;;  %v7048_v63 = vpop.f32.mrf.mxu2  ;;  %v7050_v44 = vpop.f32.mrf.mxu0 }
 0x255   : > { %v7040_v47 = vpop.f32.mrf.mxu1  ;;  %8762 = vst [vmem:[#allocation49_spill] sm:$0xff] %v7050_v44 }
 0x256   : > { %8761 = vst [vmem:[#allocation48_spill] sm:$0xff] %v7040_v47  ;;  %v1951_v47 = vld [vmem:[#allocation2 + $0x211] sm:$0xff] }
 0x258   : > { %1381 = vmatmul.bf16.gmra.mxu3 %v6864_v40  ;;  %2740 = vmatmul.bf16.vlgmr.msra.gmra.mxu1 %v6707_v37  ;;  %v6104_v37 = vld [vmem:[%s8711_s5 + $0x78] sm:$0xff] }
 0x259   : > { %3162 = vmatpush.bf16.msra.mxu2 %v6104_v37 }
 0x25b   : > { %v1342_v54 = vpop.f32.mrf.mxu3 }
 0x25c   : > { %2542 = vmatmul.bf16.gmra.mxu0 %v2426_v8  ;;  %v7046_v15 = vadd.f32 %v1342_v54, %v6555_v5  ;;  %v7061_v5 = vpack.c.bf16 %v1951_v47, %v1950_v36  ;;  %v7065_v21 = vpop.f32.mrf.mxu2  ;;  %v7067_v44 = vpop.f32.mrf.mxu0 }
 0x25d   : > { %v7052_v28 = vpop.f32.mrf.mxu1  ;;  %8765 = vst [vmem:[#allocation52_spill] sm:$0xff] %v7067_v44  ;;  %v6067_v44 = vld [vmem:[%s8709_s3 + $0x190] sm:$0xff] }
 0x25e   : > { %8763 = vst [vmem:[#allocation50_spill] sm:$0xff] %v7052_v28  ;;  %2115 = vmatmul.bf16.gmra.mxu2 %v7061_v5  ;;  %2271 = vmatpush.bf16.msra.mxu3 %v6067_v44  ;;  %v6103_v44 = vld [vmem:[%s8711_s5 + $0x70] sm:$0xff] }
 0x25f   : > { %3163 = vmatpush.bf16.msra.mxu2 %v6103_v44  ;;  %v6066_v44 = vld [vmem:[%s8709_s3 + $0x188] sm:$0xff] }
 0x260   : > { %v2157_v28 = vld [vmem:[#allocation2 + $0x6f] sm:$0xff] }
 0x262   : > { %2272 = vmatpush.bf16.msra.mxu3 %v6066_v44 }
 0x263   : > { %v1344_v42 = vpop.f32.mrf.mxu3 }
 0x264   : > { %v7059_v8 = vadd.f32 %v1344_v42, %v1144_v35  ;;  %v7077_v36 = vpop.f32.mrf.mxu0 }
 0x265   : > { %v7063_v54 = vpop.f32.mrf.mxu1  ;;  %8767 = vst [vmem:[#allocation54_spill] sm:$0xff] %v7077_v36 }
 0x266   : > { %8764 = vst [vmem:[#allocation51_spill] sm:$0xff] %v7063_v54 }
 0x268   : > { %1386 = vmatmul.bf16.gmra.mxu3 %v6887_v22  ;;  %2745 = vmatmul.bf16.gmra.mxu1 %v6725_v17 }
 0x26b   : > { %v1347_v42 = vpop.f32.mrf.mxu3 }
 0x26c   : > { %2547 = vmatmul.bf16.gmra.mxu0 %v2427_v46  ;;  %v7073_v47 = vadd.f32 %v1347_v42, %v6638_v4  ;;  %v2405_v4 = vld [vmem:[#allocation2 + $0x168] sm:$0xff]  ;;  %v7089_v42 = vpop.f32.mrf.mxu0 }
 0x26d   : > { %v7075_v35 = vpop.f32.mrf.mxu1  ;;  %v2428_v7 = vpack.c.bf16 %v2406_v29, %v2405_v4  ;;  %8769 = vst [vmem:[#allocation56_spill] sm:$0xff] %v7089_v42  ;;  %v2408_v4 = vld [vmem:[#allocation2 + $0x190] sm:$0xff] }
 0x26e   : > { %8766 = vst [vmem:[#allocation53_spill] sm:$0xff] %v7075_v35 }
 0x273   : > { %v1349_v37 = vpop.f32.mrf.mxu3 }
 0x274   : > { %v7083_v54 = vadd.f32 %v1349_v37, %v6651_v19 }
 0x275   : > { %v7085_v17 = vpop.f32.mrf.mxu1 }
 0x276   : > { %8768 = vst [vmem:[#allocation55_spill] sm:$0xff] %v7085_v17 }
 0x278   : > { %1391 = vmatmul.bf16.gmra.mxu3 %v6910_v58  ;;  %2750 = vmatmul.bf16.gmra.mxu1 %v6745_v14  ;;  %v7102_v14 = vpop.f32.mrf.mxu0 }
 0x279   : > { %8771 = vst [vmem:[#allocation58_spill] sm:$0xff] %v7102_v14 }
 0x27b   : > { %v1352_v46 = vpop.f32.mrf.mxu3 }
 0x27c   : > { %2552 = vmatmul.bf16.gmra.mxu0 %v2428_v7  ;;  %v7092_v36 = vadd.f32 %v1352_v46, %v6665_v38  ;;  %v2407_v38 = vld [vmem:[#allocation2 + $0x188] sm:$0xff] }
 0x27d   : > { %v7094_v35 = vpop.f32.mrf.mxu1  ;;  %v2429_v7 = vpack.c.bf16 %v2408_v4, %v2407_v38  ;;  %v2410_v4 = vld [vmem:[#allocation2 + $0x1b0] sm:$0xff] }
 0x27e   : > { %8770 = vst [vmem:[#allocation57_spill] sm:$0xff] %v7094_v35 }
 0x283   : > { %v1354_v19 = vpop.f32.mrf.mxu3 }
 0x284   : > { %v7100_v37 = vadd.f32 %v1354_v19, %v6671_v50  ;;  %v7113_v50 = vpop.f32.mrf.mxu0 }
 0x285   : > { %v7104_v29 = vpop.f32.mrf.mxu1  ;;  %8774 = vst [vmem:[#allocation61_spill] sm:$0xff] %v7113_v50 }
 0x286   : > { %8772 = vst [vmem:[#allocation59_spill] sm:$0xff] %v7104_v29 }
 0x288   : > { %1396 = vmatmul.bf16.gmra.mxu3 %v6925_v61  ;;  %2755 = vmatmul.bf16.gmra.mxu1 %v6767_v31 }
 0x28b   : > { %v1357_v46 = vpop.f32.mrf.mxu3 }
 0x28c   : > { %2557 = vmatmul.bf16.gmra.mxu0 %v2429_v7  ;;  %v7109_v42 = vadd.f32 %v1357_v46, %v6681_v62  ;;  %v2409_v62 = vld [vmem:[#allocation2 + $0x1a8] sm:$0xff]  ;;  %v7125_v38 = vpop.f32.mrf.mxu0 }
 0x28d   : > { %v7111_v35 = vpop.f32.mrf.mxu1  ;;  %v2430_v7 = vpack.c.bf16 %v2410_v4, %v2409_v62  ;;  %v2411_v4 = vld [vmem:[#allocation2 + $0x1c8] sm:$0xff]  ;;  %v2412_v62 = vld [vmem:[#allocation2 + $0x1d0] sm:$0xff] }
 0x28e   : > { %8773 = vst [vmem:[#allocation60_spill] sm:$0xff] %v7111_v35 }
 0x293   : > { %v1359_v19 = vpop.f32.mrf.mxu3 }
 0x294   : > { %v7119_v14 = vadd.f32 %v1359_v19, %v6688_v12  ;;  %v6102_v19 = vld [vmem:[%s8711_s5 + $0x68] sm:$0xff]  ;;  %v7135_v44 = vpop.f32.mrf.mxu0 }
 0x295   : > { %v7121_v31 = vpop.f32.mrf.mxu1  ;;  %3164 = vmatpush.bf16.msra.mxu2 %v6102_v19 }
 0x296   : > { %8775 = vst [vmem:[#allocation62_spill] sm:$0xff] %v7121_v31 }
 0x298   : > { %1401 = vmatmul.bf16.gmra.mxu3 %v6952_v60  ;;  %2760 = vmatmul.bf16.gmra.mxu1 %v6792_v0 }
 0x29b   : > { %v1362_v46 = vpop.f32.mrf.mxu3 }
 0x29c   : > { %2562 = vmatmul.bf16.gmra.mxu0 %v2430_v7  ;;  %v7128_v50 = vadd.f32 %v1362_v46, %v6700_v23  ;;  %v2431_v23 = vpack.c.bf16 %v2412_v62, %v2411_v4  ;;  %v2413_v4 = vld [vmem:[#allocation2 + $0x1e8] sm:$0xff]  ;;  %v2414_v62 = vld [vmem:[#allocation2 + $0x1f0] sm:$0xff] }
 0x29d   : > { %v7130_v35 = vpop.f32.mrf.mxu1 }
 0x29e   : > { %8776 = vst [vmem:[#allocation63_spill] sm:$0xff] %v7130_v35  ;;  %v7147_v35 = vpop.f32.mrf.mxu0 }
 0x2a3   : > { %v1364_v12 = vpop.f32.mrf.mxu3 }
 0x2a4   : > { %v7138_v31 = vadd.f32 %v1364_v12, %v6705_v16  ;;  %v6065_v12 = vld [vmem:[%s8709_s3 + $0x180] sm:$0xff] }
 0x2a5   : > { %v7140_v0 = vpop.f32.mrf.mxu1  ;;  %2273 = vmatpush.bf16.msra.mxu3 %v6065_v12  ;;  %v6101_v12 = vld [vmem:[%s8711_s5 + $0x60] sm:$0xff] }
 0x2a6   : > { %8777 = vst [vmem:[#allocation64_spill] sm:$0xff] %v7140_v0  ;;  %3165 = vmatpush.bf16.msra.mxu2 %v6101_v12  ;;  %v6100_v12 = vld [vmem:[%s8711_s5 + $0x58] sm:$0xff] }
 0x2a8   : > { %1406 = vmatmul.bf16.gmra.mxu3 %v6975_v27  ;;  %2765 = vmatmul.bf16.gmra.mxu1 %v6829_v53 }
 0x2aa   : > { %3166 = vmatpush.bf16.msra.mxu2 %v6100_v12 }
 0x2ab   : > { %v1367_v7 = vpop.f32.mrf.mxu3 }
 0x2ac   : > { %2567 = vmatmul.bf16.gmra.mxu0 %v2431_v23  ;;  %v7145_v46 = vadd.f32 %v1367_v7, %v6716_v26  ;;  %v7159_v23 = vpop.f32.mrf.mxu0  ;;  %v2432_v26 = vpack.c.bf16 %v2414_v62, %v2413_v4  ;;  %v2415_v4 = vld [vmem:[#allocation2 + $0x208] sm:$0xff] }
 0x2ad   : > { %v7149_v29 = vpop.f32.mrf.mxu1 }
 0x2ae   : > { %8778 = vst [vmem:[#allocation65_spill] sm:$0xff] %v7149_v29 }
 0x2b3   : > { %v1369_v16 = vpop.f32.mrf.mxu3 }
 0x2b4   : > { %v7155_v19 = vadd.f32 %v1369_v16, %v6720_v45  ;;  %v7168_v45 = vpop.f32.mrf.mxu0 }
 0x2b5   : > { %v7157_v53 = vpop.f32.mrf.mxu1 }
 0x2b6   : > { %8779 = vst [vmem:[#allocation66_spill] sm:$0xff] %v7157_v53 }
 0x2b8   : > { %1411 = vmatmul.bf16.gmra.mxu3 %v7006_v33  ;;  %2770 = vmatmul.bf16.gmra.mxu1 %v6864_v40 }
 0x2bb   : > { %v1372_v7 = vpop.f32.mrf.mxu3 }
 0x2bc   : > { %2572 = vmatmul.bf16.gmra.mxu0 %v2432_v26  ;;  %v7164_v29 = vadd.f32 %v1372_v7, %v6731_v56  ;;  %v2433_v56 = vpack.c.bf16 %v6794_v6, %v2415_v4  ;;  %v7181_v26 = vpop.f32.mrf.mxu0 }
 0x2bd   : > { %v7166_v0 = vpop.f32.mrf.mxu1 }
 0x2be   : > { %8780 = vst [vmem:[#allocation67_spill] sm:$0xff] %v7164_v29 }
 0x2bf   : > { %8781 = vst [vmem:[#allocation68_spill] sm:$0xff] %v7166_v0 }
 0x2c3   : > { %v1374_v16 = vpop.f32.mrf.mxu3 }
 0x2c4   : > { %v7174_v53 = vadd.f32 %v1374_v16, %v6738_v10  ;;  %v2155_v16 = vld [vmem:[#allocation2 + $0x4f] sm:$0xff] }
 0x2c5   : > { %v7176_v40 = vpop.f32.mrf.mxu1 }
 0x2c6   : > { %8782 = vst [vmem:[#allocation69_spill] sm:$0xff] %v7174_v53 }
 0x2c7   : > { %8783 = vst [vmem:[#allocation70_spill] sm:$0xff] %v7176_v40 }
 0x2c8   : > { %1416 = vmatmul.bf16.gmra.mxu3 %v7038_v13  ;;  %2775 = vmatmul.bf16.gmra.mxu1 %v6887_v22  ;;  %v2154_v22 = vld [vmem:[#allocation2 + $0x47] sm:$0xff] }
 0x2c9   : > { %v2186_v4 = vpack.c.bf16 %v2155_v16, %v2154_v22 }
 0x2cb   : > { %v1377_v62 = vpop.f32.mrf.mxu3 }
 0x2cc   : > { %2577 = vmatmul.bf16.gmra.mxu0 %v2433_v56  ;;  %v7184_v7 = vadd.f32 %v1377_v62, %v6751_v20 }
 0x2cd   : > { %v7186_v0 = vpop.f32.mrf.mxu1 }
 0x2ce   : > { %8784 = vst [vmem:[#allocation71_spill] sm:$0xff] %v7184_v7 }
 0x2cf   : > { %8785 = vst [vmem:[#allocation72_spill] sm:$0xff] %v7186_v0  ;;  %v7202_v0 = vpop.f32.mrf.mxu0 }
 0x2d3   : > { %v1379_v10 = vpop.f32.mrf.mxu3 }
 0x2d4   : > { %v7192_v40 = vadd.f32 %v1379_v10, %v6758_v48  ;;  %v2156_v10 = vld [vmem:[#allocation2 + $0x67] sm:$0xff] }
 0x2d5   : > { %v7194_v6 = vpop.f32.mrf.mxu1  ;;  %v2187_v16 = vpack.c.bf16 %v2157_v28, %v2156_v10  ;;  %v2159_v10 = vld [vmem:[#allocation2 + $0x8f] sm:$0xff] }
 0x2d6   : > { %8786 = vst [vmem:[#allocation73_spill] sm:$0xff] %v7192_v40 }
 0x2d7   : > { %v7209_v22 = vpop.f32.mrf.mxu0 }
 0x2d8   : > { %2274 = vmatmul.bf16.vlgmr.msra.gmra.mxu3 %v2186_v4  ;;  %2780 = vmatmul.bf16.gmra.mxu1 %v6910_v58 }
 0x2db   : > { %v1382_v20 = vpop.f32.mrf.mxu3 }
 0x2dc   : > { %v7198_v56 = vadd.f32 %v1382_v20, %v6771_v39  ;;  %v6099_v39 = vld [vmem:[%s8711_s5 + $0x50] sm:$0xff] }
 0x2dd   : > { %v7200_v62 = vpop.f32.mrf.mxu1  ;;  %3167 = vmatpush.bf16.msra.mxu2 %v6099_v39 }
 0x2de   : > { %8787 = vst [vmem:[#allocation74_spill] sm:$0xff] %v7198_v56 }
 0x2df   : > { %v7222_v20 = vpop.f32.mrf.mxu0 }
 0x2e3   : > { %v1384_v17 = vpop.f32.mrf.mxu3 }
 0x2e4   : > { %v7205_v48 = vadd.f32 %v1384_v17, %v6784_v41  ;;  %v7220_v17 = vpop.f32.mrf.mxu2 }
 0x2e5   : > { %v7207_v12 = vpop.f32.mrf.mxu1 }
 0x2e6   : > { %8788 = vst [vmem:[#allocation75_spill] sm:$0xff] %v7205_v48 }
 0x2e8   : > { %2279 = vmatmul.bf16.gmra.mxu3 %v2187_v16  ;;  %2785 = vmatmul.bf16.gmra.mxu1 %v6925_v61  ;;  %v2158_v61 = vld [vmem:[#allocation2 + $0x87] sm:$0xff] }
 0x2e9   : > { %v2188_v56 = vpack.c.bf16 %v2159_v10, %v2158_v61 }
 0x2eb   : > { %v1387_v58 = vpop.f32.mrf.mxu3 }
 0x2ec   : > { %v7216_v4 = vadd.f32 %v1387_v58, %v6814_v49  ;;  %v7230_v39 = vpop.f32.mrf.mxu2 }
 0x2ed   : > { %v7218_v41 = vpop.f32.mrf.mxu1 }
 0x2ee   : > { %8789 = vst [vmem:[#allocation76_spill] sm:$0xff] %v7216_v4  ;;  %v7235_v4 = vpop.f32.mrf.mxu0 }
 0x2f3   : > { %v1389_v28 = vpop.f32.mrf.mxu3 }
 0x2f4   : > { %v7225_v16 = vadd.f32 %v1389_v28, %v6827_v2  ;;  %v2161_v2 = vld [vmem:[#allocation2 + $0xaf] sm:$0xff]  ;;  %v7242_v10 = vpop.f32.mrf.mxu2 }
 0x2f5   : > { %v7227_v48 = vpop.f32.mrf.mxu1 }
 0x2f6   : > { %8790 = vst [vmem:[#allocation77_spill] sm:$0xff] %v7225_v16  ;;  %v2160_v16 = vld [vmem:[#allocation2 + $0xa7] sm:$0xff]  ;;  %v7246_v61 = vpop.f32.mrf.mxu0 }
 0x2f8   : > { %2284 = vmatmul.bf16.gmra.mxu3 %v2188_v56  ;;  %2790 = vmatmul.bf16.gmra.mxu1 %v6952_v60  ;;  %v2189_v60 = vpack.c.bf16 %v2161_v2, %v2160_v16  ;;  %v2163_v2 = vld [vmem:[#allocation2 + $0xcf] sm:$0xff] }
 0x2fb   : > { %v1392_v49 = vpop.f32.mrf.mxu3 }
 0x2fc   : > { %v7233_v58 = vadd.f32 %v1392_v49, %v6850_v51  ;;  %v6098_v51 = vld [vmem:[%s8711_s5 + $0x48] sm:$0xff] }
 0x2fd   : > { %v7237_v40 = vpop.f32.mrf.mxu1  ;;  %3168 = vmatpush.bf16.msra.mxu2 %v6098_v51 }
 0x2fe   : > { %8791 = vst [vmem:[#allocation78_spill] sm:$0xff] %v7233_v58  ;;  %v7259_v58 = vpop.f32.mrf.mxu0 }
 0x2ff   : > { %8795 = vst [vmem:[#allocation82_spill] sm:$0xff] %v7259_v58 }
 0x303   : > { %v1394_v7 = vpop.f32.mrf.mxu3 }
 0x304   : > { %v7240_v28 = vadd.f32 %v1394_v7, %v6862_v52 }
 0x305   : > { %v7244_v56 = vpop.f32.mrf.mxu1 }
 0x306   : > { %8792 = vst [vmem:[#allocation79_spill] sm:$0xff] %v7240_v28  ;;  %v7257_v28 = vpop.f32.mrf.mxu2  ;;  %v7269_v51 = vpop.f32.mrf.mxu0 }
 0x307   : > { %8794 = vst [vmem:[#allocation81_spill] sm:$0xff] %v7257_v28 }
 0x308   : > { %2289 = vmatmul.bf16.gmra.mxu3 %v2189_v60  ;;  %2795 = vmatmul.bf16.gmra.mxu1 %v6975_v27  ;;  %v2162_v27 = vld [vmem:[#allocation2 + $0xc7] sm:$0xff] }
 0x309   : > { %v2190_v29 = vpack.c.bf16 %v2163_v2, %v2162_v27 }
 0x30b   : > { %v1397_v49 = vpop.f32.mrf.mxu3 }
 0x30c   : > { %v7253_v52 = vadd.f32 %v1397_v49, %v6876_v34 }
 0x30d   : > { %v7255_v7 = vpop.f32.mrf.mxu1 }
 0x30e   : > { %8793 = vst [vmem:[#allocation80_spill] sm:$0xff] %v7253_v52  ;;  %v7267_v34 = vpop.f32.mrf.mxu2 }
 0x313   : > { %v1399_v16 = vpop.f32.mrf.mxu3 }
 0x314   : > { %v7262_v60 = vadd.f32 %v1399_v16, %v6885_v57  ;;  %v2165_v57 = vld [vmem:[#allocation2 + $0xef] sm:$0xff] }
 0x315   : > { %v7264_v53 = vpop.f32.mrf.mxu1 }
 0x316   : > { %8796 = vst [vmem:[#allocation83_spill] sm:$0xff] %v7262_v60  ;;  %v7276_v16 = vpop.f32.mrf.mxu2 }
 0x317   : > { %8798 = vst [vmem:[#allocation85_spill] sm:$0xff] %v7276_v16  ;;  %v6120_v16 = vld [vmem:[%s8711_s5 + $0xf8] sm:$0xff] }
 0x318   : > { %2294 = vmatmul.bf16.gmra.mxu3 %v2190_v29  ;;  %2800 = vmatmul.bf16.gmra.mxu1 %v7006_v33  ;;  %v7281_v29 = vpop.f32.mrf.mxu0  ;;  %v2164_v33 = vld [vmem:[#allocation2 + $0xe7] sm:$0xff] }
 0x319   : > { %8800 = vst [vmem:[#allocation87_spill] sm:$0xff] %v7281_v29  ;;  %v2191_v27 = vpack.c.bf16 %v2165_v57, %v2164_v33  ;;  %v6112_v57 = vld [vmem:[%s8711_s5 + $0xb8] sm:$0xff]  ;;  %v2167_v33 = vld [vmem:[#allocation2 + $0x10f] sm:$0xff]  ;;  %3733 = vmatpush.bf16.msrb.mxu1 %v6120_v16 }
 0x31a   : > { %3500 = vmatpush.bf16.msrb.mxu0 %v6112_v57  ;;  %v6200_v57 = vld [vmem:[#allocation2] sm:$0xff] }
 0x31b   : > { %v1402_v49 = vpop.f32.mrf.mxu3  ;;  %v2434_v29 = vpack.c.bf16 %v6200_v57, %v6200_v57  ;;  %v2169_v57 = vld [vmem:[#allocation2 + $0x12f] sm:$0xff] }
 0x31c   : > { %v7272_v52 = vadd.f32 %v1402_v49, %v6941_v18  ;;  %v6097_v18 = vld [vmem:[%s8711_s5 + $0x40] sm:$0xff] }
 0x31d   : > { %v7274_v58 = vpop.f32.mrf.mxu1  ;;  %3169 = vmatpush.bf16.msra.mxu2 %v6097_v18  ;;  %v2166_v18 = vld [vmem:[#allocation2 + $0x107] sm:$0xff]  ;;  %2582 = vmatmul.bf16.gmra.mxu0 %v2434_v29 }
 0x31e   : > { %8797 = vst [vmem:[#allocation84_spill] sm:$0xff] %v7272_v52 }
 0x320   : > { %3170 = vmatmul.bf16.vlgmr.msra.gmra.mxu2 %v2434_v29  ;;  %v2168_v29 = vld [vmem:[#allocation2 + $0x127] sm:$0xff] }
 0x323   : > { %v1404_v28 = vpop.f32.mrf.mxu3 }
 0x324   : > { %v7279_v60 = vadd.f32 %v1404_v28, %v6950_v43  ;;  %v7292_v43 = vpop.f32.mrf.mxu2 }
 0x325   : > { %v7283_v2 = vpop.f32.mrf.mxu1  ;;  %8802 = vst [vmem:[#allocation89_spill] sm:$0xff] %v7292_v43 }
 0x326   : > { %8799 = vst [vmem:[#allocation86_spill] sm:$0xff] %v7279_v60  ;;  %v7296_v60 = vpop.f32.mrf.mxu0 }
 0x327   : > { %8803 = vst [vmem:[#allocation90_spill] sm:$0xff] %v7296_v60  ;;  %v6110_v60 = vld [vmem:[%s8711_s5 + $0xa8] sm:$0xff] }
 0x328   : > { %2299 = vmatmul.bf16.gmra.mxu3 %v2191_v27  ;;  %2805 = vmatmul.bf16.gmra.mxu1 %v7038_v13  ;;  %v6111_v27 = vld [vmem:[%s8711_s5 + $0xb0] sm:$0xff] }
 0x329   : > { %3501 = vmatpush.bf16.msrb.mxu0 %v6111_v27 }
 0x32b   : > { %v1407_v49 = vpop.f32.mrf.mxu3 }
 0x32c   : > { %v7290_v52 = vadd.f32 %v1407_v49, %v6964_v11  ;;  %v7312_v43 = vpop.f32.mrf.mxu2 }
 0x32d   : > { %v7294_v28 = vpop.f32.mrf.mxu1  ;;  %3502 = vmatpush.bf16.msrb.mxu0 %v6110_v60 }
 0x32e   : > { %8801 = vst [vmem:[#allocation88_spill] sm:$0xff] %v7290_v52  ;;  %v2192_v52 = vpack.c.bf16 %v2167_v33, %v2166_v18  ;;  %v6109_v33 = vld [vmem:[%s8711_s5 + $0xa0] sm:$0xff]  ;;  %v6108_v18 = vld [vmem:[%s8711_s5 + $0x98] sm:$0xff] }
 0x331   : > { %3503 = vmatpush.bf16.msrb.mxu0 %v6109_v33  ;;  %v6107_v33 = vld [vmem:[%s8711_s5 + $0x90] sm:$0xff] }
 0x333   : > { %v1409_v13 = vpop.f32.mrf.mxu3 }
 0x334   : > { %v7305_v11 = vadd.f32 %v1409_v13, %v6969_v9  ;;  %v7317_v9 = vpop.f32.mrf.mxu0 }
 0x335   : > { %v7307_v49 = vpop.f32.mrf.mxu1  ;;  %8805 = vst [vmem:[#allocation92_spill] sm:$0xff] %v7317_v9  ;;  %3504 = vmatpush.bf16.msrb.mxu0 %v6108_v18  ;;  %v6118_v18 = vld [vmem:[%s8711_s5 + $0xe8] sm:$0xff]  ;;  %v3389_v9 = vld [vmem:[#allocation3 + $0x11] sm:$0xff] }
 0x336   : > { %8804 = vst [vmem:[#allocation91_spill] sm:$0xff] %v7305_v11 }
 0x338   : > { %2304 = vmatmul.bf16.gmra.mxu3 %v2192_v52  ;;  %2810 = vmatmul.bf16.gmra.mxu1 %v7061_v5  ;;  %v7331_v5 = vpop.f32.mrf.mxu2 }
 0x339   : > { %8807 = vst [vmem:[#allocation94_spill] sm:$0xff] %v7331_v5  ;;  %3505 = vmatpush.bf16.msrb.mxu0 %v6107_v33  ;;  %v2650_v33 = vld [vmem:[#allocation2 + $0x229] sm:$0xff]  ;;  %v2651_v5 = vld [vmem:[#allocation2 + $0x231] sm:$0xff] }
 0x33b   : > { %v1412_v13 = vpop.f32.mrf.mxu3 }
 0x33c   : > { %v7324_v52 = vadd.f32 %v1412_v13, %v6989_v24  ;;  %v7333_v16 = vpop.f32.mrf.mxu0  ;;  %v2193_v13 = vpack.c.bf16 %v2169_v57, %v2168_v29 }
 0x33d   : > { %v7326_v27 = vpop.f32.mrf.mxu1  ;;  %8808 = vst [vmem:[#allocation95_spill] sm:$0xff] %v7333_v16  ;;  %v6096_v16 = vld [vmem:[%s8711_s5 + $0x38] sm:$0xff] }
 0x33e   : > { %8806 = vst [vmem:[#allocation93_spill] sm:$0xff] %v7324_v52  ;;  %v6119_v52 = vld [vmem:[%s8711_s5 + $0xf0] sm:$0xff]  ;;  %3299 = vmatpush.bf16.msrb.mxu3 %v6096_v16  ;;  %v6117_v16 = vld [vmem:[%s8711_s5 + $0xe0] sm:$0xff] }
 0x33f   : > { %3734 = vmatpush.bf16.msrb.mxu1 %v6119_v52  ;;  %v6105_v52 = vld [vmem:[%s8711_s5 + $0x80] sm:$0xff] }
 0x340   : > { %v7355_v57 = vpop.f32.mrf.mxu2 }
 0x341   : > { %8810 = vst [vmem:[#allocation97_spill] sm:$0xff] %v7355_v57  ;;  %v3388_v57 = vld [vmem:[#allocation3 + $0x9] sm:$0xff] }
 0x343   : > { %v1414_v60 = vpop.f32.mrf.mxu3  ;;  %3735 = vmatpush.bf16.msrb.mxu1 %v6118_v18  ;;  %v6128_v18 = vld [vmem:[%s8711_s5 + $0x138] sm:$0xff] }
 0x344   : > { %v7336_v11 = vadd.f32 %v1414_v60, %v7004_v55  ;;  %v6106_v55 = vld [vmem:[%s8711_s5 + $0x88] sm:$0xff]  ;;  %3966 = vmatpush.bf16.msrb.mxu2 %v6128_v18  ;;  %v7401_v18 = vld [vmem:[%s8710_s4] ss:$0 sm:$0xff] }
 0x345   : > { %v7338_v24 = vpop.f32.mrf.mxu1  ;;  %3506 = vmatpush.bf16.msrb.mxu0 %v6106_v55  ;;  %v3420_v55 = vpack.c.bf16 %v3389_v9, %v3388_v57  ;;  %v2170_v9 = vld [vmem:[#allocation2 + $0x147] sm:$0xff] }
 0x346   : > { %8809 = vst [vmem:[#allocation96_spill] sm:$0xff] %v7336_v11  ;;  %v7360_v11 = vpop.f32.mrf.mxu0 }
 0x347   : > { %8812 = vst [vmem:[#allocation99_spill] sm:$0xff] %v7360_v11  ;;  %3736 = vmatpush.bf16.msrb.mxu1 %v6117_v16 }
 0x348   : > { %2309 = vmatmul.bf16.gmra.mxu3 %v2193_v13  ;;  %v7381_v57 = vpop.f32.mrf.mxu2 }
 0x349   : > { %3507 = vmatpush.bf16.msrb.mxu0 %v6105_v52 }
 0x34b   : > { %v1417_v60 = vpop.f32.mrf.mxu3 }
 0x34c   : > { %v7358_v29 = vadd.f32 %v1417_v60, %v7024_v30  ;;  %v2667_v30 = vpack.c.bf16 %v2651_v5, %v2650_v33  ;;  %v6116_v60 = vld [vmem:[%s8711_s5 + $0xd8] sm:$0xff]  ;;  %3508 = vmatmul.bf16.vlgmr.msrb.gmra.mxu0 %v3420_v55  ;;  %v6115_v33 = vld [vmem:[%s8711_s5 + $0xd0] sm:$0xff] }
 0x34d   : > { %v7362_v13 = vpop.f32.mrf.mxu1  ;;  %3737 = vmatpush.bf16.msrb.mxu1 %v6116_v60  ;;  %v8816_v60 = vld [vmem:[#allocation16_spill] sm:$0xff] }
 0x34e   : > { %8811 = vst [vmem:[#allocation98_spill] sm:$0xff] %v7358_v29  ;;  %v1655_v29 = vadd.f32 %v6676_v59, %v7046_v15  ;;  %2815 = vmatmul.bf16.gmra.mxu1 %v2667_v30  ;;  %v7387_v59 = vpop.f32.mrf.mxu0 }
 0x34f   : > { %8813 = vst [vmem:[#allocation100_spill] sm:$0xff] %v7362_v13  ;;  %v2171_v13 = vld [vmem:[#allocation2 + $0x14f] sm:$0xff] }
 0x350   : > { %v2194_v52 = vpack.c.bf16 %v2171_v13, %v2170_v9  ;;  %v1888_v16 = vadd.f32 %v6831_v32, %v1655_v29  ;;  %v8815_v13 = vld [vmem:[#allocation31_spill] sm:$0xff] }
 0x351   : > { %3738 = vmatpush.bf16.msrb.mxu1 %v6115_v33  ;;  %v7407_v33 = vpop.f32.mrf.mxu2 }
 0x352   : > { %v2121_v30 = vadd.f32 %v8815_v13, %v1888_v16 }
 0x353   : > { %v1419_v11 = vpop.f32.mrf.mxu3 }
 0x354   : > { %v7379_v5 = vadd.f32 %v1419_v11, %v7036_v25  ;;  %v6114_v25 = vld [vmem:[%s8711_s5 + $0xc8] sm:$0xff]  ;;  %v1656_v11 = vadd.f32 %v6684_v3, %v7059_v8 }
 0x355   : > { %v7389_v15 = vpop.f32.mrf.mxu1  ;;  %3739 = vmatpush.bf16.msrb.mxu1 %v6114_v25 }
 0x356   : > { %8814 = vst [vmem:[#allocation101_spill] sm:$0xff] %v7379_v5  ;;  %v1889_v9 = vadd.f32 %v8816_v60, %v1656_v11  ;;  %v7410_v8 = vpop.f32.mrf.mxu0  ;;  %v2172_v5 = vld [vmem:[#allocation2 + $0x167] sm:$0xff] }
 0x357   : > { %8817 = vst [vmem:[#allocation31_spill] sm:$0xff] %v7410_v8  ;;  %v8819_v8 = vld [vmem:[#allocation18_spill] sm:$0xff] }
 0x358   : > { %2314 = vmatmul.bf16.gmra.mxu3 %v2194_v52  ;;  %v6113_v52 = vld [vmem:[%s8711_s5 + $0xc0] sm:$0xff]  ;;  %v2122_v11 = vadd.f32 %v6959_v1, %v1889_v9  ;;  %v8820_v1 = vld [vmem:[#allocation5_spill] sm:$0xff] }
 0x359   : > { %3740 = vmatpush.bf16.msrb.mxu1 %v6113_v52  ;;  %v1658_v9 = vadd.f32 %v8820_v1, %v7083_v54  ;;  %v6127_v54 = vld [vmem:[%s8711_s5 + $0x130] sm:$0xff] }
 0x35a   : > { %3967 = vmatpush.bf16.msrb.mxu2 %v6127_v54 }
 0x35b   : > { %v2275_v32 = vpop.f32.mrf.mxu3 }
 0x35c   : > { %v2355_v29 = vadd.f32 %v2275_v32, %v2121_v30  ;;  %v2173_v32 = vld [vmem:[#allocation2 + $0x16f] sm:$0xff] }
 0x35d   : > { %v7415_v13 = vpop.f32.mrf.mxu1 }
 0x35e   : > { %v2588_v55 = vadd.f32 %v7125_v38, %v2355_v29  ;;  %v8818_v38 = vld [vmem:[#allocation4_spill] sm:$0xff] }
 0x35f   : > { %v1657_v16 = vadd.f32 %v8818_v38, %v7073_v47  ;;  %v6095_v47 = vld [vmem:[%s8711_s5 + $0x30] sm:$0xff]  ;;  %v7426_v38 = vpop.f32.mrf.mxu2 }
 0x360   : > { %v2821_v3 = vadd.f32 %v7194_v6, %v2588_v55  ;;  %v2195_v55 = vpack.c.bf16 %v2173_v32, %v2172_v5  ;;  %3300 = vmatpush.bf16.msrb.mxu3 %v6095_v47  ;;  %v7430_v5 = vpop.f32.mrf.mxu0 }
 0x361   : > { %v1890_v52 = vadd.f32 %v8819_v8, %v1657_v16  ;;  %8822 = vst [vmem:[#allocation16_spill] sm:$0xff] %v7430_v5 }
 0x362   : > { %v2857_v25 = vadd.f32 %v7401_v18, %v2821_v3 }
 0x363   : > { %v2277_v30 = vpop.f32.mrf.mxu3 }
 0x364   : > { %v2889_v29 = vmax.f32 %v2857_v25, 0.0  ;;  %v2356_v60 = vadd.f32 %v2277_v30, %v2122_v11  ;;  %v8821_v11 = vld [vmem:[#allocation36_spill] sm:$0xff] }
 0x365   : > { %v7432_v30 = vpop.f32.mrf.mxu1 }
 0x366   : > { %2922 = vst [vmem:[#allocation3 + $0x28] sm:$0xff] %v2889_v29  ;;  %v2589_v6 = vadd.f32 %v7135_v44, %v2356_v60  ;;  %v2123_v44 = vadd.f32 %v8821_v11, %v1890_v52  ;;  %v8823_v60 = vld [vmem:[#allocation19_spill] sm:$0xff]  ;;  %v8824_v52 = vld [vmem:[#allocation6_spill] sm:$0xff] }
 0x368   : > { %v2822_v3 = vadd.f32 %v7200_v62, %v2589_v6  ;;  %2319 = vmatmul.bf16.gmra.mxu3 %v2195_v55  ;;  %v1891_v6 = vadd.f32 %v8823_v60, %v1658_v9  ;;  %v7446_v60 = vpop.f32.mrf.mxu0 }
 0x369   : > { %8827 = vst [vmem:[#allocation18_spill] sm:$0xff] %v7446_v60 }
 0x36a   : > { %v2858_v25 = vadd.f32 %v7401_v18, %v2822_v3  ;;  %v1659_v3 = vadd.f32 %v8824_v52, %v7092_v36 }
 0x36b   : > { %v2280_v8 = vpop.f32.mrf.mxu3 }
 0x36c   : > { %v2890_v16 = vmax.f32 %v2858_v25, 0.0  ;;  %v2357_v32 = vadd.f32 %v2280_v8, %v2123_v44  ;;  %v8825_v25 = vld [vmem:[#allocation40_spill] sm:$0xff]  ;;  %v2175_v44 = vld [vmem:[#allocation2 + $0x18f] sm:$0xff]  ;;  %v7444_v8 = vpop.f32.mrf.mxu2 }
 0x36d   : > { %v2124_v11 = vadd.f32 %v8825_v25, %v1891_v6  ;;  %8826 = vst [vmem:[#allocation4_spill] sm:$0xff] %v7444_v8  ;;  %v7448_v36 = vpop.f32.mrf.mxu1  ;;  %v8828_v25 = vld [vmem:[#allocation21_spill] sm:$0xff] }
 0x36e   : > { %2923 = vst [vmem:[#allocation3 + $0x30] sm:$0xff] %v2890_v16  ;;  %v2590_v62 = vadd.f32 %v7147_v35, %v2357_v32  ;;  %v3083_v55 = vpack.c.bf16 %v2890_v16, %v2889_v29  ;;  %v2174_v16 = vld [vmem:[#allocation2 + $0x187] sm:$0xff]  ;;  %v1892_v8 = vadd.f32 %v8828_v25, %v1659_v3  ;;  %v2177_v25 = vld [vmem:[#allocation2 + $0x1af] sm:$0xff] }
 0x36f   : > { %v3621_v32 = vld [vmem:[#allocation3 + $0x27] sm:$0xff] }
 0x370   : > { %v2823_v47 = vadd.f32 %v7207_v12, %v2590_v62  ;;  %3175 = vmatmul.bf16.gmra.mxu2 %v3083_v55  ;;  %v2196_v12 = vpack.c.bf16 %v2175_v44, %v2174_v16  ;;  %v8830_v16 = vld [vmem:[#allocation43_spill] sm:$0xff] }
 0x371   : > { %v2125_v60 = vadd.f32 %v8830_v16, %v1892_v8  ;;  %v8832_v8 = vld [vmem:[#allocation8_spill] sm:$0xff] }
 0x372   : > { %v2859_v1 = vadd.f32 %v7401_v18, %v2823_v47 }
 0x373   : > { %v2282_v35 = vpop.f32.mrf.mxu3 }
 0x374   : > { %v2891_v29 = vmax.f32 %v2859_v1, 0.0  ;;  %v2358_v9 = vadd.f32 %v2282_v35, %v2124_v11  ;;  %v8829_v11 = vld [vmem:[#allocation7_spill] sm:$0xff] }
 0x375   : > { %v3390_v62 = vld [vmem:[#allocation3 + $0x29] sm:$0xff]  ;;  %v3391_v55 = vld [vmem:[#allocation3 + $0x31] sm:$0xff]  ;;  %v1660_v44 = vadd.f32 %v8829_v11, %v7100_v37 }
 0x376   : > { %v3622_v54 = vld [vmem:[#allocation3 + $0x2f] sm:$0xff]  ;;  %2924 = vst [vmem:[#allocation3 + $0x48] sm:$0xff] %v2891_v29  ;;  %v2591_v47 = vadd.f32 %v7159_v23, %v2358_v9  ;;  %v3421_v6 = vpack.c.bf16 %v3391_v55, %v3390_v62  ;;  %v7464_v55 = vpop.f32.mrf.mxu0 }
 0x377   : > { %v7451_v52 = vpack.c.bf16 %v3622_v54, %v3621_v32  ;;  %v7460_v32 = vpop.f32.mrf.mxu2  ;;  %v7466_v54 = vpop.f32.mrf.mxu1 }
 0x378   : > { %v2824_v1 = vadd.f32 %v7218_v41, %v2591_v47  ;;  %2324 = vmatmul.bf16.gmra.mxu3 %v2196_v12  ;;  %3513 = vmatmul.bf16.gmra.mxu0 %v3421_v6  ;;  %v8831_v41 = vld [vmem:[#allocation23_spill] sm:$0xff]  ;;  %v1661_v47 = vadd.f32 %v8832_v8, %v7109_v42  ;;  %v8834_v42 = vld [vmem:[#allocation25_spill] sm:$0xff] }
 0x379   : > { %3741 = vmatmul.bf16.vlgmr.msrb.gmra.mxu1 %v7451_v52  ;;  %v1893_v12 = vadd.f32 %v8831_v41, %v1660_v44  ;;  %v2176_v44 = vld [vmem:[#allocation2 + $0x1a7] sm:$0xff] }
 0x37a   : > { %v2860_v35 = vadd.f32 %v7401_v18, %v2824_v1 }
 0x37b   : > { %v2285_v5 = vpop.f32.mrf.mxu3 }
 0x37c   : > { %v2892_v23 = vmax.f32 %v2860_v35, 0.0  ;;  %v2359_v9 = vadd.f32 %v2285_v5, %v2125_v60  ;;  %v8833_v60 = vld [vmem:[#allocation46_spill] sm:$0xff]  ;;  %v2197_v35 = vpack.c.bf16 %v2177_v25, %v2176_v44 }
 0x37d   : > { %v2126_v6 = vadd.f32 %v8833_v60, %v1893_v12  ;;  %v6094_v12 = vld [vmem:[%s8711_s5 + $0x28] sm:$0xff] }
 0x37e   : > { %2925 = vst [vmem:[#allocation3 + $0x50] sm:$0xff] %v2892_v23  ;;  %v2592_v3 = vadd.f32 %v7168_v45, %v2359_v9  ;;  %v3084_v62 = vpack.c.bf16 %v2892_v23, %v2891_v29  ;;  %v3623_v29 = vld [vmem:[#allocation3 + $0x47] sm:$0xff]  ;;  %3301 = vmatpush.bf16.msrb.mxu3 %v6094_v12 }
 0x380   : > { %v2825_v37 = vadd.f32 %v7227_v48, %v2592_v3  ;;  %3180 = vmatmul.bf16.gmra.mxu2 %v3084_v62  ;;  %v1894_v62 = vadd.f32 %v8834_v42, %v1661_v47  ;;  %v2178_v42 = vld [vmem:[#allocation2 + $0x1c7] sm:$0xff] }
 0x382   : > { %v2861_v5 = vadd.f32 %v7401_v18, %v2825_v37  ;;  %v7480_v37 = vpop.f32.mrf.mxu2  ;;  %v2127_v25 = vadd.f32 %v7048_v63, %v1894_v62  ;;  %v2179_v62 = vld [vmem:[#allocation2 + $0x1cf] sm:$0xff] }
 0x383   : > { %v2287_v1 = vpop.f32.mrf.mxu3 }
 0x384   : > { %v2893_v45 = vmax.f32 %v2861_v5, 0.0  ;;  %v2360_v11 = vadd.f32 %v2287_v1, %v2126_v6  ;;  %v7483_v5 = vpop.f32.mrf.mxu0  ;;  %v7488_v6 = vpop.f32.mrf.mxu1 }
 0x385   : > { %v3392_v16 = vld [vmem:[#allocation3 + $0x49] sm:$0xff]  ;;  %v3393_v23 = vld [vmem:[#allocation3 + $0x51] sm:$0xff] }
 0x386   : > { %v3624_v9 = vld [vmem:[#allocation3 + $0x4f] sm:$0xff]  ;;  %2926 = vst [vmem:[#allocation3 + $0x68] sm:$0xff] %v2893_v45  ;;  %v2593_v48 = vadd.f32 %v7181_v26, %v2360_v11  ;;  %v3422_v3 = vpack.c.bf16 %v3393_v23, %v3392_v16 }
 0x387   : > { %v7474_v41 = vpack.c.bf16 %v3624_v9, %v3623_v29  ;;  %v8835_v26 = vld [vmem:[#allocation9_spill] sm:$0xff]  ;;  %v8836_v29 = vld [vmem:[#allocation27_spill] sm:$0xff]  ;;  %v8837_v9 = vld [vmem:[#allocation10_spill] sm:$0xff] }
 0x388   : > { %v2826_v8 = vadd.f32 %v7237_v40, %v2593_v48  ;;  %2329 = vmatmul.bf16.gmra.mxu3 %v2197_v35  ;;  %3518 = vmatmul.bf16.gmra.mxu0 %v3422_v3  ;;  %v1662_v60 = vadd.f32 %v8835_v26, %v7119_v14  ;;  %v6126_v23 = vld [vmem:[%s8711_s5 + $0x128] sm:$0xff]  ;;  %v1663_v63 = vadd.f32 %v8837_v9, %v7128_v50 }
 0x389   : > { %3746 = vmatmul.bf16.gmra.mxu1 %v7474_v41  ;;  %3968 = vmatpush.bf16.msrb.mxu2 %v6126_v23 }
 0x38a   : > { %v2862_v47 = vadd.f32 %v7401_v18, %v2826_v8  ;;  %v1895_v35 = vadd.f32 %v8836_v29, %v1662_v60  ;;  %v7500_v48 = vpop.f32.mrf.mxu2 }
 0x38b   : > { %v2290_v1 = vpop.f32.mrf.mxu3 }
 0x38c   : > { %v2894_v11 = vmax.f32 %v2862_v47, 0.0  ;;  %v2361_v44 = vadd.f32 %v2290_v1, %v2127_v25  ;;  %v7506_v8 = vpop.f32.mrf.mxu1  ;;  %v2198_v47 = vpack.c.bf16 %v2179_v62, %v2178_v42 }
 0x38d   : > { %v3625_v60 = vld [vmem:[#allocation3 + $0x67] sm:$0xff] }
 0x38e   : > { %2927 = vst [vmem:[#allocation3 + $0x70] sm:$0xff] %v2894_v11  ;;  %v2594_v40 = vadd.f32 %v7202_v0, %v2361_v44  ;;  %v3085_v16 = vpack.c.bf16 %v2894_v11, %v2893_v45  ;;  %v2128_v0 = vadd.f32 %v7065_v21, %v1895_v35  ;;  %v7504_v45 = vpop.f32.mrf.mxu0  ;;  %v8838_v21 = vld [vmem:[#allocation28_spill] sm:$0xff] }
 0x38f   : > { %v1896_v29 = vadd.f32 %v8838_v21, %v1663_v63 }
 0x390   : > { %v2827_v14 = vadd.f32 %v7244_v56, %v2594_v40  ;;  %3185 = vmatmul.bf16.gmra.mxu2 %v3085_v16  ;;  %v8839_v16 = vld [vmem:[#allocation11_spill] sm:$0xff] }
 0x391   : > { %v1664_v23 = vadd.f32 %v8839_v16, %v7138_v31  ;;  %v2129_v9 = vadd.f32 %v7220_v17, %v1896_v29  ;;  %v8841_v17 = vld [vmem:[#allocation12_spill] sm:$0xff] }
 0x392   : > { %v2863_v3 = vadd.f32 %v7401_v18, %v2827_v14 }
 0x393   : > { %v2292_v12 = vpop.f32.mrf.mxu3 }
 0x394   : > { %v2895_v26 = vmax.f32 %v2863_v3, 0.0  ;;  %v2362_v56 = vadd.f32 %v2292_v12, %v2128_v0  ;;  %v7522_v63 = vpop.f32.mrf.mxu1  ;;  %v8840_v12 = vld [vmem:[#allocation30_spill] sm:$0xff] }
 0x395   : > { %v3394_v25 = vld [vmem:[#allocation3 + $0x69] sm:$0xff]  ;;  %v3395_v1 = vld [vmem:[#allocation3 + $0x71] sm:$0xff] }
 0x396   : > { %v3626_v50 = vld [vmem:[#allocation3 + $0x6f] sm:$0xff]  ;;  %2928 = vst [vmem:[#allocation3 + $0x88] sm:$0xff] %v2895_v26  ;;  %v2595_v11 = vadd.f32 %v7209_v22, %v2362_v56  ;;  %v3423_v44 = vpack.c.bf16 %v3395_v1, %v3394_v25  ;;  %v7518_v22 = vpop.f32.mrf.mxu2  ;;  %v7520_v62 = vpop.f32.mrf.mxu0  ;;  %v1897_v56 = vadd.f32 %v8840_v12, %v1664_v23 }
 0x397   : > { %v7509_v40 = vpack.c.bf16 %v3626_v50, %v3625_v60  ;;  %v2180_v50 = vld [vmem:[#allocation2 + $0x1e7] sm:$0xff] }
 0x398   : > { %v2828_v35 = vadd.f32 %v7255_v7, %v2595_v11  ;;  %2334 = vmatmul.bf16.gmra.mxu3 %v2198_v47  ;;  %3523 = vmatmul.bf16.gmra.mxu0 %v3423_v44  ;;  %v1665_v47 = vadd.f32 %v8841_v17, %v7145_v46  ;;  %v2130_v1 = vadd.f32 %v7230_v39, %v1897_v56  ;;  %v2181_v11 = vld [vmem:[#allocation2 + $0x1ef] sm:$0xff] }
 0x399   : > { %3751 = vmatmul.bf16.gmra.mxu1 %v7509_v40 }
 0x39a   : > { %v2864_v14 = vadd.f32 %v7401_v18, %v2828_v35 }
 0x39b   : > { %v2295_v3 = vpop.f32.mrf.mxu3 }
 0x39c   : > { %v2896_v0 = vmax.f32 %v2864_v14, 0.0  ;;  %v2363_v42 = vadd.f32 %v2295_v3, %v2129_v9  ;;  %v8842_v3 = vld [vmem:[#allocation33_spill] sm:$0xff] }
 0x39d   : > { %v3627_v35 = vld [vmem:[#allocation3 + $0x87] sm:$0xff]  ;;  %v1898_v39 = vadd.f32 %v8842_v3, %v1665_v47  ;;  %v2183_v3 = vld [vmem:[#allocation2 + $0x20f] sm:$0xff] }
 0x39e   : > { %2929 = vst [vmem:[#allocation3 + $0x90] sm:$0xff] %v2896_v0  ;;  %v2596_v7 = vadd.f32 %v7222_v20, %v2363_v42  ;;  %v3086_v60 = vpack.c.bf16 %v2896_v0, %v2895_v26  ;;  %v2199_v20 = vpack.c.bf16 %v2181_v11, %v2180_v50  ;;  %v7531_v14 = vpop.f32.mrf.mxu2  ;;  %v6093_v0 = vld [vmem:[%s8711_s5 + $0x20] sm:$0xff]  ;;  %v7540_v42 = vpop.f32.mrf.mxu0  ;;  %v8844_v50 = vld [vmem:[#allocation35_spill] sm:$0xff] }
 0x39f   : > { %3302 = vmatpush.bf16.msrb.mxu3 %v6093_v0 }
 0x3a0   : > { %v2829_v31 = vadd.f32 %v7264_v53, %v2596_v7  ;;  %3190 = vmatmul.bf16.gmra.mxu2 %v3086_v60  ;;  %v7542_v7 = vpop.f32.mrf.mxu1 }
 0x3a2   : > { %v2865_v25 = vadd.f32 %v7401_v18, %v2829_v31  ;;  %v2131_v31 = vadd.f32 %v7242_v10, %v1898_v39 }
 0x3a3   : > { %v2297_v44 = vpop.f32.mrf.mxu3 }
 0x3a4   : > { %v2897_v21 = vmax.f32 %v2865_v25, 0.0  ;;  %v2364_v29 = vadd.f32 %v2297_v44, %v2130_v1  ;;  %v6125_v44 = vld [vmem:[%s8711_s5 + $0x120] sm:$0xff] }
 0x3a5   : > { %v3396_v16 = vld [vmem:[#allocation3 + $0x89] sm:$0xff]  ;;  %v3397_v23 = vld [vmem:[#allocation3 + $0x91] sm:$0xff]  ;;  %3969 = vmatpush.bf16.msrb.mxu2 %v6125_v44 }
 0x3a6   : > { %v3628_v26 = vld [vmem:[#allocation3 + $0x8f] sm:$0xff]  ;;  %2930 = vst [vmem:[#allocation3 + $0xa8] sm:$0xff] %v2897_v21  ;;  %v2597_v53 = vadd.f32 %v7235_v4, %v2364_v29  ;;  %v3424_v46 = vpack.c.bf16 %v3397_v23, %v3396_v16  ;;  %v7558_v29 = vpop.f32.mrf.mxu2 }
 0x3a7   : > { %v7534_v9 = vpack.c.bf16 %v3628_v26, %v3627_v35  ;;  %v8843_v4 = vld [vmem:[#allocation13_spill] sm:$0xff]  ;;  %v7561_v35 = vpop.f32.mrf.mxu0 }
 0x3a8   : > { %v2830_v12 = vadd.f32 %v7274_v58, %v2597_v53  ;;  %2339 = vmatmul.bf16.gmra.mxu3 %v2199_v20  ;;  %3528 = vmatmul.bf16.gmra.mxu0 %v3424_v46  ;;  %v1666_v56 = vadd.f32 %v8843_v4, %v7155_v19  ;;  %v6092_v19 = vld [vmem:[%s8711_s5 + $0x18] sm:$0xff]  ;;  %v8846_v20 = vld [vmem:[#allocation14_spill] sm:$0xff]  ;;  %v7565_v16 = vpop.f32.mrf.mxu1  ;;  %v8847_v26 = vld [vmem:[#allocation81_spill] sm:$0xff] }
 0x3a9   : > { %3756 = vmatmul.bf16.gmra.mxu1 %v7534_v9  ;;  %3303 = vmatpush.bf16.msrb.mxu3 %v6092_v19  ;;  %v2182_v46 = vld [vmem:[#allocation2 + $0x207] sm:$0xff] }
 0x3aa   : > { %v2866_v60 = vadd.f32 %v7401_v18, %v2830_v12  ;;  %v1899_v58 = vadd.f32 %v8844_v50, %v1666_v56  ;;  %v2200_v4 = vpack.c.bf16 %v2183_v3, %v2182_v46  ;;  %v8849_v50 = vld [vmem:[#allocation38_spill] sm:$0xff]  ;;  %v6090_v19 = vld [vmem:[%s8711_s5 + $0x8] sm:$0xff] }
 0x3ab   : > { %v2300_v17 = vpop.f32.mrf.mxu3 }
 0x3ac   : > { %v2898_v47 = vmax.f32 %v2866_v60, 0.0  ;;  %v2365_v25 = vadd.f32 %v2300_v17, %v2131_v31  ;;  %v2132_v53 = vadd.f32 %v8847_v26, %v1899_v58  ;;  %v8848_v17 = vld [vmem:[#allocation82_spill] sm:$0xff] }
 0x3ad   : > { %v6091_v58 = vld [vmem:[%s8711_s5 + $0x10] sm:$0xff] }
 0x3ae   : > { %2931 = vst [vmem:[#allocation3 + $0xb0] sm:$0xff] %v2898_v47  ;;  %v2598_v1 = vadd.f32 %v7246_v61, %v2365_v25  ;;  %v3087_v11 = vpack.c.bf16 %v2898_v47, %v2897_v21  ;;  %v8845_v61 = vld [vmem:[#allocation67_spill] sm:$0xff]  ;;  %3304 = vmatpush.bf16.msrb.mxu3 %v6091_v58  ;;  %v8855_v58 = vld [vmem:[#allocation85_spill] sm:$0xff] }
 0x3af   : > { %v1667_v21 = vadd.f32 %v8846_v20, %v8845_v61  ;;  %v8850_v61 = vld [vmem:[#allocation69_spill] sm:$0xff]  ;;  %v8851_v20 = vld [vmem:[#allocation15_spill] sm:$0xff] }
 0x3b0   : > { %v2831_v10 = vadd.f32 %v7283_v2, %v2598_v1  ;;  %3195 = vmatmul.bf16.gmra.mxu2 %v3087_v11  ;;  %v3629_v2 = vld [vmem:[#allocation3 + $0xa7] sm:$0xff]  ;;  %v7589_v46 = vpop.f32.mrf.mxu1 }
 0x3b1   : > { %v1900_v11 = vadd.f32 %v8849_v50, %v1667_v21  ;;  %v1668_v21 = vadd.f32 %v8851_v20, %v8850_v61 }
 0x3b2   : > { %v2867_v23 = vadd.f32 %v7401_v18, %v2831_v10  ;;  %v7581_v10 = vpop.f32.mrf.mxu2  ;;  %3305 = vmatpush.bf16.msrb.mxu3 %v6090_v19 }
 0x3b3   : > { %v2302_v39 = vpop.f32.mrf.mxu3  ;;  %v2133_v26 = vadd.f32 %v7267_v34, %v1900_v11 }
 0x3b4   : > { %v2899_v0 = vmax.f32 %v2867_v23, 0.0  ;;  %v2366_v12 = vadd.f32 %v2302_v39, %v2132_v53  ;;  %v7587_v53 = vpop.f32.mrf.mxu0 }
 0x3b5   : > { %v3398_v56 = vld [vmem:[#allocation3 + $0xa9] sm:$0xff]  ;;  %v3399_v60 = vld [vmem:[#allocation3 + $0xb1] sm:$0xff] }
 0x3b6   : > { %v3630_v31 = vld [vmem:[#allocation3 + $0xaf] sm:$0xff]  ;;  %2932 = vst [vmem:[#allocation3 + $0xc8] sm:$0xff] %v2899_v0  ;;  %v2599_v47 = vadd.f32 %v8848_v17, %v2366_v12  ;;  %v3425_v25 = vpack.c.bf16 %v3399_v60, %v3398_v56  ;;  %v6089_v60 = vld [vmem:[%s8711_s5] sm:$0xff] }
 0x3b7   : > { %v7570_v1 = vpack.c.bf16 %v3630_v31, %v3629_v2  ;;  %v8852_v2 = vld [vmem:[#allocation39_spill] sm:$0xff]  ;;  %v2184_v31 = vld [vmem:[#allocation2 + $0x227] sm:$0xff]  ;;  %v2185_v17 = vld [vmem:[#allocation2 + $0x22f] sm:$0xff]  ;;  %3306 = vmatpush.bf16.msrb.mxu3 %v6089_v60 }
 0x3b8   : > { %v2832_v44 = vadd.f32 %v7294_v28, %v2599_v47  ;;  %2344 = vmatmul.bf16.gmra.mxu3 %v2200_v4  ;;  %3533 = vmatmul.bf16.gmra.mxu0 %v3425_v25  ;;  %v1901_v4 = vadd.f32 %v8852_v2, %v1668_v21  ;;  %v8853_v47 = vld [vmem:[#allocation71_spill] sm:$0xff]  ;;  %v8854_v25 = vld [vmem:[#allocation17_spill] sm:$0xff]  ;;  %v2201_v20 = vpack.c.bf16 %v2185_v17, %v2184_v31  ;;  %v8859_v17 = vld [vmem:[#allocation20_spill] sm:$0xff] }
 0x3b9   : > { %3761 = vmatmul.bf16.gmra.mxu1 %v7570_v1  ;;  %v1669_v50 = vadd.f32 %v8854_v25, %v8853_v47  ;;  %v8858_v31 = vld [vmem:[#allocation73_spill] sm:$0xff] }
 0x3ba   : > { %v2868_v23 = vadd.f32 %v7401_v18, %v2832_v44  ;;  %v7601_v19 = vpop.f32.mrf.mxu2  ;;  %v1670_v47 = vadd.f32 %v8859_v17, %v8858_v31  ;;  %v8865_v31 = vld [vmem:[#allocation22_spill] sm:$0xff] }
 0x3bb   : > { %v2305_v28 = vpop.f32.mrf.mxu3 }
 0x3bc   : > { %v2900_v3 = vmax.f32 %v2868_v23, 0.0  ;;  %v2367_v39 = vadd.f32 %v2305_v28, %v2133_v26  ;;  %v7603_v23 = vpop.f32.mrf.mxu0 }
 0x3bd   : > { %v3631_v21 = vld [vmem:[#allocation3 + $0xc7] sm:$0xff] }
 0x3be   : > { %2933 = vst [vmem:[#allocation3 + $0xd0] sm:$0xff] %v2900_v3  ;;  %v2600_v12 = vadd.f32 %v7269_v51, %v2367_v39  ;;  %v3088_v56 = vpack.c.bf16 %v2900_v3, %v2899_v0  ;;  %v2134_v51 = vadd.f32 %v8855_v58, %v1901_v4  ;;  %v7605_v3 = vpop.f32.mrf.mxu1  ;;  %v8856_v39 = vld [vmem:[#allocation87_spill] sm:$0xff]  ;;  %v8857_v4 = vld [vmem:[#allocation42_spill] sm:$0xff] }
 0x3bf   : > { %v1902_v60 = vadd.f32 %v8857_v4, %v1669_v50  ;;  %v2986_v4 = vld [vmem:[#allocation3 + $0x7] sm:$0xff] }
 0x3c0   : > { %v2833_v34 = vadd.f32 %v7307_v49, %v2600_v12  ;;  %3200 = vmatmul.bf16.gmra.mxu2 %v3088_v56 }
 0x3c2   : > { %v2869_v11 = vadd.f32 %v7401_v18, %v2833_v34 }
 0x3c3   : > { %v2307_v44 = vpop.f32.mrf.mxu3 }
 0x3c4   : > { %v2901_v0 = vmax.f32 %v2869_v11, 0.0  ;;  %v2368_v61 = vadd.f32 %v2307_v44, %v2134_v51  ;;  %v8860_v11 = vld [vmem:[#allocation89_spill] sm:$0xff] }
 0x3c5   : > { %v3400_v49 = vld [vmem:[#allocation3 + $0xc9] sm:$0xff]  ;;  %v3401_v26 = vld [vmem:[#allocation3 + $0xd1] sm:$0xff]  ;;  %v2135_v58 = vadd.f32 %v8860_v11, %v1902_v60 }
 0x3c6   : > { %v3632_v28 = vld [vmem:[#allocation3 + $0xcf] sm:$0xff]  ;;  %2934 = vst [vmem:[#allocation3 + $0xe8] sm:$0xff] %v2901_v0  ;;  %v2601_v12 = vadd.f32 %v8856_v39, %v2368_v61  ;;  %v3426_v2 = vpack.c.bf16 %v3401_v26, %v3400_v49  ;;  %v7619_v49 = vpop.f32.mrf.mxu2  ;;  %v6124_v39 = vld [vmem:[%s8711_s5 + $0x118] sm:$0xff] }
 0x3c7   : > { %v7608_v56 = vpack.c.bf16 %v3632_v28, %v3631_v21  ;;  %v7617_v21 = vpop.f32.mrf.mxu0  ;;  %v2987_v60 = vld [vmem:[#allocation3 + $0xf] sm:$0xff]  ;;  %3970 = vmatpush.bf16.msrb.mxu2 %v6124_v39 }
 0x3c8   : > { %v2834_v34 = vadd.f32 %v7326_v27, %v2601_v12  ;;  %2349 = vmatmul.bf16.gmra.mxu3 %v2201_v20  ;;  %3538 = vmatmul.bf16.gmra.mxu0 %v3426_v2  ;;  %8861 = vst [vmem:[#allocation5_spill] sm:$0xff] %v7617_v21  ;;  %v8862_v27 = vld [vmem:[#allocation90_spill] sm:$0xff]  ;;  %v8863_v20 = vld [vmem:[#allocation45_spill] sm:$0xff]  ;;  %v7626_v12 = vpop.f32.mrf.mxu1  ;;  %v8867_v21 = vld [vmem:[#allocation48_spill] sm:$0xff] }
 0x3c9   : > { %3766 = vmatmul.bf16.gmra.mxu1 %v7608_v56  ;;  %v1903_v26 = vadd.f32 %v8863_v20, %v1670_v47 }
 0x3ca   : > { %v2870_v25 = vadd.f32 %v7401_v18, %v2834_v34  ;;  %v8864_v34 = vld [vmem:[#allocation74_spill] sm:$0xff] }
 0x3cb   : > { %v2310_v51 = vpop.f32.mrf.mxu3  ;;  %v1671_v17 = vadd.f32 %v8865_v31, %v8864_v34  ;;  %v2136_v47 = vadd.f32 %v7312_v43, %v1903_v26  ;;  %v8869_v43 = vld [vmem:[#allocation100_spill] sm:$0xff] }
 0x3cc   : > { %v2902_v44 = vmax.f32 %v2870_v25, 0.0  ;;  %v2369_v61 = vadd.f32 %v2310_v51, %v2135_v58  ;;  %v3018_v51 = vpack.c.bf16 %v2987_v60, %v2986_v4  ;;  %v8870_v4 = vld [vmem:[#allocation75_spill] sm:$0xff]  ;;  %v8871_v60 = vld [vmem:[#allocation24_spill] sm:$0xff] }
 0x3cd   : > { %v1904_v34 = vadd.f32 %v8867_v21, %v1671_v17 }
 0x3ce   : > { %2935 = vst [vmem:[#allocation3 + $0xf0] sm:$0xff] %v2902_v44  ;;  %v2602_v50 = vadd.f32 %v8862_v27, %v2369_v61  ;;  %v3089_v28 = vpack.c.bf16 %v2902_v44, %v2901_v0  ;;  %v3633_v44 = vld [vmem:[#allocation3 + $0xe7] sm:$0xff] }
 0x3cf   : > { %v7637_v31 = vpop.f32.mrf.mxu0 }
 0x3d0   : > { %v2835_v2 = vadd.f32 %v7338_v24, %v2602_v50  ;;  %3205 = vmatmul.bf16.gmra.mxu2 %v3089_v28  ;;  %v8866_v24 = vld [vmem:[#allocation92_spill] sm:$0xff]  ;;  %8868 = vst [vmem:[#allocation36_spill] sm:$0xff] %v7637_v31 }
 0x3d2   : > { %v2871_v25 = vadd.f32 %v7401_v18, %v2835_v2  ;;  %v7639_v2 = vpop.f32.mrf.mxu2 }
 0x3d3   : > { %v2312_v0 = vpop.f32.mrf.mxu3 }
 0x3d4   : > { %v2903_v11 = vmax.f32 %v2871_v25, 0.0  ;;  %v2370_v58 = vadd.f32 %v2312_v0, %v2136_v47  ;;  %v1672_v25 = vadd.f32 %v8871_v60, %v8870_v4  ;;  %v7645_v47 = vpop.f32.mrf.mxu1  ;;  %v8876_v60 = vld [vmem:[#allocation76_spill] sm:$0xff] }
 0x3d5   : > { %v3402_v61 = vld [vmem:[#allocation3 + $0xe9] sm:$0xff]  ;;  %v3403_v27 = vld [vmem:[#allocation3 + $0xf1] sm:$0xff] }
 0x3d6   : > { %v3634_v20 = vld [vmem:[#allocation3 + $0xef] sm:$0xff]  ;;  %2936 = vst [vmem:[#allocation3 + $0x108] sm:$0xff] %v2903_v11  ;;  %v2603_v50 = vadd.f32 %v8866_v24, %v2370_v58  ;;  %v3427_v28 = vpack.c.bf16 %v3403_v27, %v3402_v61  ;;  %v8873_v27 = vld [vmem:[#allocation95_spill] sm:$0xff] }
 0x3d7   : > { %v7634_v39 = vpack.c.bf16 %v3634_v20, %v3633_v44  ;;  %v8872_v58 = vld [vmem:[#allocation94_spill] sm:$0xff]  ;;  %v7654_v4 = vpop.f32.mrf.mxu0 }
 0x3d8   : > { %v2836_v26 = vadd.f32 %v8869_v43, %v2603_v50  ;;  %3307 = vmatmul.bf16.vlgmr.msrb.gmra.mxu3 %v3018_v51  ;;  %3543 = vmatmul.bf16.gmra.mxu0 %v3427_v28  ;;  %v2137_v44 = vadd.f32 %v8872_v58, %v1904_v34  ;;  %v8874_v24 = vld [vmem:[#allocation50_spill] sm:$0xff]  ;;  %8875 = vst [vmem:[#allocation19_spill] sm:$0xff] %v7654_v4 }
 0x3d9   : > { %3771 = vmatmul.bf16.gmra.mxu1 %v7634_v39  ;;  %v1905_v51 = vadd.f32 %v8874_v24, %v1672_v25 }
 0x3da   : > { %v2872_v0 = vadd.f32 %v7401_v18, %v2836_v26  ;;  %v7652_v43 = vpop.f32.mrf.mxu2  ;;  %v8877_v26 = vld [vmem:[#allocation26_spill] sm:$0xff] }
 0x3db   : > { %v2315_v21 = vpop.f32.mrf.mxu3  ;;  %v1673_v31 = vadd.f32 %v8877_v26, %v8876_v60  ;;  %v8880_v60 = vld [vmem:[#allocation51_spill] sm:$0xff] }
 0x3dc   : > { %v2904_v17 = vmax.f32 %v2872_v0, 0.0  ;;  %v2371_v61 = vadd.f32 %v2315_v21, %v2137_v44  ;;  %v8878_v0 = vld [vmem:[#allocation97_spill] sm:$0xff]  ;;  %v7660_v44 = vpop.f32.mrf.mxu1 }
 0x3dd   : > { %v2138_v58 = vadd.f32 %v8878_v0, %v1905_v51  ;;  %v1906_v26 = vadd.f32 %v8880_v60, %v1673_v31  ;;  %v8881_v51 = vld [vmem:[#allocation77_spill] sm:$0xff]  ;;  %v8884_v60 = vld [vmem:[#allocation78_spill] sm:$0xff] }
 0x3de   : > { %2937 = vst [vmem:[#allocation3 + $0x110] sm:$0xff] %v2904_v17  ;;  %v2604_v20 = vadd.f32 %v8873_v27, %v2371_v61  ;;  %v3090_v50 = vpack.c.bf16 %v2904_v17, %v2903_v11  ;;  %v3635_v11 = vld [vmem:[#allocation3 + $0x107] sm:$0xff] }
 0x3e0   : > { %v2837_v28 = vadd.f32 %v7389_v15, %v2604_v20  ;;  %3210 = vmatmul.bf16.gmra.mxu2 %v3090_v50  ;;  %v8879_v20 = vld [vmem:[#allocation99_spill] sm:$0xff] }
 0x3e2   : > { %v2873_v34 = vadd.f32 %v7401_v18, %v2837_v28 }
 0x3e3   : > { %v2317_v21 = vpop.f32.mrf.mxu3 }
 0x3e4   : > { %v2905_v61 = vmax.f32 %v2873_v34, 0.0  ;;  %v2372_v25 = vadd.f32 %v2317_v21, %v2138_v58  ;;  %v8882_v34 = vld [vmem:[#allocation29_spill] sm:$0xff]  ;;  %v2139_v21 = vadd.f32 %v7381_v57, %v1906_v26  ;;  %v8885_v26 = vld [vmem:[#allocation32_spill] sm:$0xff] }
 0x3e5   : > { %v3404_v17 = vld [vmem:[#allocation3 + $0x109] sm:$0xff]  ;;  %v3405_v15 = vld [vmem:[#allocation3 + $0x111] sm:$0xff]  ;;  %v1674_v0 = vadd.f32 %v8882_v34, %v8881_v51 }
 0x3e6   : > { %v3636_v27 = vld [vmem:[#allocation3 + $0x10f] sm:$0xff]  ;;  %2938 = vst [vmem:[#allocation3 + $0x128] sm:$0xff] %v2905_v61  ;;  %v2605_v24 = vadd.f32 %v8879_v20, %v2372_v25  ;;  %v3428_v50 = vpack.c.bf16 %v3405_v15, %v3404_v17  ;;  %v7673_v25 = vpop.f32.mrf.mxu2  ;;  %v7675_v17 = vpop.f32.mrf.mxu0 }
 0x3e7   : > { %v7663_v4 = vpack.c.bf16 %v3636_v27, %v3635_v11  ;;  %v8883_v27 = vld [vmem:[#allocation53_spill] sm:$0xff] }
 0x3e8   : > { %v2838_v28 = vadd.f32 %v7415_v13, %v2605_v24  ;;  %3312 = vmatmul.bf16.gmra.mxu3 %v7451_v52  ;;  %3548 = vmatmul.bf16.gmra.mxu0 %v3428_v50  ;;  %v7677_v13 = vpop.f32.mrf.mxu1  ;;  %v1907_v20 = vadd.f32 %v8883_v27, %v1674_v0  ;;  %v6123_v50 = vld [vmem:[%s8711_s5 + $0x110] sm:$0xff] }
 0x3e9   : > { %3776 = vmatmul.bf16.gmra.mxu1 %v7663_v4  ;;  %3971 = vmatpush.bf16.msrb.mxu2 %v6123_v50 }
 0x3ea   : > { %v2874_v58 = vadd.f32 %v7401_v18, %v2838_v28  ;;  %v1675_v28 = vadd.f32 %v8885_v26, %v8884_v60  ;;  %v2140_v34 = vadd.f32 %v7407_v33, %v1907_v20  ;;  %v8888_v33 = vld [vmem:[#allocation55_spill] sm:$0xff] }
 0x3eb   : > { %v2320_v11 = vpop.f32.mrf.mxu3  ;;  %v8889_v26 = vld [vmem:[#allocation79_spill] sm:$0xff] }
 0x3ec   : > { %v2906_v31 = vmax.f32 %v2874_v58, 0.0  ;;  %v2373_v15 = vadd.f32 %v2320_v11, %v2139_v21  ;;  %v1908_v20 = vadd.f32 %v8888_v33, %v1675_v28 }
 0x3ed   : > { %v3637_v21 = vld [vmem:[#allocation3 + $0x127] sm:$0xff] }
 0x3ee   : > { %2939 = vst [vmem:[#allocation3 + $0x130] sm:$0xff] %v2906_v31  ;;  %v2606_v52 = vadd.f32 %v7387_v59, %v2373_v15  ;;  %v3091_v24 = vpack.c.bf16 %v2906_v31, %v2905_v61 }
 0x3f0   : > { %v2839_v57 = vadd.f32 %v7432_v30, %v2606_v52  ;;  %3215 = vmatmul.bf16.gmra.mxu2 %v3091_v24  ;;  %v8887_v52 = vld [vmem:[#allocation31_spill] sm:$0xff] }
 0x3f2   : > { %v2875_v51 = vadd.f32 %v7401_v18, %v2839_v57 }
 0x3f3   : > { %v2322_v58 = vpop.f32.mrf.mxu3  ;;  %v7689_v59 = vpop.f32.mrf.mxu2 }
 0x3f4   : > { %v2907_v0 = vmax.f32 %v2875_v51, 0.0  ;;  %v2374_v61 = vadd.f32 %v2322_v58, %v2140_v34  ;;  %v8890_v51 = vld [vmem:[#allocation34_spill] sm:$0xff] }
 0x3f5   : > { %v7691_v11 = vpop.f32.mrf.mxu0  ;;  %v3406_v31 = vld [vmem:[#allocation3 + $0x129] sm:$0xff]  ;;  %v3407_v15 = vld [vmem:[#allocation3 + $0x131] sm:$0xff]  ;;  %v1676_v34 = vadd.f32 %v8890_v51, %v8889_v26 }
 0x3f6   : > { %8886 = vst [vmem:[#allocation6_spill] sm:$0xff] %v7691_v11  ;;  %v3638_v30 = vld [vmem:[#allocation3 + $0x12f] sm:$0xff]  ;;  %v2607_v27 = vadd.f32 %v8887_v52, %v2374_v61  ;;  %v7694_v24 = vpop.f32.mrf.mxu1  ;;  %v3429_v50 = vpack.c.bf16 %v3407_v15, %v3406_v31  ;;  %v2141_v61 = vadd.f32 %v7426_v38, %v1908_v20 }
 0x3f7   : > { %2940 = vst [vmem:[#allocation3 + $0x148] sm:$0xff] %v2907_v0  ;;  %v7696_v57 = vpack.c.bf16 %v3638_v30, %v3637_v21  ;;  %v8896_v38 = vld [vmem:[#allocation37_spill] sm:$0xff] }
 0x3f8   : > { %v2840_v60 = vadd.f32 %v7448_v36, %v2607_v27  ;;  %3317 = vmatmul.bf16.gmra.mxu3 %v7474_v41  ;;  %3553 = vmatmul.bf16.gmra.mxu0 %v3429_v50  ;;  %v8893_v36 = vld [vmem:[#allocation16_spill] sm:$0xff]  ;;  %v8894_v27 = vld [vmem:[#allocation57_spill] sm:$0xff] }
 0x3f9   : > { %3781 = vmatmul.bf16.gmra.mxu1 %v7696_v57  ;;  %v1909_v50 = vadd.f32 %v8894_v27, %v1676_v34 }
 0x3fa   : > { %v2876_v58 = vadd.f32 %v7401_v18, %v2840_v60  ;;  %v8895_v60 = vld [vmem:[#allocation80_spill] sm:$0xff] }
 0x3fb   : > { %v2325_v52 = vpop.f32.mrf.mxu3  ;;  %v7706_v31 = vpop.f32.mrf.mxu2  ;;  %v1677_v20 = vadd.f32 %v8896_v38, %v8895_v60 }
 0x3fc   : > { %8891 = vst [vmem:[#allocation40_spill] sm:$0xff] %v7706_v31  ;;  %v2908_v21 = vmax.f32 %v2876_v58, 0.0  ;;  %v2375_v15 = vadd.f32 %v2325_v52, %v2141_v61  ;;  %v8897_v58 = vld [vmem:[#allocation4_spill] sm:$0xff] }
 0x3fd   : > { %v7708_v28 = vpop.f32.mrf.mxu0  ;;  %v2142_v61 = vadd.f32 %v8897_v58, %v1909_v50  ;;  %v8899_v50 = vld [vmem:[#allocation59_spill] sm:$0xff]  ;;  %v8901_v58 = vld [vmem:[#allocation41_spill] sm:$0xff] }
 0x3fe   : > { %8892 = vst [vmem:[#allocation21_spill] sm:$0xff] %v7708_v28  ;;  %v2608_v41 = vadd.f32 %v8893_v36, %v2375_v15  ;;  %v7711_v30 = vpop.f32.mrf.mxu1  ;;  %v3092_v33 = vpack.c.bf16 %v2908_v21, %v2907_v0  ;;  %v3639_v36 = vld [vmem:[#allocation3 + $0x147] sm:$0xff]  ;;  %v1910_v60 = vadd.f32 %v8899_v50, %v1677_v20 }
 0x3ff   : > { %2941 = vst [vmem:[#allocation3 + $0x150] sm:$0xff] %v2908_v21  ;;  %v6122_v50 = vld [vmem:[%s8711_s5 + $0x108] sm:$0xff] }
 0x400   : > { %v2841_v26 = vadd.f32 %v7466_v54, %v2608_v41  ;;  %3220 = vmatmul.bf16.gmra.mxu2 %v3092_v33  ;;  %v8898_v54 = vld [vmem:[#allocation18_spill] sm:$0xff] }
 0x401   : > { %3972 = vmatpush.bf16.msrb.mxu2 %v6122_v50 }
 0x402   : > { %v2877_v51 = vadd.f32 %v7401_v18, %v2841_v26 }
 0x403   : > { %v2327_v52 = vpop.f32.mrf.mxu3  ;;  %v7719_v28 = vpop.f32.mrf.mxu2 }
 0x404   : > { %v2909_v31 = vmax.f32 %v2877_v51, 0.0  ;;  %v2376_v15 = vadd.f32 %v2327_v52, %v2142_v61  ;;  %v8900_v51 = vld [vmem:[#allocation83_spill] sm:$0xff] }
 0x405   : > { %v7721_v11 = vpop.f32.mrf.mxu0  ;;  %v1678_v61 = vadd.f32 %v8901_v58, %v8900_v51 }
 0x406   : > { %v3408_v34 = vld [vmem:[#allocation3 + $0x149] sm:$0xff]  ;;  %v3409_v0 = vld [vmem:[#allocation3 + $0x151] sm:$0xff]  ;;  %2942 = vst [vmem:[#allocation3 + $0x168] sm:$0xff] %v2909_v31  ;;  %v2609_v41 = vadd.f32 %v8898_v54, %v2376_v15  ;;  %v7724_v27 = vpop.f32.mrf.mxu1  ;;  %v2143_v15 = vadd.f32 %v7460_v32, %v1910_v60  ;;  %v8903_v60 = vld [vmem:[#allocation84_spill] sm:$0xff] }
 0x407   : > { %v3640_v21 = vld [vmem:[#allocation3 + $0x14f] sm:$0xff]  ;;  %v3430_v33 = vpack.c.bf16 %v3409_v0, %v3408_v34 }
 0x408   : > { %v7726_v26 = vpack.c.bf16 %v3640_v21, %v3639_v36  ;;  %v2842_v38 = vadd.f32 %v7488_v6, %v2609_v41  ;;  %3322 = vmatmul.bf16.gmra.mxu3 %v7509_v40  ;;  %v8902_v21 = vld [vmem:[#allocation60_spill] sm:$0xff] }
 0x409   : > { %3558 = vmatmul.bf16.gmra.mxu0 %v3430_v33  ;;  %v1911_v41 = vadd.f32 %v8902_v21, %v1678_v61 }
 0x40a   : > { %3786 = vmatmul.bf16.gmra.mxu1 %v7726_v26  ;;  %v2878_v52 = vadd.f32 %v7401_v18, %v2842_v38  ;;  %v8904_v38 = vld [vmem:[#allocation44_spill] sm:$0xff] }
 0x40b   : > { %v2330_v54 = vpop.f32.mrf.mxu3  ;;  %v7736_v34 = vpop.f32.mrf.mxu2  ;;  %v1679_v51 = vadd.f32 %v8904_v38, %v8903_v60  ;;  %v8906_v38 = vld [vmem:[#allocation86_spill] sm:$0xff] }
 0x40c   : > { %v2910_v36 = vmax.f32 %v2878_v52, 0.0  ;;  %v2377_v0 = vadd.f32 %v2330_v54, %v2143_v15 }
 0x40d   : > { %v7738_v20 = vpop.f32.mrf.mxu0  ;;  %v3641_v54 = vld [vmem:[#allocation3 + $0x167] sm:$0xff] }
 0x40e   : > { %2943 = vst [vmem:[#allocation3 + $0x170] sm:$0xff] %v2910_v36  ;;  %v2610_v6 = vadd.f32 %v7464_v55, %v2377_v0  ;;  %v7741_v40 = vpop.f32.mrf.mxu1  ;;  %v3093_v33 = vpack.c.bf16 %v2910_v36, %v2909_v31  ;;  %v2144_v55 = vadd.f32 %v7480_v37, %v1911_v41  ;;  %v8905_v37 = vld [vmem:[#allocation62_spill] sm:$0xff] }
 0x40f   : > { %v1912_v41 = vadd.f32 %v8905_v37, %v1679_v51 }
 0x410   : > { %v2843_v32 = vadd.f32 %v7506_v8, %v2610_v6  ;;  %3225 = vmatmul.bf16.gmra.mxu2 %v3093_v33 }
 0x412   : > { %v2879_v58 = vadd.f32 %v7401_v18, %v2843_v32 }
 0x413   : > { %v2332_v52 = vpop.f32.mrf.mxu3  ;;  %v7752_v15 = vpop.f32.mrf.mxu2 }
 0x414   : > { %v2911_v61 = vmax.f32 %v2879_v58, 0.0  ;;  %v2378_v31 = vadd.f32 %v2332_v52, %v2144_v55  ;;  %v8907_v58 = vld [vmem:[#allocation47_spill] sm:$0xff] }
 0x415   : > { %v7754_v36 = vpop.f32.mrf.mxu0  ;;  %v3410_v0 = vld [vmem:[#allocation3 + $0x169] sm:$0xff]  ;;  %v3411_v21 = vld [vmem:[#allocation3 + $0x171] sm:$0xff]  ;;  %v1680_v55 = vadd.f32 %v8907_v58, %v8906_v38 }
 0x416   : > { %v3642_v8 = vld [vmem:[#allocation3 + $0x16f] sm:$0xff]  ;;  %2944 = vst [vmem:[#allocation3 + $0x188] sm:$0xff] %v2911_v61  ;;  %v2611_v6 = vadd.f32 %v7483_v5, %v2378_v31  ;;  %v7757_v33 = vpop.f32.mrf.mxu1  ;;  %v3431_v50 = vpack.c.bf16 %v3411_v21, %v3410_v0  ;;  %v2145_v5 = vadd.f32 %v7500_v48, %v1912_v41 }
 0x417   : > { %v7759_v32 = vpack.c.bf16 %v3642_v8, %v3641_v54  ;;  %v8910_v8 = vld [vmem:[#allocation63_spill] sm:$0xff]  ;;  %v8912_v48 = vld [vmem:[#allocation49_spill] sm:$0xff] }
 0x418   : > { %v2844_v60 = vadd.f32 %v7522_v63, %v2611_v6  ;;  %3327 = vmatmul.bf16.gmra.mxu3 %v7534_v9  ;;  %v1913_v6 = vadd.f32 %v8910_v8, %v1680_v55 }
 0x419   : > { %3563 = vmatmul.bf16.gmra.mxu0 %v3431_v50 }
 0x41a   : > { %3791 = vmatmul.bf16.gmra.mxu1 %v7759_v32  ;;  %v2880_v52 = vadd.f32 %v7401_v18, %v2844_v60  ;;  %v8911_v60 = vld [vmem:[#allocation88_spill] sm:$0xff]  ;;  %v2146_v58 = vadd.f32 %v7518_v22, %v1913_v6 }
 0x41b   : > { %v2335_v31 = vpop.f32.mrf.mxu3  ;;  %v7769_v0 = vpop.f32.mrf.mxu2  ;;  %v1681_v41 = vadd.f32 %v8912_v48, %v8911_v60  ;;  %v8913_v22 = vld [vmem:[#allocation64_spill] sm:$0xff] }
 0x41c   : > { %8908 = vst [vmem:[#allocation7_spill] sm:$0xff] %v7769_v0  ;;  %v2912_v54 = vmax.f32 %v2880_v52, 0.0  ;;  %v2379_v21 = vadd.f32 %v2335_v31, %v2145_v5  ;;  %v8915_v60 = vld [vmem:[#allocation52_spill] sm:$0xff] }
 0x41d   : > { %v7771_v51 = vpop.f32.mrf.mxu0  ;;  %v1914_v6 = vadd.f32 %v8913_v22, %v1681_v41 }
 0x41e   : > { %8909 = vst [vmem:[#allocation43_spill] sm:$0xff] %v7771_v51  ;;  %v2612_v63 = vadd.f32 %v7504_v45, %v2379_v21  ;;  %v7774_v9 = vpop.f32.mrf.mxu1  ;;  %v3094_v50 = vpack.c.bf16 %v2912_v54, %v2911_v61  ;;  %v3643_v21 = vld [vmem:[#allocation3 + $0x187] sm:$0xff] }
 0x41f   : > { %2945 = vst [vmem:[#allocation3 + $0x190] sm:$0xff] %v2912_v54 }
 0x420   : > { %v2845_v37 = vadd.f32 %v7542_v7, %v2612_v63  ;;  %3230 = vmatmul.bf16.gmra.mxu2 %v3094_v50 }
 0x422   : > { %v2881_v38 = vadd.f32 %v7401_v18, %v2845_v37  ;;  %v8914_v37 = vld [vmem:[#allocation91_spill] sm:$0xff] }
 0x423   : > { %v2337_v52 = vpop.f32.mrf.mxu3  ;;  %v7782_v5 = vpop.f32.mrf.mxu2  ;;  %v1682_v48 = vadd.f32 %v8915_v60, %v8914_v37 }
 0x424   : > { %v2913_v31 = vmax.f32 %v2881_v38, 0.0  ;;  %v2380_v45 = vadd.f32 %v2337_v52, %v2146_v58  ;;  %v2147_v38 = vadd.f32 %v7531_v14, %v1914_v6 }
 0x425   : > { %v7785_v61 = vpop.f32.mrf.mxu0 }
 0x426   : > { %v3412_v51 = vld [vmem:[#allocation3 + $0x189] sm:$0xff]  ;;  %v3413_v0 = vld [vmem:[#allocation3 + $0x191] sm:$0xff]  ;;  %2946 = vst [vmem:[#allocation3 + $0x1a8] sm:$0xff] %v2913_v31  ;;  %v2613_v7 = vadd.f32 %v7520_v62, %v2380_v45  ;;  %v7787_v54 = vpop.f32.mrf.mxu1 }
 0x427   : > { %v3644_v55 = vld [vmem:[#allocation3 + $0x18f] sm:$0xff]  ;;  %v3432_v63 = vpack.c.bf16 %v3413_v0, %v3412_v51 }
 0x428   : > { %v7789_v8 = vpack.c.bf16 %v3644_v55, %v3643_v21  ;;  %v2846_v50 = vadd.f32 %v7565_v16, %v2613_v7  ;;  %3332 = vmatmul.bf16.gmra.mxu3 %v7570_v1  ;;  %v8916_v1 = vld [vmem:[#allocation65_spill] sm:$0xff]  ;;  %v6121_v55 = vld [vmem:[%s8711_s5 + $0x100] sm:$0xff] }
 0x429   : > { %3568 = vmatmul.bf16.gmra.mxu0 %v3432_v63  ;;  %v1915_v45 = vadd.f32 %v8916_v1, %v1682_v48  ;;  %3973 = vmatpush.bf16.msrb.mxu2 %v6121_v55  ;;  %v8918_v63 = vld [vmem:[#allocation54_spill] sm:$0xff] }
 0x42a   : > { %3796 = vmatmul.bf16.gmra.mxu1 %v7789_v8  ;;  %v2882_v62 = vadd.f32 %v7401_v18, %v2846_v50  ;;  %v6144_v18 = vld [vmem:[%s8711_s5 + $0x1b8] sm:$0xff]  ;;  %v8919_v55 = vld [vmem:[#allocation66_spill] sm:$0xff] }
 0x42b   : > { %v2340_v58 = vpop.f32.mrf.mxu3  ;;  %v7799_v0 = vpop.f32.mrf.mxu2  ;;  %4433 = vmatpush.bf16.msra.mxu0 %v6144_v18  ;;  %v2148_v50 = vadd.f32 %v7558_v29, %v1915_v45  ;;  %v6143_v29 = vld [vmem:[%s8711_s5 + $0x1b0] sm:$0xff] }
 0x42c   : > { %v2914_v51 = vmax.f32 %v2882_v62, 0.0  ;;  %v2381_v52 = vadd.f32 %v2340_v58, %v2147_v38 }
 0x42d   : > { %v7812_v7 = vpop.f32.mrf.mxu0  ;;  %v3645_v62 = vld [vmem:[#allocation3 + $0x1a7] sm:$0xff] }
 0x42e   : > { %2947 = vst [vmem:[#allocation3 + $0x1b0] sm:$0xff] %v2914_v51  ;;  %v2614_v16 = vadd.f32 %v7540_v42, %v2381_v52  ;;  %v7802_v41 = vpop.f32.mrf.mxu1  ;;  %v3095_v21 = vpack.c.bf16 %v2914_v51, %v2913_v31  ;;  %v8917_v42 = vld [vmem:[#allocation93_spill] sm:$0xff]  ;;  %v7819_v31 = vld [vmem:[%s8710_s4] ss:$0 sm:$0xff] }
 0x42f   : > { %v1683_v22 = vadd.f32 %v8918_v63, %v8917_v42  ;;  %4434 = vmatpush.bf16.msra.mxu0 %v6143_v29  ;;  %v8921_v42 = vld [vmem:[#allocation56_spill] sm:$0xff]  ;;  %v8923_v29 = vld [vmem:[#allocation98_spill] sm:$0xff] }
 0x430   : > { %v2847_v14 = vadd.f32 %v7589_v46, %v2614_v16  ;;  %3235 = vmatmul.bf16.gmra.mxu2 %v3095_v21 }
 0x431   : > { %v1916_v18 = vadd.f32 %v8919_v55, %v1683_v22 }
 0x432   : > { %v2883_v6 = vadd.f32 %v7819_v31, %v2847_v14  ;;  %v8920_v14 = vld [vmem:[#allocation96_spill] sm:$0xff] }
 0x433   : > { %v2342_v37 = vpop.f32.mrf.mxu3  ;;  %v7823_v60 = vpop.f32.mrf.mxu2  ;;  %v1684_v63 = vadd.f32 %v8921_v42, %v8920_v14 }
 0x434   : > { %v2915_v46 = vmax.f32 %v2883_v6, 0.0  ;;  %v2382_v48 = vadd.f32 %v2342_v37, %v2148_v50  ;;  %v2149_v50 = vadd.f32 %v7581_v10, %v1916_v18  ;;  %v6152_v10 = vld [vmem:[%s8711_s5 + $0x1f8] sm:$0xff] }
 0x435   : > { %v3414_v38 = vld [vmem:[#allocation3 + $0x1a9] sm:$0xff]  ;;  %v3415_v58 = vld [vmem:[#allocation3 + $0x1b1] sm:$0xff]  ;;  %v7843_v6 = vpop.f32.mrf.mxu0  ;;  %4666 = vmatpush.bf16.msra.mxu1 %v6152_v10 }
 0x436   : > { %v3646_v51 = vld [vmem:[#allocation3 + $0x1af] sm:$0xff]  ;;  %2948 = vst [vmem:[#allocation3 + $0x1c8] sm:$0xff] %v2915_v46  ;;  %v2615_v52 = vadd.f32 %v7561_v35, %v2382_v48  ;;  %v7826_v16 = vpop.f32.mrf.mxu1  ;;  %v3433_v1 = vpack.c.bf16 %v3415_v58, %v3414_v38  ;;  %v8922_v38 = vld [vmem:[#allocation68_spill] sm:$0xff]  ;;  %v6140_v18 = vld [vmem:[%s8711_s5 + $0x198] sm:$0xff] }
 0x437   : > { %v7828_v21 = vpack.c.bf16 %v3646_v51, %v3645_v62  ;;  %v6142_v35 = vld [vmem:[%s8711_s5 + $0x1a8] sm:$0xff]  ;;  %v1917_v58 = vadd.f32 %v8922_v38, %v1684_v63  ;;  %v8925_v10 = vld [vmem:[#allocation70_spill] sm:$0xff] }
 0x438   : > { %v2848_v45 = vadd.f32 %v7605_v3, %v2615_v52  ;;  %3337 = vmatmul.bf16.gmra.mxu3 %v7608_v56  ;;  %4435 = vmatpush.bf16.msra.mxu0 %v6142_v35  ;;  %v6141_v52 = vld [vmem:[%s8711_s5 + $0x1a0] sm:$0xff] }
 0x439   : > { %3573 = vmatmul.bf16.gmra.mxu0 %v3433_v1  ;;  %v2150_v14 = vadd.f32 %v7601_v19, %v1917_v58 }
 0x43a   : > { %3801 = vmatmul.bf16.gmra.mxu1 %v7828_v21  ;;  %v2884_v22 = vadd.f32 %v7819_v31, %v2848_v45  ;;  %v8924_v45 = vld [vmem:[#allocation58_spill] sm:$0xff] }
 0x43b   : > { %v2345_v3 = vpop.f32.mrf.mxu3  ;;  %v7846_v37 = vpop.f32.mrf.mxu2 }
 0x43c   : > { %v2916_v56 = vmax.f32 %v2884_v22, 0.0  ;;  %v2383_v48 = vadd.f32 %v2345_v3, %v2149_v50  ;;  %4436 = vmatpush.bf16.msra.mxu0 %v6141_v52 }
 0x43d   : > { %v7874_v50 = vpop.f32.mrf.mxu0 }
 0x43e   : > { %2949 = vst [vmem:[#allocation3 + $0x1d0] sm:$0xff] %v2916_v56  ;;  %v2616_v62 = vadd.f32 %v7587_v53, %v2383_v48  ;;  %v3096_v51 = vpack.c.bf16 %v2916_v56, %v2915_v46  ;;  %v7857_v55 = vpop.f32.mrf.mxu1  ;;  %v6151_v53 = vld [vmem:[%s8711_s5 + $0x1f0] sm:$0xff]  ;;  %v6136_v46 = vld [vmem:[%s8711_s5 + $0x178] sm:$0xff]  ;;  %v3647_v56 = vld [vmem:[#allocation3 + $0x1c7] sm:$0xff] }
 0x43f   : > { %4199 = vmatpush.bf16.msra.mxu3 %v6136_v46  ;;  %v6139_v48 = vld [vmem:[%s8711_s5 + $0x190] sm:$0xff]  ;;  %4667 = vmatpush.bf16.msra.mxu1 %v6151_v53  ;;  %v6150_v46 = vld [vmem:[%s8711_s5 + $0x1e8] sm:$0xff]  ;;  %v6160_v53 = vld [vmem:[%s8711_s5 + $0x238] sm:$0xff] }
 0x440   : > { %v2849_v1 = vadd.f32 %v7626_v12, %v2616_v62  ;;  %3240 = vmatmul.bf16.gmra.mxu2 %v3096_v51  ;;  %v1685_v12 = vadd.f32 %v8924_v45, %v8923_v29  ;;  %4437 = vmatpush.bf16.msra.mxu0 %v6140_v18  ;;  %v8926_v18 = vld [vmem:[#allocation101_spill] sm:$0xff] }
 0x441   : > { %v8927_v45 = vld [vmem:[#allocation61_spill] sm:$0xff]  ;;  %4899 = vmatpush.bf16.msra.mxu2 %v6160_v53  ;;  %v6147_v53 = vld [vmem:[%s8711_s5 + $0x1d0] sm:$0xff] }
 0x442   : > { %v2885_v35 = vadd.f32 %v7819_v31, %v2849_v1  ;;  %v1918_v1 = vadd.f32 %v8925_v10, %v1685_v12  ;;  %v1686_v12 = vadd.f32 %v8927_v45, %v8926_v18 }
 0x443   : > { %v2347_v42 = vpop.f32.mrf.mxu3  ;;  %v7872_v63 = vpop.f32.mrf.mxu2  ;;  %4668 = vmatpush.bf16.msra.mxu1 %v6150_v46 }
 0x444   : > { %v2917_v22 = vmax.f32 %v2885_v35, 0.0  ;;  %v2384_v3 = vadd.f32 %v2347_v42, %v2150_v14  ;;  %4438 = vmatpush.bf16.msra.mxu0 %v6139_v48  ;;  %v6149_v14 = vld [vmem:[%s8711_s5 + $0x1e0] sm:$0xff] }
 0x445   : > { %v3416_v62 = vld [vmem:[#allocation3 + $0x1c9] sm:$0xff]  ;;  %v3417_v38 = vld [vmem:[#allocation3 + $0x1d1] sm:$0xff] }
 0x446   : > { %v3648_v51 = vld [vmem:[#allocation3 + $0x1cf] sm:$0xff]  ;;  %2950 = vst [vmem:[#allocation3 + $0x1e8] sm:$0xff] %v2917_v22  ;;  %v2617_v19 = vadd.f32 %v7603_v23, %v2384_v3  ;;  %v3434_v58 = vpack.c.bf16 %v3417_v38, %v3416_v62  ;;  %v6137_v62 = vld [vmem:[%s8711_s5 + $0x180] sm:$0xff]  ;;  %v7909_v38 = vpop.f32.mrf.mxu0 }
 0x447   : > { %v7880_v52 = vpack.c.bf16 %v3648_v51, %v3647_v56  ;;  %v6138_v23 = vld [vmem:[%s8711_s5 + $0x188] sm:$0xff]  ;;  %4669 = vmatpush.bf16.msra.mxu1 %v6149_v14 }
 0x448   : > { %v2850_v29 = vadd.f32 %v7645_v47, %v2617_v19  ;;  %3342 = vmatmul.bf16.gmra.mxu3 %v7634_v39  ;;  %v7898_v47 = vpop.f32.mrf.mxu1  ;;  %v2151_v39 = vadd.f32 %v7619_v49, %v1918_v1  ;;  %4439 = vmatpush.bf16.msra.mxu0 %v6138_v23  ;;  %v8928_v49 = vld [vmem:[#allocation5_spill] sm:$0xff]  ;;  %v8929_v19 = vld [vmem:[#allocation72_spill] sm:$0xff]  ;;  %v6148_v1 = vld [vmem:[%s8711_s5 + $0x1d8] sm:$0xff] }
 0x449   : > { %3578 = vmatmul.bf16.gmra.mxu0 %v3434_v58  ;;  %v1919_v58 = vadd.f32 %v8929_v19, %v1686_v12 }
 0x44a   : > { %3806 = vmatmul.bf16.gmra.mxu1 %v7880_v52  ;;  %v2886_v35 = vadd.f32 %v7819_v31, %v2850_v29 }
 0x44b   : > { %v2350_v42 = vpop.f32.mrf.mxu3  ;;  %v7904_v3 = vpop.f32.mrf.mxu2  ;;  %v2152_v23 = vadd.f32 %v7639_v2, %v1919_v58  ;;  %4670 = vmatpush.bf16.msra.mxu1 %v6148_v1 }
 0x44c   : > { %v2918_v56 = vmax.f32 %v2886_v35, 0.0  ;;  %v2385_v48 = vadd.f32 %v2350_v42, %v2151_v39  ;;  %4440 = vmatpush.bf16.msra.mxu0 %v6137_v62 }
 0x44d   : > { %v3649_v39 = vld [vmem:[#allocation3 + $0x1e7] sm:$0xff] }
 0x44e   : > { %2951 = vst [vmem:[#allocation3 + $0x1f0] sm:$0xff] %v2918_v56  ;;  %v2618_v51 = vadd.f32 %v8928_v49, %v2385_v48  ;;  %v3097_v10 = vpack.c.bf16 %v2918_v56, %v2917_v22  ;;  %v8931_v56 = vld [vmem:[#allocation36_spill] sm:$0xff]  ;;  %v6146_v49 = vld [vmem:[%s8711_s5 + $0x1c8] sm:$0xff] }
 0x44f   : > { %4671 = vmatpush.bf16.msra.mxu1 %v6147_v53  ;;  %v3854_v53 = vld [vmem:[#allocation3 + $0x28] sm:$0xff] }
 0x450   : > { %v2851_v46 = vadd.f32 %v7660_v44, %v2618_v51  ;;  %3245 = vmatmul.bf16.gmra.mxu2 %v3097_v10  ;;  %v7924_v12 = vpop.f32.mrf.mxu1  ;;  %v7932_v51 = vpop.f32.mrf.mxu0  ;;  %v6145_v10 = vld [vmem:[%s8711_s5 + $0x1c0] sm:$0xff] }
 0x451   : > { %8932 = vst [vmem:[#allocation8_spill] sm:$0xff] %v7932_v51 }
 0x452   : > { %v2887_v29 = vadd.f32 %v7819_v31, %v2851_v46 }
 0x453   : > { %v2352_v18 = vpop.f32.mrf.mxu3  ;;  %v7922_v22 = vpop.f32.mrf.mxu2  ;;  %4672 = vmatpush.bf16.msra.mxu1 %v6146_v49  ;;  %v6159_v49 = vld [vmem:[%s8711_s5 + $0x230] sm:$0xff] }
 0x454   : > { %8930 = vst [vmem:[#allocation23_spill] sm:$0xff] %v7922_v22  ;;  %v2919_v45 = vmax.f32 %v2887_v29, 0.0  ;;  %v2386_v35 = vadd.f32 %v2352_v18, %v2152_v23  ;;  %v3855_v29 = vld [vmem:[#allocation3 + $0x30] sm:$0xff]  ;;  %4900 = vmatpush.bf16.msra.mxu2 %v6159_v49  ;;  %v4335_v22 = vld [vmem:[#allocation3 + $0x127] sm:$0xff] }
 0x455   : > { %v3418_v44 = vld [vmem:[#allocation3 + $0x1e9] sm:$0xff]  ;;  %v3419_v14 = vld [vmem:[#allocation3 + $0x1f1] sm:$0xff] }
 0x456   : > { %v3650_v42 = vld [vmem:[#allocation3 + $0x1ef] sm:$0xff]  ;;  %2952 = vst [vmem:[#allocation3 + $0x208] sm:$0xff] %v2919_v45  ;;  %v2619_v48 = vadd.f32 %v8931_v56, %v2386_v35  ;;  %v3435_v2 = vpack.c.bf16 %v3419_v14, %v3418_v44 }
 0x457   : > { %v7927_v62 = vpack.c.bf16 %v3650_v42, %v3649_v39  ;;  %4673 = vmatpush.bf16.msra.mxu1 %v6145_v10  ;;  %v4322_v35 = vld [vmem:[#allocation3 + $0x4f] sm:$0xff]  ;;  %v4321_v42 = vld [vmem:[#allocation3 + $0x47] sm:$0xff] }
 0x458   : > { %v2852_v19 = vadd.f32 %v7677_v13, %v2619_v48  ;;  %3347 = vmatmul.bf16.gmra.mxu3 %v7663_v4  ;;  %v7945_v13 = vpop.f32.mrf.mxu1  ;;  %v3886_v4 = vpack.c.bf16 %v3855_v29, %v3854_v53  ;;  %v7950_v18 = vpop.f32.mrf.mxu0  ;;  %v4353_v48 = vpack.c.bf16 %v4322_v35, %v4321_v42  ;;  %v3857_v10 = vld [vmem:[#allocation3 + $0x50] sm:$0xff] }
 0x459   : > { %3583 = vmatmul.bf16.gmra.mxu0 %v3435_v2  ;;  %8934 = vst [vmem:[#allocation25_spill] sm:$0xff] %v7945_v13 }
 0x45a   : > { %3811 = vmatmul.bf16.gmra.mxu1 %v7927_v62  ;;  %v2888_v58 = vadd.f32 %v7819_v31, %v2852_v19  ;;  %v6135_v31 = vld [vmem:[%s8711_s5 + $0x170] sm:$0xff]  ;;  %8935 = vst [vmem:[#allocation9_spill] sm:$0xff] %v7950_v18 }
 0x45b   : > { %v7941_v1 = vpop.f32.mrf.mxu3  ;;  %v7943_v46 = vpop.f32.mrf.mxu2  ;;  %4200 = vmatpush.bf16.msra.mxu3 %v6135_v31  ;;  %v4324_v31 = vld [vmem:[#allocation3 + $0x6f] sm:$0xff] }
 0x45c   : > { %8933 = vst [vmem:[#allocation46_spill] sm:$0xff] %v7943_v46  ;;  %v2920_v23 = vmax.f32 %v2888_v58, 0.0 }
 0x45d   : > { %v3651_v44 = vld [vmem:[#allocation3 + $0x207] sm:$0xff] }
 0x45e   : > { %2953 = vst [vmem:[#allocation3 + $0x210] sm:$0xff] %v2920_v23  ;;  %v3856_v23 = vld [vmem:[#allocation3 + $0x48] sm:$0xff] }
 0x45f   : > { %v3887_v53 = vpack.c.bf16 %v3857_v10, %v3856_v23  ;;  %v3859_v10 = vld [vmem:[#allocation3 + $0x70] sm:$0xff] }
 0x460   : > { %3974 = vmatmul.bf16.vlgmr.msrb.gmra.mxu2 %v3886_v4  ;;  %v7958_v2 = vpop.f32.mrf.mxu1  ;;  %v7969_v29 = vpop.f32.mrf.mxu0 }
 0x461   : > { %8938 = vst [vmem:[#allocation28_spill] sm:$0xff] %v7958_v2 }
 0x462   : > { %8940 = vst [vmem:[#allocation30_spill] sm:$0xff] %v7969_v29 }
 0x463   : > { %v7952_v45 = vpop.f32.mrf.mxu3  ;;  %v7954_v39 = vpop.f32.mrf.mxu2 }
 0x464   : > { %8936 = vst [vmem:[#allocation27_spill] sm:$0xff] %v7954_v39 }
 0x465   : > { %v3652_v14 = vld [vmem:[#allocation3 + $0x20f] sm:$0xff] }
 0x466   : > { %v7956_v56 = vpack.c.bf16 %v3652_v14, %v3651_v44  ;;  %v4323_v44 = vld [vmem:[#allocation3 + $0x67] sm:$0xff] }
 0x467   : > { %v4354_v42 = vpack.c.bf16 %v4324_v31, %v4323_v44  ;;  %v4325_v44 = vld [vmem:[#allocation3 + $0x87] sm:$0xff] }
 0x468   : > { %8937 = vst [vmem:[#allocation10_spill] sm:$0xff] %v7956_v56  ;;  %3352 = vmatmul.bf16.gmra.mxu3 %v7696_v57  ;;  %v7971_v4 = vpop.f32.mrf.mxu1  ;;  %v7977_v14 = vpop.f32.mrf.mxu0 }
 0x469   : > { %4441 = vmatmul.bf16.vlgmr.msra.gmra.mxu0 %v4353_v48  ;;  %8941 = vst [vmem:[#allocation12_spill] sm:$0xff] %v7971_v4 }
 0x46a   : > { %3816 = vmatmul.bf16.gmra.mxu1 %v7956_v56  ;;  %8943 = vst [vmem:[#allocation13_spill] sm:$0xff] %v7977_v14  ;;  %v3861_v14 = vld [vmem:[#allocation3 + $0x90] sm:$0xff] }
 0x46b   : > { %v7965_v19 = vpop.f32.mrf.mxu3  ;;  %v7967_v58 = vpop.f32.mrf.mxu2 }
 0x46c   : > { %8939 = vst [vmem:[#allocation11_spill] sm:$0xff] %v7967_v58  ;;  %v3858_v58 = vld [vmem:[#allocation3 + $0x68] sm:$0xff] }
 0x46d   : > { %v3888_v39 = vpack.c.bf16 %v3859_v10, %v3858_v58  ;;  %v6158_v58 = vld [vmem:[%s8711_s5 + $0x228] sm:$0xff] }
 0x46e   : > { %4901 = vmatpush.bf16.msra.mxu2 %v6158_v58 }
 0x470   : > { %3979 = vmatmul.bf16.gmra.mxu2 %v3887_v53  ;;  %v7984_v23 = vpop.f32.mrf.mxu1  ;;  %v7989_v29 = vpop.f32.mrf.mxu0 }
 0x471   : > { %8945 = vst [vmem:[#allocation67_spill] sm:$0xff] %v7984_v23 }
 0x472   : > { %8946 = vst [vmem:[#allocation14_spill] sm:$0xff] %v7989_v29 }
 0x473   : > { %v7973_v57 = vpop.f32.mrf.mxu3  ;;  %v7975_v35 = vpop.f32.mrf.mxu2 }
 0x474   : > { %8942 = vst [vmem:[#allocation33_spill] sm:$0xff] %v7975_v35  ;;  %v6134_v35 = vld [vmem:[%s8711_s5 + $0x168] sm:$0xff] }
 0x475   : > { %4201 = vmatpush.bf16.msra.mxu3 %v6134_v35 }
 0x478   : > { %3357 = vmatmul.bf16.gmra.mxu3 %v7726_v26  ;;  %v8001_v10 = vpop.f32.mrf.mxu0 }
 0x479   : > { %4446 = vmatmul.bf16.gmra.mxu0 %v4354_v42  ;;  %v7995_v42 = vpop.f32.mrf.mxu1  ;;  %8949 = vst [vmem:[#allocation38_spill] sm:$0xff] %v8001_v10 }
 0x47a   : > { %4674 = vmatmul.bf16.vlgmr.msra.gmra.mxu1 %v3887_v53  ;;  %v4326_v53 = vld [vmem:[#allocation3 + $0x8f] sm:$0xff]  ;;  %8948 = vst [vmem:[#allocation82_spill] sm:$0xff] %v7995_v42 }
 0x47b   : > { %v7980_v48 = vpop.f32.mrf.mxu3  ;;  %v7982_v49 = vpop.f32.mrf.mxu2 }
 0x47c   : > { %8944 = vst [vmem:[#allocation35_spill] sm:$0xff] %v7982_v49  ;;  %v4355_v49 = vpack.c.bf16 %v4326_v53, %v4325_v44  ;;  %v4327_v44 = vld [vmem:[#allocation3 + $0xa7] sm:$0xff] }
 0x480   : > { %3984 = vmatmul.bf16.gmra.mxu2 %v3888_v39  ;;  %v8013_v53 = vpop.f32.mrf.mxu0 }
 0x481   : > { %v8007_v42 = vpop.f32.mrf.mxu1  ;;  %8953 = vst [vmem:[#allocation71_spill] sm:$0xff] %v8013_v53 }
 0x482   : > { %8951 = vst [vmem:[#allocation15_spill] sm:$0xff] %v8007_v42  ;;  %v3862_v42 = vld [vmem:[#allocation3 + $0xa8] sm:$0xff] }
 0x483   : > { %v7991_v26 = vpop.f32.mrf.mxu3  ;;  %v7993_v31 = vpop.f32.mrf.mxu2 }
 0x484   : > { %8947 = vst [vmem:[#allocation81_spill] sm:$0xff] %v7993_v31  ;;  %v3860_v31 = vld [vmem:[#allocation3 + $0x88] sm:$0xff] }
 0x485   : > { %v3889_v23 = vpack.c.bf16 %v3861_v14, %v3860_v31  ;;  %v3863_v31 = vld [vmem:[#allocation3 + $0xb0] sm:$0xff] }
 0x486   : > { %v3890_v46 = vpack.c.bf16 %v3863_v31, %v3862_v42  ;;  %v6157_v42 = vld [vmem:[%s8711_s5 + $0x220] sm:$0xff] }
 0x487   : > { %4902 = vmatpush.bf16.msra.mxu2 %v6157_v42  ;;  %v4332_v42 = vld [vmem:[#allocation3 + $0xef] sm:$0xff] }
 0x488   : > { %3362 = vmatmul.bf16.gmra.mxu3 %v7759_v32  ;;  %v8022_v4 = vpop.f32.mrf.mxu0 }
 0x489   : > { %4451 = vmatmul.bf16.gmra.mxu0 %v4355_v49  ;;  %8956 = vst [vmem:[#allocation87_spill] sm:$0xff] %v8022_v4  ;;  %v3865_v4 = vld [vmem:[#allocation3 + $0xd0] sm:$0xff] }
 0x48a   : > { %4679 = vmatmul.bf16.gmra.mxu1 %v3888_v39  ;;  %v4328_v39 = vld [vmem:[#allocation3 + $0xaf] sm:$0xff] }
 0x48b   : > { %v8003_v35 = vpop.f32.mrf.mxu3  ;;  %v8005_v29 = vpop.f32.mrf.mxu2  ;;  %v4356_v10 = vpack.c.bf16 %v4328_v39, %v4327_v44  ;;  %v4329_v44 = vld [vmem:[#allocation3 + $0xc7] sm:$0xff] }
 0x48c   : > { %8950 = vst [vmem:[#allocation69_spill] sm:$0xff] %v8005_v29  ;;  %v8016_v29 = vpop.f32.mrf.mxu1 }
 0x48d   : > { %8954 = vst [vmem:[#allocation17_spill] sm:$0xff] %v8016_v29  ;;  %v3867_v29 = vld [vmem:[#allocation3 + $0xf0] sm:$0xff] }
 0x490   : > { %3989 = vmatmul.bf16.gmra.mxu2 %v3889_v23  ;;  %v8033_v53 = vpop.f32.mrf.mxu0 }
 0x491   : > { %8959 = vst [vmem:[#allocation20_spill] sm:$0xff] %v8033_v53 }
 0x493   : > { %v8009_v32 = vpop.f32.mrf.mxu3  ;;  %v8011_v49 = vpop.f32.mrf.mxu2 }
 0x494   : > { %8952 = vst [vmem:[#allocation39_spill] sm:$0xff] %v8011_v49  ;;  %v6133_v49 = vld [vmem:[%s8711_s5 + $0x160] sm:$0xff]  ;;  %v8031_v39 = vpop.f32.mrf.mxu1 }
 0x495   : > { %4202 = vmatpush.bf16.msra.mxu3 %v6133_v49  ;;  %8958 = vst [vmem:[#allocation73_spill] sm:$0xff] %v8031_v39  ;;  %v6132_v49 = vld [vmem:[%s8711_s5 + $0x158] sm:$0xff] }
 0x498   : > { %3367 = vmatmul.bf16.gmra.mxu3 %v7789_v8  ;;  %v8054_v53 = vpop.f32.mrf.mxu0 }
 0x499   : > { %4456 = vmatmul.bf16.gmra.mxu0 %v4356_v10  ;;  %4203 = vmatpush.bf16.msra.mxu3 %v6132_v49  ;;  %8962 = vst [vmem:[#allocation45_spill] sm:$0xff] %v8054_v53 }
 0x49a   : > { %4684 = vmatmul.bf16.gmra.mxu1 %v3889_v23  ;;  %v4330_v23 = vld [vmem:[#allocation3 + $0xcf] sm:$0xff] }
 0x49b   : > { %v8018_v58 = vpop.f32.mrf.mxu3  ;;  %v8020_v14 = vpop.f32.mrf.mxu2 }
 0x49c   : > { %8955 = vst [vmem:[#allocation85_spill] sm:$0xff] %v8020_v14  ;;  %v4357_v14 = vpack.c.bf16 %v4330_v23, %v4329_v44  ;;  %v3864_v23 = vld [vmem:[#allocation3 + $0xc8] sm:$0xff]  ;;  %v8046_v44 = vpop.f32.mrf.mxu1 }
 0x49d   : > { %8961 = vst [vmem:[#allocation90_spill] sm:$0xff] %v8046_v44  ;;  %v4331_v44 = vld [vmem:[#allocation3 + $0xe7] sm:$0xff] }
 0x4a0   : > { %3994 = vmatmul.bf16.gmra.mxu2 %v3890_v46 }
 0x4a3   : > { %v8027_v8 = vpop.f32.mrf.mxu3  ;;  %v8029_v10 = vpop.f32.mrf.mxu2 }
 0x4a4   : > { %8957 = vst [vmem:[#allocation42_spill] sm:$0xff] %v8029_v10  ;;  %v8063_v39 = vpop.f32.mrf.mxu1 }
 0x4a5   : > { %8964 = vst [vmem:[#allocation22_spill] sm:$0xff] %v8063_v39  ;;  %v4334_v39 = vld [vmem:[#allocation3 + $0x10f] sm:$0xff] }
 0x4a8   : > { %3372 = vmatmul.bf16.gmra.mxu3 %v7828_v21  ;;  %v3891_v21 = vpack.c.bf16 %v3865_v4, %v3864_v23  ;;  %v4358_v4 = vpack.c.bf16 %v4332_v42, %v4331_v44  ;;  %v6129_v23 = vld [vmem:[%s8711_s5 + $0x140] sm:$0xff] }
 0x4a9   : > { %4461 = vmatmul.bf16.gmra.mxu0 %v4357_v14  ;;  %v6130_v14 = vld [vmem:[%s8711_s5 + $0x148] sm:$0xff] }
 0x4aa   : > { %4689 = vmatmul.bf16.gmra.mxu1 %v3890_v46  ;;  %v6131_v46 = vld [vmem:[%s8711_s5 + $0x150] sm:$0xff] }
 0x4ab   : > { %v8042_v31 = vpop.f32.mrf.mxu3  ;;  %v8044_v10 = vpop.f32.mrf.mxu2  ;;  %4204 = vmatpush.bf16.msra.mxu3 %v6131_v46 }
 0x4ac   : > { %8960 = vst [vmem:[#allocation89_spill] sm:$0xff] %v8044_v10  ;;  %v8072_v42 = vpop.f32.mrf.mxu1 }
 0x4ad   : > { %8967 = vst [vmem:[#allocation100_spill] sm:$0xff] %v8072_v42 }
 0x4af   : > { %4205 = vmatpush.bf16.msra.mxu3 %v6130_v14  ;;  %v3866_v14 = vld [vmem:[#allocation3 + $0xe8] sm:$0xff] }
 0x4b0   : > { %3999 = vmatmul.bf16.gmra.mxu2 %v3891_v21  ;;  %v3892_v44 = vpack.c.bf16 %v3867_v29, %v3866_v14  ;;  %v6156_v29 = vld [vmem:[%s8711_s5 + $0x218] sm:$0xff] }
 0x4b1   : > { %4903 = vmatpush.bf16.msra.mxu2 %v6156_v29 }
 0x4b3   : > { %v8056_v10 = vpop.f32.mrf.mxu3  ;;  %v8058_v49 = vpop.f32.mrf.mxu2  ;;  %4206 = vmatpush.bf16.msra.mxu3 %v6129_v23 }
 0x4b4   : > { %8963 = vst [vmem:[#allocation74_spill] sm:$0xff] %v8058_v49  ;;  %v8070_v49 = vpop.f32.mrf.mxu0 }
 0x4b5   : > { %8966 = vst [vmem:[#allocation48_spill] sm:$0xff] %v8070_v49  ;;  %v8088_v49 = vpop.f32.mrf.mxu1 }
 0x4b6   : > { %8972 = vst [vmem:[#allocation50_spill] sm:$0xff] %v8088_v49  ;;  %v3871_v49 = vld [vmem:[#allocation3 + $0x130] sm:$0xff] }
 0x4b8   : > { %3377 = vmatmul.bf16.gmra.mxu3 %v7880_v52  ;;  %v4333_v52 = vld [vmem:[#allocation3 + $0x107] sm:$0xff] }
 0x4b9   : > { %4466 = vmatmul.bf16.gmra.mxu0 %v4358_v4  ;;  %v4359_v4 = vpack.c.bf16 %v4334_v39, %v4333_v52  ;;  %v4087_v39 = vld [vmem:[#allocation3 + $0x29] sm:$0xff] }
 0x4ba   : > { %4694 = vmatmul.bf16.gmra.mxu1 %v3891_v21  ;;  %v4336_v52 = vld [vmem:[#allocation3 + $0x12f] sm:$0xff] }
 0x4bb   : > { %v8066_v46 = vpop.f32.mrf.mxu3  ;;  %v8068_v53 = vpop.f32.mrf.mxu2  ;;  %v4360_v56 = vpack.c.bf16 %v4336_v52, %v4335_v22  ;;  %v3311_v22 = vadd.f32 %v7952_v45, %v7673_v25  ;;  %v6155_v25 = vld [vmem:[%s8711_s5 + $0x210] sm:$0xff] }
 0x4bc   : > { %8965 = vst [vmem:[#allocation92_spill] sm:$0xff] %v8068_v53  ;;  %v8078_v21 = vpop.f32.mrf.mxu0  ;;  %v3869_v53 = vld [vmem:[#allocation3 + $0x110] sm:$0xff]  ;;  %4904 = vmatpush.bf16.msra.mxu2 %v6155_v25 }
 0x4bd   : > { %8969 = vst [vmem:[#allocation24_spill] sm:$0xff] %v8078_v21 }
 0x4c0   : > { %4004 = vmatmul.bf16.gmra.mxu2 %v3892_v44 }
 0x4c3   : > { %v8074_v18 = vpop.f32.mrf.mxu3  ;;  %v8076_v2 = vpop.f32.mrf.mxu2 }
 0x4c4   : > { %8968 = vst [vmem:[#allocation75_spill] sm:$0xff] %v8076_v2  ;;  %v3868_v2 = vld [vmem:[#allocation3 + $0x108] sm:$0xff]  ;;  %v8090_v21 = vpop.f32.mrf.mxu0 }
 0x4c5   : > { %v3893_v42 = vpack.c.bf16 %v3869_v53, %v3868_v2  ;;  %8973 = vst [vmem:[#allocation76_spill] sm:$0xff] %v8090_v21  ;;  %v3309_v2 = vadd.f32 %v7941_v1, %v7652_v43  ;;  %v4089_v1 = vld [vmem:[#allocation3 + $0x49] sm:$0xff] }
 0x4c8   : > { %3382 = vmatmul.bf16.gmra.mxu3 %v7927_v62 }
 0x4c9   : > { %4471 = vmatmul.bf16.gmra.mxu0 %v4359_v4 }
 0x4ca   : > { %4699 = vmatmul.bf16.gmra.mxu1 %v3892_v44  ;;  %v4088_v44 = vld [vmem:[#allocation3 + $0x31] sm:$0xff] }
 0x4cb   : > { %v8084_v23 = vpop.f32.mrf.mxu3  ;;  %v8086_v14 = vpop.f32.mrf.mxu2 }
 0x4cc   : > { %8970 = vst [vmem:[#allocation94_spill] sm:$0xff] %v8084_v23  ;;  %v8096_v23 = vpop.f32.mrf.mxu1  ;;  %v8100_v53 = vpop.f32.mrf.mxu0 }
 0x4cd   : > { %8971 = vst [vmem:[#allocation95_spill] sm:$0xff] %v8086_v14  ;;  %v4119_v14 = vpack.c.bf16 %v4088_v44, %v4087_v39 }
 0x4ce   : > { %8976 = vst [vmem:[#allocation99_spill] sm:$0xff] %v8096_v23 }
 0x4d0   : > { %4009 = vmatmul.bf16.gmra.mxu2 %v3893_v42 }
 0x4d3   : > { %v8092_v62 = vpop.f32.mrf.mxu3  ;;  %v8094_v4 = vpop.f32.mrf.mxu2 }
 0x4d4   : > { %8974 = vst [vmem:[#allocation26_spill] sm:$0xff] %v8092_v62  ;;  %v3870_v62 = vld [vmem:[#allocation3 + $0x128] sm:$0xff]  ;;  %v8107_v23 = vpop.f32.mrf.mxu1  ;;  %v8114_v44 = vpop.f32.mrf.mxu0 }
 0x4d5   : > { %8975 = vst [vmem:[#allocation97_spill] sm:$0xff] %v8094_v4  ;;  %v8978_v4 = vld [vmem:[#allocation19_spill] sm:$0xff]  ;;  %v3894_v13 = vpack.c.bf16 %v3871_v49, %v3870_v62  ;;  %v3590_v49 = vadd.f32 %v7675_v17, %v3311_v22  ;;  %v3873_v22 = vld [vmem:[#allocation3 + $0x150] sm:$0xff] }
 0x4d6   : > { %v3589_v51 = vadd.f32 %v8978_v4, %v3309_v2  ;;  %8979 = vst [vmem:[#allocation77_spill] sm:$0xff] %v8114_v44  ;;  %v4337_v4 = vld [vmem:[#allocation3 + $0x147] sm:$0xff]  ;;  %v4340_v44 = vld [vmem:[#allocation3 + $0x16f] sm:$0xff] }
 0x4d7   : > { %v3823_v45 = vadd.f32 %v7711_v30, %v3590_v49  ;;  %v4091_v49 = vld [vmem:[#allocation3 + $0x69] sm:$0xff] }
 0x4d8   : > { %4207 = vmatmul.bf16.vlgmr.msra.gmra.mxu3 %v4119_v14  ;;  %v4338_v14 = vld [vmem:[#allocation3 + $0x14f] sm:$0xff] }
 0x4d9   : > { %4476 = vmatmul.bf16.gmra.mxu0 %v4360_v56  ;;  %v3822_v56 = vadd.f32 %v7694_v24, %v3589_v51  ;;  %v4361_v2 = vpack.c.bf16 %v4338_v14, %v4337_v4  ;;  %v3314_v24 = vadd.f32 %v7965_v19, %v7689_v59 }
 0x4da   : > { %4704 = vmatmul.bf16.gmra.mxu1 %v3893_v42  ;;  %v4090_v42 = vld [vmem:[#allocation3 + $0x51] sm:$0xff] }
 0x4db   : > { %v8102_v29 = vpop.f32.mrf.mxu3  ;;  %v8104_v21 = vpop.f32.mrf.mxu2  ;;  %v8119_v62 = vpack.c.bf16 %v4090_v42, %v4089_v1  ;;  %v3872_v42 = vld [vmem:[#allocation3 + $0x148] sm:$0xff] }
 0x4dc   : > { %8977 = vst [vmem:[#allocation51_spill] sm:$0xff] %v8104_v21  ;;  %v8127_v51 = vpop.f32.mrf.mxu1  ;;  %v3895_v4 = vpack.c.bf16 %v3873_v22, %v3872_v42  ;;  %v4092_v21 = vld [vmem:[#allocation3 + $0x71] sm:$0xff] }
 0x4dd   : > { %8980 = vst [vmem:[#allocation29_spill] sm:$0xff] %v8127_v51  ;;  %v8147_v22 = vpack.c.bf16 %v4092_v21, %v4091_v49  ;;  %v3874_v21 = vld [vmem:[#allocation3 + $0x168] sm:$0xff] }
 0x4e0   : > { %4014 = vmatmul.bf16.gmra.mxu2 %v3894_v13 }
 0x4e3   : > { %v8112_v43 = vpop.f32.mrf.mxu3  ;;  %v3975_v39 = vpop.f32.mrf.mxu2 }
 0x4e4   : > { %v8116_v52 = vadd.f32 %v3975_v39, %v3822_v56  ;;  %v8135_v39 = vpop.f32.mrf.mxu0 }
 0x4e5   : > { %8982 = vst [vmem:[#allocation53_spill] sm:$0xff] %v8135_v39 }
 0x4e8   : > { %4212 = vmatmul.bf16.gmra.mxu3 %v8119_v62 }
 0x4e9   : > { %4481 = vmatmul.bf16.gmra.mxu0 %v4361_v2  ;;  %v8983_v2 = vld [vmem:[#allocation40_spill] sm:$0xff] }
 0x4ea   : > { %4709 = vmatmul.bf16.gmra.mxu1 %v3894_v13  ;;  %v8981_v13 = vld [vmem:[#allocation6_spill] sm:$0xff]  ;;  %v3316_v59 = vadd.f32 %v7973_v57, %v8983_v2 }
 0x4eb   : > { %v8130_v56 = vpop.f32.mrf.mxu3  ;;  %v3977_v17 = vpop.f32.mrf.mxu2  ;;  %v3591_v14 = vadd.f32 %v8981_v13, %v3314_v24  ;;  %v4339_v24 = vld [vmem:[#allocation3 + $0x167] sm:$0xff] }
 0x4ec   : > { %v8132_v1 = vadd.f32 %v3977_v17, %v3823_v45  ;;  %v8142_v45 = vpop.f32.mrf.mxu1  ;;  %v8984_v13 = vld [vmem:[#allocation21_spill] sm:$0xff]  ;;  %v4362_v42 = vpack.c.bf16 %v4340_v44, %v4339_v24  ;;  %v8149_v51 = vpop.f32.mrf.mxu0 }
 0x4ed   : > { %v3824_v19 = vadd.f32 %v7724_v27, %v3591_v14  ;;  %v3592_v39 = vadd.f32 %v8984_v13, %v3316_v59  ;;  %v3319_v27 = vadd.f32 %v7980_v48, %v7719_v28  ;;  %v4093_v48 = vld [vmem:[#allocation3 + $0x89] sm:$0xff] }
 0x4ee   : > { %v4342_v13 = vld [vmem:[#allocation3 + $0x18f] sm:$0xff] }
 0x4ef   : > { %v3825_v57 = vadd.f32 %v7741_v40, %v3592_v39  ;;  %v3593_v44 = vadd.f32 %v7721_v11, %v3319_v27  ;;  %v4094_v39 = vld [vmem:[#allocation3 + $0x91] sm:$0xff]  ;;  %v4341_v11 = vld [vmem:[#allocation3 + $0x187] sm:$0xff] }
 0x4f0   : > { %4019 = vmatmul.bf16.gmra.mxu2 %v3895_v4 }
 0x4f1   : > { %v3826_v28 = vadd.f32 %v7757_v33, %v3593_v44  ;;  %v3324_v33 = vadd.f32 %v8003_v35, %v7752_v15 }
 0x4f3   : > { %v8140_v30 = vpop.f32.mrf.mxu3  ;;  %v3980_v25 = vpop.f32.mrf.mxu2 }
 0x4f4   : > { %v8144_v17 = vadd.f32 %v3980_v25, %v3824_v19  ;;  %v3875_v19 = vld [vmem:[#allocation3 + $0x170] sm:$0xff]  ;;  %v8160_v59 = vpop.f32.mrf.mxu1  ;;  %v8164_v24 = vpop.f32.mrf.mxu0 }
 0x4f5   : > { %v3896_v49 = vpack.c.bf16 %v3875_v19, %v3874_v21  ;;  %8985 = vst [vmem:[#allocation78_spill] sm:$0xff] %v8164_v24  ;;  %v4363_v19 = vpack.c.bf16 %v4342_v13, %v4341_v11  ;;  %v8988_v24 = vld [vmem:[#allocation43_spill] sm:$0xff] }
 0x4f8   : > { %4217 = vmatmul.bf16.gmra.mxu3 %v8147_v22 }
 0x4f9   : > { %4486 = vmatmul.bf16.gmra.mxu0 %v4362_v42 }
 0x4fa   : > { %4714 = vmatmul.bf16.gmra.mxu1 %v3895_v4  ;;  %v3321_v4 = vadd.f32 %v7991_v26, %v7736_v34  ;;  %v6154_v34 = vld [vmem:[%s8711_s5 + $0x208] sm:$0xff] }
 0x4fb   : > { %v8155_v14 = vpop.f32.mrf.mxu3  ;;  %v3982_v2 = vpop.f32.mrf.mxu2  ;;  %4905 = vmatpush.bf16.msra.mxu2 %v6154_v34  ;;  %v4344_v34 = vld [vmem:[#allocation3 + $0x1af] sm:$0xff] }
 0x4fc   : > { %v8157_v25 = vadd.f32 %v3982_v2, %v3825_v57  ;;  %v3594_v27 = vadd.f32 %v7738_v20, %v3321_v4  ;;  %v8172_v2 = vpack.c.bf16 %v4094_v39, %v4093_v48  ;;  %v8174_v21 = vpop.f32.mrf.mxu1  ;;  %v3877_v4 = vld [vmem:[#allocation3 + $0x190] sm:$0xff]  ;;  %v3876_v39 = vld [vmem:[#allocation3 + $0x188] sm:$0xff] }
 0x4fd   : > { %v3897_v13 = vpack.c.bf16 %v3877_v4, %v3876_v39 }
 0x4fe   : > { %v3827_v26 = vadd.f32 %v7774_v9, %v3594_v27  ;;  %v4095_v27 = vld [vmem:[#allocation3 + $0xa9] sm:$0xff] }
 0x500   : > { %4024 = vmatmul.bf16.gmra.mxu2 %v3896_v49 }
 0x503   : > { %v8167_v40 = vpop.f32.mrf.mxu3  ;;  %v3985_v42 = vpop.f32.mrf.mxu2 }
 0x504   : > { %v8169_v57 = vadd.f32 %v3985_v42, %v3826_v28  ;;  %v8185_v28 = vpop.f32.mrf.mxu0  ;;  %v8987_v42 = vld [vmem:[#allocation7_spill] sm:$0xff]  ;;  %v8192_v15 = vpop.f32.mrf.mxu1 }
 0x505   : > { %8986 = vst [vmem:[#allocation32_spill] sm:$0xff] %v8185_v28  ;;  %v3326_v11 = vadd.f32 %v8009_v32, %v8987_v42  ;;  %v3879_v42 = vld [vmem:[#allocation3 + $0x1b0] sm:$0xff] }
 0x508   : > { %4222 = vmatmul.bf16.gmra.mxu3 %v8172_v2 }
 0x509   : > { %4491 = vmatmul.bf16.gmra.mxu0 %v4363_v19  ;;  %v4096_v19 = vld [vmem:[#allocation3 + $0xb1] sm:$0xff] }
 0x50a   : > { %4719 = vmatmul.bf16.gmra.mxu1 %v3896_v49  ;;  %v3595_v49 = vadd.f32 %v7754_v36, %v3324_v33  ;;  %v3596_v36 = vadd.f32 %v8988_v24, %v3326_v11  ;;  %v8202_v4 = vpack.c.bf16 %v4096_v19, %v4095_v27  ;;  %v3878_v11 = vld [vmem:[#allocation3 + $0x1a8] sm:$0xff] }
 0x50b   : > { %v8183_v44 = vpop.f32.mrf.mxu3  ;;  %v3987_v20 = vpop.f32.mrf.mxu2  ;;  %v3898_v19 = vpack.c.bf16 %v3879_v42, %v3878_v11 }
 0x50c   : > { %v8187_v48 = vadd.f32 %v3987_v20, %v3827_v26  ;;  %v3828_v9 = vadd.f32 %v7787_v54, %v3595_v49  ;;  %v4343_v20 = vld [vmem:[#allocation3 + $0x1a7] sm:$0xff]  ;;  %v8200_v33 = vpop.f32.mrf.mxu0  ;;  %v3329_v54 = vadd.f32 %v8018_v58, %v7782_v5  ;;  %v3829_v39 = vadd.f32 %v7802_v41, %v3596_v36  ;;  %v4346_v36 = vld [vmem:[#allocation3 + $0x1cf] sm:$0xff] }
 0x50d   : > { %v4364_v32 = vpack.c.bf16 %v4344_v34, %v4343_v20  ;;  %v3331_v5 = vadd.f32 %v8027_v8, %v7799_v0  ;;  %v4098_v20 = vld [vmem:[#allocation3 + $0xd1] sm:$0xff]  ;;  %v6153_v0 = vld [vmem:[%s8711_s5 + $0x200] sm:$0xff] }
 0x50e   : > { %v3597_v27 = vadd.f32 %v7785_v61, %v3329_v54  ;;  %4906 = vmatpush.bf16.msra.mxu2 %v6153_v0 }
 0x50f   : > { %v3598_v61 = vadd.f32 %v7812_v7, %v3331_v5 }
 0x510   : > { %4029 = vmatmul.bf16.gmra.mxu2 %v3897_v13  ;;  %v3830_v41 = vadd.f32 %v7826_v16, %v3597_v27  ;;  %v3334_v16 = vadd.f32 %v8042_v31, %v7823_v60  ;;  %v3336_v60 = vadd.f32 %v8056_v10, %v7846_v37  ;;  %v3339_v37 = vadd.f32 %v8066_v46, %v7872_v63  ;;  %v8997_v46 = vld [vmem:[#allocation25_spill] sm:$0xff] }
 0x511   : > { %v3831_v7 = vadd.f32 %v7857_v55, %v3598_v61  ;;  %v4100_v61 = vld [vmem:[#allocation3 + $0xf1] sm:$0xff]  ;;  %v3341_v63 = vadd.f32 %v8074_v18, %v7904_v3 }
 0x512   : > { %v9001_v3 = vld [vmem:[#allocation10_spill] sm:$0xff]  ;;  %v9002_v18 = vld [vmem:[#allocation23_spill] sm:$0xff] }
 0x513   : > { %v8195_v35 = vpop.f32.mrf.mxu3  ;;  %v3990_v28 = vpop.f32.mrf.mxu2 }
 0x514   : > { %v8197_v26 = vadd.f32 %v3990_v28, %v3828_v9  ;;  %v8210_v9 = vpop.f32.mrf.mxu1  ;;  %v8215_v34 = vpop.f32.mrf.mxu0 }
 0x515   : > { %8989 = vst [vmem:[#allocation31_spill] sm:$0xff] %v8215_v34 }
 0x518   : > { %4227 = vmatmul.bf16.gmra.mxu3 %v8202_v4 }
 0x519   : > { %4496 = vmatmul.bf16.gmra.mxu0 %v4364_v32 }
 0x51a   : > { %4724 = vmatmul.bf16.gmra.mxu1 %v3897_v13  ;;  %v4097_v13 = vld [vmem:[#allocation3 + $0xc9] sm:$0xff] }
 0x51b   : > { %v8208_v49 = vpop.f32.mrf.mxu3  ;;  %v3992_v28 = vpop.f32.mrf.mxu2  ;;  %v8227_v42 = vpack.c.bf16 %v4098_v20, %v4097_v13  ;;  %v3880_v20 = vld [vmem:[#allocation3 + $0x1c8] sm:$0xff] }
 0x51c   : > { %v8212_v24 = vadd.f32 %v3992_v28, %v3829_v39  ;;  %v4345_v28 = vld [vmem:[#allocation3 + $0x1c7] sm:$0xff]  ;;  %v8225_v54 = vpop.f32.mrf.mxu1  ;;  %v8235_v8 = vpop.f32.mrf.mxu0 }
 0x51d   : > { %8990 = vst [vmem:[#allocation55_spill] sm:$0xff] %v8225_v54  ;;  %v4365_v11 = vpack.c.bf16 %v4346_v36, %v4345_v28  ;;  %v4099_v28 = vld [vmem:[#allocation3 + $0xe9] sm:$0xff] }
 0x51e   : > { %8991 = vst [vmem:[#allocation79_spill] sm:$0xff] %v8235_v8  ;;  %v9009_v8 = vld [vmem:[#allocation12_spill] sm:$0xff] }
 0x520   : > { %4034 = vmatmul.bf16.gmra.mxu2 %v3898_v19 }
 0x523   : > { %v8220_v58 = vpop.f32.mrf.mxu3  ;;  %v3995_v32 = vpop.f32.mrf.mxu2 }
 0x524   : > { %v8222_v39 = vadd.f32 %v3995_v32, %v3830_v41  ;;  %v3881_v41 = vld [vmem:[#allocation3 + $0x1d0] sm:$0xff]  ;;  %v8243_v32 = vpop.f32.mrf.mxu1 }
 0x525   : > { %v3899_v36 = vpack.c.bf16 %v3881_v41, %v3880_v20  ;;  %8993 = vst [vmem:[#allocation16_spill] sm:$0xff] %v8243_v32  ;;  %v8255_v41 = vpack.c.bf16 %v4100_v61, %v4099_v28 }
 0x528   : > { %4232 = vmatmul.bf16.gmra.mxu3 %v8227_v42 }
 0x529   : > { %4501 = vmatmul.bf16.gmra.mxu0 %v4365_v11  ;;  %v4348_v11 = vld [vmem:[#allocation3 + $0x1ef] sm:$0xff] }
 0x52a   : > { %4729 = vmatmul.bf16.gmra.mxu1 %v3898_v19  ;;  %v3599_v19 = vadd.f32 %v7843_v6, %v3334_v16  ;;  %v4347_v6 = vld [vmem:[#allocation3 + $0x1e7] sm:$0xff]  ;;  %v3600_v16 = vadd.f32 %v7874_v50, %v3336_v60  ;;  %v3601_v60 = vadd.f32 %v7909_v38, %v3339_v37 }
 0x52b   : > { %v8238_v27 = vpop.f32.mrf.mxu3  ;;  %v3997_v5 = vpop.f32.mrf.mxu2  ;;  %v4366_v20 = vpack.c.bf16 %v4348_v11, %v4347_v6  ;;  %v3882_v50 = vld [vmem:[#allocation3 + $0x1e8] sm:$0xff]  ;;  %v4102_v6 = vld [vmem:[#allocation3 + $0x111] sm:$0xff] }
 0x52c   : > { %v8240_v13 = vadd.f32 %v3997_v5, %v3831_v7  ;;  %v3832_v31 = vadd.f32 %v7898_v47, %v3599_v19  ;;  %v8250_v7 = vpop.f32.mrf.mxu0  ;;  %v8260_v47 = vpop.f32.mrf.mxu1  ;;  %v3833_v10 = vadd.f32 %v7924_v12, %v3600_v16  ;;  %v4101_v12 = vld [vmem:[#allocation3 + $0x109] sm:$0xff] }
 0x52d   : > { %8994 = vst [vmem:[#allocation57_spill] sm:$0xff] %v8250_v7  ;;  %v8280_v37 = vpack.c.bf16 %v4102_v6, %v4101_v12  ;;  %v9005_v12 = vld [vmem:[#allocation9_spill] sm:$0xff] }
 0x52e   : > { %8992 = vst [vmem:[#allocation34_spill] sm:$0xff] %v8240_v13 }
 0x52f   : > { %8995 = vst [vmem:[#allocation80_spill] sm:$0xff] %v8260_v47 }
 0x530   : > { %4039 = vmatmul.bf16.gmra.mxu2 %v3899_v36 }
 0x533   : > { %v8248_v55 = vpop.f32.mrf.mxu3  ;;  %v4000_v0 = vpop.f32.mrf.mxu2 }
 0x534   : > { %v8252_v5 = vadd.f32 %v4000_v0, %v3832_v31  ;;  %v3883_v0 = vld [vmem:[#allocation3 + $0x1f0] sm:$0xff]  ;;  %v8268_v28 = vpop.f32.mrf.mxu0 }
 0x535   : > { %8996 = vst [vmem:[#allocation37_spill] sm:$0xff] %v8268_v28  ;;  %v3900_v61 = vpack.c.bf16 %v3883_v0, %v3882_v50  ;;  %v9003_v50 = vld [vmem:[#allocation94_spill] sm:$0xff] }
 0x538   : > { %4237 = vmatmul.bf16.gmra.mxu3 %v8255_v41 }
 0x539   : > { %4506 = vmatmul.bf16.gmra.mxu0 %v4366_v20 }
 0x53a   : > { %4734 = vmatmul.bf16.gmra.mxu1 %v3899_v36  ;;  %v3834_v36 = vadd.f32 %v8997_v46, %v3601_v60  ;;  %v3344_v60 = vadd.f32 %v9003_v50, %v9002_v18  ;;  %v9004_v46 = vld [vmem:[#allocation28_spill] sm:$0xff] }
 0x53b   : > { %v8263_v19 = vpop.f32.mrf.mxu3  ;;  %v4002_v31 = vpop.f32.mrf.mxu2 }
 0x53c   : > { %v8265_v13 = vadd.f32 %v4002_v31, %v3833_v10  ;;  %v8277_v10 = vpop.f32.mrf.mxu1  ;;  %v8999_v31 = vld [vmem:[#allocation8_spill] sm:$0xff]  ;;  %v8282_v0 = vpop.f32.mrf.mxu0  ;;  %v3603_v6 = vadd.f32 %v9005_v12, %v3344_v60  ;;  %v9012_v60 = vld [vmem:[#allocation27_spill] sm:$0xff] }
 0x53d   : > { %8998 = vst [vmem:[#allocation4_spill] sm:$0xff] %v8277_v10  ;;  %v3602_v38 = vadd.f32 %v8999_v31, %v3341_v63  ;;  %v3885_v10 = vld [vmem:[#allocation3 + $0x210] sm:$0xff]  ;;  %v3884_v63 = vld [vmem:[#allocation3 + $0x208] sm:$0xff] }
 0x53e   : > { %9000 = vst [vmem:[#allocation18_spill] sm:$0xff] %v8282_v0  ;;  %v3901_v31 = vpack.c.bf16 %v3885_v10, %v3884_v63  ;;  %v3836_v18 = vadd.f32 %v9009_v8, %v3603_v6  ;;  %v3349_v63 = vadd.f32 %v8102_v29, %v9012_v60  ;;  %v9013_v8 = vld [vmem:[#allocation67_spill] sm:$0xff]  ;;  %v4105_v29 = vld [vmem:[#allocation3 + $0x149] sm:$0xff] }
 0x53f   : > { %v3835_v28 = vadd.f32 %v9004_v46, %v3602_v38  ;;  %v4103_v38 = vld [vmem:[#allocation3 + $0x129] sm:$0xff]  ;;  %v4104_v46 = vld [vmem:[#allocation3 + $0x131] sm:$0xff] }
 0x540   : > { %4044 = vmatmul.bf16.gmra.mxu2 %v3900_v61  ;;  %v8304_v54 = vpack.c.bf16 %v4104_v46, %v4103_v38  ;;  %v9015_v38 = vld [vmem:[#allocation11_spill] sm:$0xff] }
 0x541   : > { %v3351_v46 = vadd.f32 %v8112_v43, %v9015_v38  ;;  %v4106_v60 = vld [vmem:[#allocation3 + $0x151] sm:$0xff] }
 0x543   : > { %v8273_v11 = vpop.f32.mrf.mxu3  ;;  %v4005_v16 = vpop.f32.mrf.mxu2 }
 0x544   : > { %v8275_v20 = vadd.f32 %v4005_v16, %v3834_v36  ;;  %v8294_v0 = vpop.f32.mrf.mxu1 }
 0x545   : > { %9006 = vst [vmem:[#allocation59_spill] sm:$0xff] %v8294_v0 }
 0x548   : > { %4242 = vmatmul.bf16.gmra.mxu3 %v8280_v37 }
 0x549   : > { %4511 = vmatmul.bf16.gmra.mxu0 %v9001_v3  ;;  %v9007_v3 = vld [vmem:[#allocation46_spill] sm:$0xff] }
 0x54a   : > { %4739 = vmatmul.bf16.gmra.mxu1 %v3900_v61  ;;  %v9008_v61 = vld [vmem:[#allocation26_spill] sm:$0xff] }
 0x54b   : > { %v8289_v36 = vpop.f32.mrf.mxu3  ;;  %v4007_v16 = vpop.f32.mrf.mxu2  ;;  %v3346_v47 = vadd.f32 %v9008_v61, %v9007_v3 }
 0x54c   : > { %v8291_v7 = vadd.f32 %v4007_v16, %v3835_v28  ;;  %v9010_v28 = vld [vmem:[#allocation30_spill] sm:$0xff]  ;;  %v8307_v10 = vpop.f32.mrf.mxu1 }
 0x54d   : > { %v3604_v16 = vadd.f32 %v9010_v28, %v3346_v47  ;;  %9011 = vst [vmem:[#allocation83_spill] sm:$0xff] %v8307_v10  ;;  %v9014_v47 = vld [vmem:[#allocation13_spill] sm:$0xff] }
 0x54f   : > { %v3837_v12 = vadd.f32 %v9013_v8, %v3604_v16 }
 0x550   : > { %4049 = vmatmul.bf16.gmra.mxu2 %v3901_v31 }
 0x553   : > { %v8299_v50 = vpop.f32.mrf.mxu3  ;;  %v4010_v32 = vpop.f32.mrf.mxu2 }
 0x554   : > { %v8301_v34 = vadd.f32 %v4010_v32, %v3836_v18  ;;  %v3605_v18 = vadd.f32 %v9014_v47, %v3349_v63  ;;  %v9019_v63 = vld [vmem:[#allocation15_spill] sm:$0xff] }
 0x558   : > { %4247 = vmatmul.bf16.gmra.mxu3 %v8304_v54 }
 0x55a   : > { %4744 = vmatmul.bf16.gmra.mxu1 %v3901_v31  ;;  %v9016_v31 = vld [vmem:[#allocation82_spill] sm:$0xff] }
 0x55b   : > { %v4208_v6 = vpop.f32.mrf.mxu3  ;;  %v4012_v3 = vpop.f32.mrf.mxu2  ;;  %v3838_v28 = vadd.f32 %v9016_v31, %v3605_v18 }
 0x55c   : > { %v8313_v61 = vadd.f32 %v4208_v6, %v8116_v52  ;;  %v8315_v32 = vadd.f32 %v4012_v3, %v3837_v12  ;;  %v9017_v12 = vld [vmem:[#allocation14_spill] sm:$0xff]  ;;  %v8328_v3 = vpack.c.bf16 %v4106_v60, %v4105_v29  ;;  %v8345_v60 = vpop.f32.mrf.mxu1 }
 0x55d   : > { %v3606_v6 = vadd.f32 %v9017_v12, %v3351_v46  ;;  %v9022_v46 = vld [vmem:[#allocation35_spill] sm:$0xff]  ;;  %9023 = vst [vmem:[#allocation60_spill] sm:$0xff] %v8345_v60 }
 0x55e   : > { %v3356_v29 = vadd.f32 %v8140_v30, %v9022_v46  ;;  %v9026_v30 = vld [vmem:[#allocation81_spill] sm:$0xff] }
 0x55f   : > { %v3839_v47 = vadd.f32 %v9019_v63, %v3606_v6  ;;  %v4108_v63 = vld [vmem:[#allocation3 + $0x171] sm:$0xff] }
 0x560   : > { %4907 = vmatmul.bf16.vlgmr.msra.gmra.mxu2 %v8119_v62  ;;  %v9018_v62 = vld [vmem:[#allocation33_spill] sm:$0xff] }
 0x561   : > { %v3354_v43 = vadd.f32 %v8130_v56, %v9018_v62  ;;  %v9024_v56 = vld [vmem:[#allocation17_spill] sm:$0xff] }
 0x562   : > { %v4107_v62 = vld [vmem:[#allocation3 + $0x169] sm:$0xff] }
 0x563   : > { %v4210_v10 = vpop.f32.mrf.mxu3  ;;  %v4015_v16 = vpop.f32.mrf.mxu2 }
 0x564   : > { %v8323_v8 = vadd.f32 %v4210_v10, %v8132_v1  ;;  %v8325_v52 = vadd.f32 %v4015_v16, %v3838_v28  ;;  %v9020_v10 = vld [vmem:[#allocation38_spill] sm:$0xff]  ;;  %v8340_v16 = vpop.f32.mrf.mxu0  ;;  %v8362_v0 = vpop.f32.mrf.mxu1 }
 0x565   : > { %v3607_v28 = vadd.f32 %v9020_v10, %v3354_v43  ;;  %9021 = vst [vmem:[#allocation41_spill] sm:$0xff] %v8340_v16  ;;  %v9025_v43 = vld [vmem:[#allocation71_spill] sm:$0xff]  ;;  %v8354_v10 = vpack.c.bf16 %v4108_v63, %v4107_v62  ;;  %v9030_v62 = vld [vmem:[#allocation69_spill] sm:$0xff]  ;;  %v9031_v63 = vld [vmem:[#allocation90_spill] sm:$0xff] }
 0x567   : > { %v3840_v12 = vadd.f32 %v9024_v56, %v3607_v28  ;;  %v9028_v28 = vld [vmem:[#allocation73_spill] sm:$0xff] }
 0x568   : > { %4252 = vmatmul.bf16.gmra.mxu3 %v8328_v3 }
 0x56b   : > { %v4213_v18 = vpop.f32.mrf.mxu3  ;;  %v4017_v38 = vpop.f32.mrf.mxu2 }
 0x56c   : > { %v8335_v31 = vadd.f32 %v4213_v18, %v8144_v17  ;;  %v8337_v1 = vadd.f32 %v4017_v38, %v3839_v47  ;;  %v3608_v38 = vadd.f32 %v9025_v43, %v3356_v29  ;;  %v8359_v46 = vpop.f32.mrf.mxu0  ;;  %v9029_v29 = vld [vmem:[#allocation87_spill] sm:$0xff] }
 0x56d   : > { %9027 = vst [vmem:[#allocation84_spill] sm:$0xff] %v8359_v46 }
 0x56e   : > { %v3841_v56 = vadd.f32 %v9028_v28, %v3608_v38  ;;  %v4109_v38 = vld [vmem:[#allocation3 + $0x189] sm:$0xff] }
 0x570   : > { %4912 = vmatmul.bf16.gmra.mxu2 %v8147_v22  ;;  %v3359_v22 = vadd.f32 %v8155_v14, %v9026_v30  ;;  %v3361_v14 = vadd.f32 %v8167_v40, %v9030_v62  ;;  %v4110_v30 = vld [vmem:[#allocation3 + $0x191] sm:$0xff] }
 0x571   : > { %v9035_v40 = vld [vmem:[#allocation39_spill] sm:$0xff] }
 0x573   : > { %v4215_v6 = vpop.f32.mrf.mxu3  ;;  %v4020_v17 = vpop.f32.mrf.mxu2 }
 0x574   : > { %v8349_v47 = vadd.f32 %v4215_v6, %v8157_v25  ;;  %v8351_v18 = vadd.f32 %v4020_v17, %v3840_v12  ;;  %v3609_v6 = vadd.f32 %v9029_v29, %v3359_v22  ;;  %v8374_v46 = vpop.f32.mrf.mxu0  ;;  %v3364_v29 = vadd.f32 %v8183_v44, %v9035_v40 }
 0x575   : > { %9032 = vst [vmem:[#allocation44_spill] sm:$0xff] %v8374_v46 }
 0x576   : > { %v3842_v17 = vadd.f32 %v9031_v63, %v3609_v6  ;;  %v9036_v6 = vld [vmem:[#allocation22_spill] sm:$0xff] }
 0x578   : > { %4257 = vmatmul.bf16.gmra.mxu3 %v8354_v10 }
 0x57b   : > { %v4218_v60 = vpop.f32.mrf.mxu3  ;;  %v4022_v16 = vpop.f32.mrf.mxu2 }
 0x57c   : > { %v8365_v25 = vadd.f32 %v4218_v60, %v8169_v57  ;;  %v8367_v12 = vadd.f32 %v4022_v16, %v3841_v56  ;;  %v9033_v60 = vld [vmem:[#allocation20_spill] sm:$0xff]  ;;  %v8382_v56 = vpop.f32.mrf.mxu1 }
 0x57d   : > { %v3610_v22 = vadd.f32 %v9033_v60, %v3361_v14  ;;  %9034 = vst [vmem:[#allocation62_spill] sm:$0xff] %v8382_v56  ;;  %v9041_v60 = vld [vmem:[#allocation100_spill] sm:$0xff]  ;;  %v4112_v56 = vld [vmem:[#allocation3 + $0x1b1] sm:$0xff] }
 0x57f   : > { %v3843_v62 = vadd.f32 %v9036_v6, %v3610_v22  ;;  %v4111_v6 = vld [vmem:[#allocation3 + $0x1a9] sm:$0xff] }
 0x580   : > { %4917 = vmatmul.bf16.gmra.mxu2 %v8172_v2  ;;  %v8384_v2 = vpack.c.bf16 %v4110_v30, %v4109_v38  ;;  %v9040_v30 = vld [vmem:[#allocation85_spill] sm:$0xff] }
 0x581   : > { %v3366_v44 = vadd.f32 %v8195_v35, %v9040_v30  ;;  %v9044_v35 = vld [vmem:[#allocation42_spill] sm:$0xff] }
 0x582   : > { %v9046_v30 = vld [vmem:[#allocation50_spill] sm:$0xff] }
 0x583   : > { %v4220_v43 = vpop.f32.mrf.mxu3  ;;  %v4025_v28 = vpop.f32.mrf.mxu2 }
 0x584   : > { %v8377_v57 = vadd.f32 %v4220_v43, %v8187_v48  ;;  %v8379_v16 = vadd.f32 %v4025_v28, %v3842_v17  ;;  %v9038_v43 = vld [vmem:[#allocation45_spill] sm:$0xff]  ;;  %v8396_v28 = vpop.f32.mrf.mxu0  ;;  %v8398_v38 = vpop.f32.mrf.mxu1 }
 0x585   : > { %v3611_v14 = vadd.f32 %v9038_v43, %v3364_v29  ;;  %9039 = vst [vmem:[#allocation47_spill] sm:$0xff] %v8398_v38  ;;  %v9043_v29 = vld [vmem:[#allocation48_spill] sm:$0xff]  ;;  %v8410_v43 = vpack.c.bf16 %v4112_v56, %v4111_v6  ;;  %v9049_v6 = vld [vmem:[#allocation89_spill] sm:$0xff] }
 0x586   : > { %v9048_v56 = vld [vmem:[#allocation24_spill] sm:$0xff] }
 0x587   : > { %v3844_v22 = vadd.f32 %v9041_v60, %v3611_v14 }
 0x588   : > { %4262 = vmatmul.bf16.gmra.mxu3 %v8384_v2 }
 0x58b   : > { %v4223_v63 = vpop.f32.mrf.mxu3  ;;  %v4027_v46 = vpop.f32.mrf.mxu2 }
 0x58c   : > { %v8391_v48 = vadd.f32 %v4223_v63, %v8197_v26  ;;  %v8393_v17 = vadd.f32 %v4027_v46, %v3843_v62  ;;  %v3612_v63 = vadd.f32 %v9043_v29, %v3366_v44  ;;  %v8417_v14 = vpop.f32.mrf.mxu1 }
 0x58d   : > { %9045 = vst [vmem:[#allocation88_spill] sm:$0xff] %v8417_v14 }
 0x58e   : > { %9037 = vst [vmem:[#allocation86_spill] sm:$0xff] %v8393_v17  ;;  %v8412_v17 = vpop.f32.mrf.mxu0  ;;  %v3845_v60 = vadd.f32 %v9046_v30, %v3612_v63  ;;  %v4113_v63 = vld [vmem:[#allocation3 + $0x1c9] sm:$0xff]  ;;  %v4114_v30 = vld [vmem:[#allocation3 + $0x1d1] sm:$0xff] }
 0x590   : > { %4922 = vmatmul.bf16.gmra.mxu2 %v8202_v4  ;;  %v3369_v4 = vadd.f32 %v8208_v49, %v9044_v35  ;;  %v9050_v49 = vld [vmem:[#allocation99_spill] sm:$0xff] }
 0x592   : > { %v3613_v44 = vadd.f32 %v9048_v56, %v3369_v4 }
 0x593   : > { %v4225_v40 = vpop.f32.mrf.mxu3  ;;  %v4030_v26 = vpop.f32.mrf.mxu2 }
 0x594   : > { %v8405_v46 = vadd.f32 %v4225_v40, %v8212_v24  ;;  %v8407_v62 = vadd.f32 %v4030_v26, %v3844_v22  ;;  %v3371_v26 = vadd.f32 %v8220_v58, %v9049_v6  ;;  %v3846_v35 = vadd.f32 %v9050_v49, %v3613_v44  ;;  %v9053_v58 = vld [vmem:[#allocation74_spill] sm:$0xff] }
 0x596   : > { %9042 = vst [vmem:[#allocation63_spill] sm:$0xff] %v8407_v62  ;;  %v8429_v29 = vpop.f32.mrf.mxu0 }
 0x598   : > { %4267 = vmatmul.bf16.gmra.mxu3 %v8410_v43 }
 0x59b   : > { %v4228_v38 = vpop.f32.mrf.mxu3  ;;  %v4032_v24 = vpop.f32.mrf.mxu2 }
 0x59c   : > { %v8421_v22 = vadd.f32 %v4228_v38, %v8222_v39  ;;  %v8423_v40 = vadd.f32 %v4032_v24, %v3845_v60  ;;  %v8434_v39 = vpop.f32.mrf.mxu1  ;;  %v9052_v60 = vld [vmem:[#allocation76_spill] sm:$0xff]  ;;  %v8439_v24 = vpack.c.bf16 %v4114_v30, %v4113_v63  ;;  %v4352_v30 = vld [vmem:[#allocation3 + $0x22f] sm:$0xff] }
 0x59d   : > { %v3614_v4 = vadd.f32 %v9052_v60, %v3371_v26  ;;  %v4351_v63 = vld [vmem:[#allocation3 + $0x227] sm:$0xff] }
 0x59e   : > { %9047 = vst [vmem:[#allocation49_spill] sm:$0xff] %v8423_v40  ;;  %v8445_v49 = vpop.f32.mrf.mxu0  ;;  %v6202_v60 = vld [vmem:[#allocation2] sm:$0xff] }
 0x59f   : > { %v3847_v56 = vadd.f32 %v8107_v23, %v3614_v4  ;;  %v9055_v23 = vld [vmem:[#allocation92_spill] sm:$0xff] }
 0x5a0   : > { %4927 = vmatmul.bf16.gmra.mxu2 %v8227_v42  ;;  %v3374_v42 = vadd.f32 %v8238_v27, %v9053_v58  ;;  %v4368_v27 = vpack.c.bf16 %v4352_v30, %v4351_v63  ;;  %v3376_v4 = vadd.f32 %v8248_v55, %v9055_v23  ;;  %v9059_v55 = vld [vmem:[#allocation75_spill] sm:$0xff] }
 0x5a2   : > { %v3615_v26 = vadd.f32 %v8100_v53, %v3374_v42  ;;  %4516 = vmatmul.bf16.gmra.mxu0 %v4368_v27 }
 0x5a3   : > { %v8432_v62 = vpop.f32.mrf.mxu3  ;;  %v4035_v14 = vpop.f32.mrf.mxu2 }
 0x5a4   : > { %v8436_v38 = vadd.f32 %v4035_v14, %v3846_v35  ;;  %v8453_v35 = vpop.f32.mrf.mxu1 }
 0x5a6   : > { %9051 = vst [vmem:[#allocation64_spill] sm:$0xff] %v8436_v38  ;;  %v4601_v38 = vpack.c.bf16 %v6202_v60, %v6202_v60  ;;  %v9058_v60 = vld [vmem:[#allocation77_spill] sm:$0xff]  ;;  %v8465_v30 = vpop.f32.mrf.mxu0 }
 0x5a7   : > { %v3616_v63 = vadd.f32 %v9058_v60, %v3376_v4  ;;  %v9061_v4 = vld [vmem:[#allocation53_spill] sm:$0xff] }
 0x5a8   : > { %4272 = vmatmul.bf16.gmra.mxu3 %v8439_v24  ;;  %4749 = vmatmul.bf16.gmra.mxu1 %v4601_v38 }
 0x5a9   : > { %v3849_v27 = vadd.f32 %v8142_v45, %v3616_v63  ;;  %v4117_v63 = vld [vmem:[#allocation3 + $0x209] sm:$0xff] }
 0x5ab   : > { %v4233_v44 = vpop.f32.mrf.mxu3  ;;  %v4037_v6 = vpop.f32.mrf.mxu2 }
 0x5ac   : > { %v8448_v40 = vadd.f32 %v4233_v44, %v8252_v5  ;;  %v8450_v14 = vadd.f32 %v4037_v6, %v3847_v56  ;;  %v9056_v5 = vld [vmem:[#allocation29_spill] sm:$0xff]  ;;  %v4116_v6 = vld [vmem:[#allocation3 + $0x1f1] sm:$0xff]  ;;  %v8469_v38 = vpop.f32.mrf.mxu1 }
 0x5ad   : > { %v3848_v58 = vadd.f32 %v9056_v5, %v3615_v26  ;;  %v4115_v44 = vld [vmem:[#allocation3 + $0x1e9] sm:$0xff]  ;;  %v3379_v26 = vadd.f32 %v8263_v19, %v9059_v55  ;;  %v4118_v55 = vld [vmem:[#allocation3 + $0x211] sm:$0xff] }
 0x5ae   : > { %9054 = vst [vmem:[#allocation91_spill] sm:$0xff] %v8450_v14 }
 0x5b0   : > { %4932 = vmatmul.bf16.gmra.mxu2 %v8255_v41  ;;  %v8467_v41 = vpack.c.bf16 %v4116_v6, %v4115_v44  ;;  %v8481_v44 = vpop.f32.mrf.mxu0  ;;  %v9062_v6 = vld [vmem:[#allocation95_spill] sm:$0xff] }
 0x5b3   : > { %v4235_v56 = vpop.f32.mrf.mxu3  ;;  %v4040_v53 = vpop.f32.mrf.mxu2 }
 0x5b4   : > { %v8460_v42 = vadd.f32 %v4235_v56, %v8265_v13  ;;  %v8462_v14 = vadd.f32 %v4040_v53, %v3848_v58  ;;  %v3617_v56 = vadd.f32 %v9061_v4, %v3379_v26  ;;  %v3381_v53 = vadd.f32 %v8273_v11, %v9062_v6  ;;  %v8486_v60 = vpop.f32.mrf.mxu1  ;;  %v9064_v11 = vld [vmem:[#allocation97_spill] sm:$0xff] }
 0x5b6   : > { %9057 = vst [vmem:[#allocation52_spill] sm:$0xff] %v8462_v14  ;;  %v3850_v45 = vadd.f32 %v8160_v59, %v3617_v56  ;;  %v3618_v26 = vadd.f32 %v8149_v51, %v3381_v53  ;;  %v9066_v51 = vld [vmem:[#allocation78_spill] sm:$0xff] }
 0x5b8   : > { %4277 = vmatmul.bf16.gmra.mxu3 %v8467_v41  ;;  %v8500_v4 = vpop.f32.mrf.mxu0  ;;  %v3851_v59 = vadd.f32 %v8174_v21, %v3618_v26 }
 0x5bb   : > { %v4238_v23 = vpop.f32.mrf.mxu3  ;;  %v4042_v13 = vpop.f32.mrf.mxu2 }
 0x5bc   : > { %v8476_v5 = vadd.f32 %v4238_v23, %v8275_v20  ;;  %v8478_v58 = vadd.f32 %v4042_v13, %v3849_v27  ;;  %v8495_v13 = vpack.c.bf16 %v4118_v55, %v4117_v63 }
 0x5be   : > { %9060 = vst [vmem:[#allocation65_spill] sm:$0xff] %v8478_v58  ;;  %v8503_v58 = vpop.f32.mrf.mxu1 }
 0x5c0   : > { %4937 = vmatmul.bf16.gmra.mxu2 %v8280_v37  ;;  %v3384_v37 = vadd.f32 %v8289_v36, %v9064_v11  ;;  %v9069_v11 = vld [vmem:[#allocation32_spill] sm:$0xff] }
 0x5c2   : > { %v3619_v53 = vadd.f32 %v9066_v51, %v3384_v37  ;;  %v4522_v51 = vadd.f32 %v8200_v33, %v8313_v61  ;;  %v9072_v33 = vld [vmem:[#allocation31_spill] sm:$0xff] }
 0x5c3   : > { %v4240_v19 = vpop.f32.mrf.mxu3  ;;  %v4045_v20 = vpop.f32.mrf.mxu2  ;;  %v4523_v61 = vadd.f32 %v9072_v33, %v8323_v8  ;;  %v2954_v8 = vld [vmem:[#allocation2 + $0x28] sm:$0xff] }
 0x5c4   : > { %v8490_v27 = vadd.f32 %v4240_v19, %v8291_v7  ;;  %v8492_v23 = vadd.f32 %v4045_v20, %v3850_v45  ;;  %v9067_v19 = vld [vmem:[#allocation51_spill] sm:$0xff]  ;;  %v3852_v63 = vadd.f32 %v8192_v15, %v3619_v53  ;;  %v8515_v20 = vpop.f32.mrf.mxu0 }
 0x5c5   : > { %v3386_v36 = vadd.f32 %v8299_v50, %v9067_v19  ;;  %v6168_v53 = vld [vmem:[%s8713_s7 + $0x38] sm:$0xff] }
 0x5c6   : > { %9063 = vst [vmem:[#allocation93_spill] sm:$0xff] %v8492_v23  ;;  %5224 = vmatpush.bf16.msrb.mxu3 %v6168_v53 }
 0x5c8   : > { %4282 = vmatmul.bf16.gmra.mxu3 %v8495_v13 }
 0x5cb   : > { %v4243_v56 = vpop.f32.mrf.mxu3  ;;  %v4047_v6 = vpop.f32.mrf.mxu2 }
 0x5cc   : > { %v8506_v7 = vadd.f32 %v4243_v56, %v8301_v34  ;;  %v8508_v45 = vadd.f32 %v4047_v6, %v3851_v59  ;;  %v3620_v59 = vadd.f32 %v9069_v11, %v3386_v36  ;;  %v8523_v56 = vpop.f32.mrf.mxu1  ;;  %v8550_v11 = vld [vmem:[%s8712_s6] ss:$0 sm:$0xff] }
 0x5ce   : > { %9065 = vst [vmem:[#allocation54_spill] sm:$0xff] %v8508_v45  ;;  %v9075_v45 = vld [vmem:[#allocation80_spill] sm:$0xff] }
 0x5d0   : > { %4942 = vmatmul.bf16.gmra.mxu2 %v8304_v54  ;;  %v3853_v54 = vadd.f32 %v8210_v9, %v3620_v59  ;;  %v9071_v9 = vld [vmem:[#allocation55_spill] sm:$0xff] }
 0x5d1   : > { %v4755_v36 = vadd.f32 %v9071_v9, %v4522_v51 }
 0x5d3   : > { %v4245_v55 = vpop.f32.mrf.mxu3  ;;  %v4050_v21 = vpop.f32.mrf.mxu2 }
 0x5d4   : > { %v8518_v26 = vadd.f32 %v4245_v55, %v8315_v32  ;;  %v8520_v34 = vadd.f32 %v4050_v21, %v3852_v63  ;;  %v8533_v32 = vpop.f32.mrf.mxu0  ;;  %v8538_v19 = vpop.f32.mrf.mxu1 }
 0x5d6   : > { %9068 = vst [vmem:[#allocation66_spill] sm:$0xff] %v8520_v34 }
 0x5db   : > { %v4248_v37 = vpop.f32.mrf.mxu3  ;;  %v4052_v6 = vpop.f32.mrf.mxu2 }
 0x5dc   : > { %v8527_v50 = vadd.f32 %v4248_v37, %v8325_v52  ;;  %v8529_v15 = vadd.f32 %v4052_v6, %v3853_v54  ;;  %v8552_v59 = vpop.f32.mrf.mxu0  ;;  %v9073_v37 = vld [vmem:[#allocation16_spill] sm:$0xff] }
 0x5dd   : > { %v4756_v6 = vadd.f32 %v9073_v37, %v4523_v61 }
 0x5de   : > { %9070 = vst [vmem:[#allocation96_spill] sm:$0xff] %v8529_v15  ;;  %v2955_v15 = vld [vmem:[#allocation2 + $0x30] sm:$0xff] }
 0x5e0   : > { %4947 = vmatmul.bf16.gmra.mxu2 %v8328_v3  ;;  %v8554_v3 = vpop.f32.mrf.mxu1 }
 0x5e3   : > { %v4250_v52 = vpop.f32.mrf.mxu3  ;;  %v4908_v63 = vpop.f32.mrf.mxu2 }
 0x5e4   : > { %v8543_v55 = vadd.f32 %v4250_v52, %v8337_v1  ;;  %v4988_v21 = vadd.f32 %v4908_v63, %v4755_v36  ;;  %v9074_v36 = vld [vmem:[#allocation79_spill] sm:$0xff] }
 0x5e5   : > { %v4524_v52 = vadd.f32 %v9074_v36, %v8335_v31 }
 0x5e6   : > { %v5024_v54 = vadd.f32 %v8550_v11, %v4988_v21  ;;  %v8565_v21 = vpop.f32.mrf.mxu0 }
 0x5e7   : > { %v4757_v23 = vadd.f32 %v9075_v45, %v4524_v52 }
 0x5e8   : > { %v5056_v63 = vadd.f32 %v5024_v54, %v2954_v8  ;;  %v8571_v54 = vpop.f32.mrf.mxu1  ;;  %v2956_v8 = vld [vmem:[#allocation2 + $0x48] sm:$0xff] }
 0x5ea   : > { %v5088_v61 = vmax.f32 %v5056_v63, 0.0 }
 0x5eb   : > { %v4253_v51 = vpop.f32.mrf.mxu3  ;;  %v4910_v1 = vpop.f32.mrf.mxu2 }
 0x5ec   : > { %v8559_v53 = vadd.f32 %v4253_v51, %v8351_v18  ;;  %v4989_v9 = vadd.f32 %v4910_v1, %v4756_v6 }
 0x5ee   : > { %v5025_v33 = vadd.f32 %v8550_v11, %v4989_v9  ;;  %v9076_v9 = vld [vmem:[#allocation57_spill] sm:$0xff] }
 0x5f0   : > { %v5057_v34 = vadd.f32 %v5025_v33, %v2955_v15  ;;  %4952 = vmatmul.bf16.gmra.mxu2 %v8354_v10  ;;  %v4525_v15 = vadd.f32 %v9076_v9, %v8349_v47  ;;  %v4725_v9 = vpop.f32.mrf.mxu1 }
 0x5f2   : > { %v5089_v37 = vmax.f32 %v5057_v34, 0.0  ;;  %v9077_v34 = vld [vmem:[#allocation4_spill] sm:$0xff] }
 0x5f3   : > { %v4255_v18 = vpop.f32.mrf.mxu3  ;;  %v4913_v51 = vpop.f32.mrf.mxu2  ;;  %v4758_v33 = vadd.f32 %v9077_v34, %v4525_v15  ;;  %v9080_v34 = vld [vmem:[#allocation18_spill] sm:$0xff] }
 0x5f4   : > { %v8569_v6 = vadd.f32 %v4255_v18, %v8367_v12  ;;  %v5120_v1 = vadd.f32 %v5089_v37, %v5088_v61  ;;  %v4990_v31 = vadd.f32 %v4913_v51, %v4757_v23  ;;  %v4492_v61 = vpop.f32.mrf.mxu0  ;;  %v9078_v23 = vld [vmem:[#allocation37_spill] sm:$0xff] }
 0x5f5   : > { %v4526_v37 = vadd.f32 %v9078_v23, %v8365_v25  ;;  %v9081_v23 = vld [vmem:[#allocation83_spill] sm:$0xff] }
 0x5f6   : > { %v5026_v10 = vadd.f32 %v8550_v11, %v4990_v31  ;;  %v6167_v31 = vld [vmem:[%s8713_s7 + $0x30] sm:$0xff] }
 0x5f7   : > { %5225 = vmatpush.bf16.msrb.mxu3 %v6167_v31 }
 0x5f8   : > { %v5058_v36 = vadd.f32 %v5026_v10, %v2956_v8  ;;  %v2957_v10 = vld [vmem:[#allocation2 + $0x50] sm:$0xff]  ;;  %v9079_v8 = vld [vmem:[#allocation59_spill] sm:$0xff] }
 0x5fa   : > { %v5090_v63 = vmax.f32 %v5058_v36, 0.0  ;;  %v4759_v36 = vadd.f32 %v9079_v8, %v4526_v37 }
 0x5fb   : > { %v4258_v45 = vpop.f32.mrf.mxu3  ;;  %v4915_v52 = vpop.f32.mrf.mxu2 }
 0x5fc   : > { %v4308_v14 = vadd.f32 %v4258_v45, %v8379_v16  ;;  %v5121_v12 = vadd.f32 %v5120_v1, %v5090_v63  ;;  %v4991_v18 = vadd.f32 %v4915_v52, %v4758_v33  ;;  %v4527_v33 = vadd.f32 %v9080_v34, %v8377_v57  ;;  %v2958_v52 = vld [vmem:[#allocation2 + $0x68] sm:$0xff]  ;;  %v9084_v34 = vld [vmem:[#allocation84_spill] sm:$0xff] }
 0x5fe   : > { %v4542_v51 = vadd.f32 %v4492_v61, %v4308_v14  ;;  %v5027_v47 = vadd.f32 %v8550_v11, %v4991_v18 }
 0x600   : > { %v5059_v15 = vadd.f32 %v5027_v47, %v2957_v10  ;;  %4957 = vmatmul.bf16.gmra.mxu2 %v8384_v2  ;;  %v8585_v16 = vadd.f32 %v4725_v9, %v4542_v51  ;;  %v4760_v47 = vadd.f32 %v9081_v23, %v4527_v33  ;;  %v9082_v9 = vld [vmem:[#allocation41_spill] sm:$0xff]  ;;  %v4529_v33 = vadd.f32 %v9084_v34, %v8405_v46  ;;  %v2961_v46 = vld [vmem:[#allocation2 + $0x90] sm:$0xff] }
 0x601   : > { %v4528_v10 = vadd.f32 %v9082_v9, %v8391_v48 }
 0x602   : > { %v5091_v1 = vmax.f32 %v5059_v15, 0.0 }
 0x603   : > { %v4918_v63 = vpop.f32.mrf.mxu2 }
 0x604   : > { %v5122_v25 = vadd.f32 %v5121_v12, %v5091_v1  ;;  %v4992_v14 = vadd.f32 %v4918_v63, %v4759_v36  ;;  %v2959_v12 = vld [vmem:[#allocation2 + $0x70] sm:$0xff]  ;;  %v9083_v1 = vld [vmem:[#allocation60_spill] sm:$0xff] }
 0x605   : > { %v4761_v8 = vadd.f32 %v9083_v1, %v4528_v10  ;;  %v9086_v10 = vld [vmem:[#allocation34_spill] sm:$0xff] }
 0x606   : > { %v5028_v45 = vadd.f32 %v8550_v11, %v4992_v14 }
 0x608   : > { %v5060_v18 = vadd.f32 %v5028_v45, %v2958_v52  ;;  %v2960_v45 = vld [vmem:[#allocation2 + $0x88] sm:$0xff] }
 0x60a   : > { %v5092_v61 = vmax.f32 %v5060_v18, 0.0  ;;  %v4762_v18 = vadd.f32 %v8362_v0, %v4529_v33  ;;  %v4297_v0 = vadd.f32 %v8432_v62, %v9086_v10  ;;  %v9088_v33 = vld [vmem:[#allocation47_spill] sm:$0xff]  ;;  %v4532_v62 = vadd.f32 %v8412_v17, %v8448_v40 }
 0x60b   : > { %v4920_v2 = vpop.f32.mrf.mxu2 }
 0x60c   : > { %v5123_v31 = vadd.f32 %v5122_v25, %v5092_v61  ;;  %v4993_v51 = vadd.f32 %v4920_v2, %v4760_v47 }
 0x60e   : > { %v5029_v37 = vadd.f32 %v8550_v11, %v4993_v51 }
 0x610   : > { %v5061_v15 = vadd.f32 %v5029_v37, %v2959_v12  ;;  %4962 = vmatmul.bf16.gmra.mxu2 %v8410_v43  ;;  %v9085_v43 = vld [vmem:[#allocation44_spill] sm:$0xff]  ;;  %v9087_v12 = vld [vmem:[#allocation62_spill] sm:$0xff] }
 0x611   : > { %v4530_v2 = vadd.f32 %v9085_v43, %v8421_v22 }
 0x612   : > { %v5093_v57 = vmax.f32 %v5061_v15, 0.0 }
 0x613   : > { %v4923_v36 = vpop.f32.mrf.mxu2  ;;  %v4763_v15 = vadd.f32 %v9087_v12, %v4530_v2 }
 0x614   : > { %v5124_v63 = vadd.f32 %v5123_v31, %v5093_v57  ;;  %v4994_v14 = vadd.f32 %v4923_v36, %v4761_v8  ;;  %v6166_v31 = vld [vmem:[%s8713_s7 + $0x28] sm:$0xff]  ;;  %v4531_v8 = vadd.f32 %v8396_v28, %v4297_v0 }
 0x615   : > { %5226 = vmatpush.bf16.msrb.mxu3 %v6166_v31  ;;  %v4533_v31 = vadd.f32 %v8429_v29, %v8460_v42  ;;  %v2965_v29 = vld [vmem:[#allocation2 + $0xd0] sm:$0xff] }
 0x616   : > { %v5030_v25 = vadd.f32 %v8550_v11, %v4994_v14 }
 0x617   : > { %v4766_v40 = vadd.f32 %v8434_v39, %v4533_v31 }
 0x618   : > { %v5062_v52 = vadd.f32 %v5030_v25, %v2960_v45  ;;  %v4764_v25 = vadd.f32 %v9088_v33, %v4531_v8  ;;  %v4818_v33 = vld [vmem:[#allocation3 + $0x231] sm:$0xff] }
 0x61a   : > { %v5094_v48 = vmax.f32 %v5062_v52, 0.0 }
 0x61b   : > { %v4925_v61 = vpop.f32.mrf.mxu2 }
 0x61c   : > { %v5125_v23 = vadd.f32 %v5124_v63, %v5094_v48  ;;  %v4995_v47 = vadd.f32 %v4925_v61, %v4762_v18  ;;  %v2962_v63 = vld [vmem:[#allocation2 + $0xa8] sm:$0xff]  ;;  %v2963_v18 = vld [vmem:[#allocation2 + $0xb0] sm:$0xff] }
 0x61e   : > { %v5031_v51 = vadd.f32 %v8550_v11, %v4995_v47 }
 0x620   : > { %v5063_v9 = vadd.f32 %v5031_v51, %v2961_v46  ;;  %4967 = vmatmul.bf16.gmra.mxu2 %v8439_v24 }
 0x622   : > { %v5095_v37 = vmax.f32 %v5063_v9, 0.0  ;;  %v2964_v9 = vld [vmem:[#allocation2 + $0xc8] sm:$0xff] }
 0x623   : > { %v4928_v57 = vpop.f32.mrf.mxu2 }
 0x624   : > { %v5126_v1 = vadd.f32 %v5125_v23, %v5095_v37  ;;  %v4996_v22 = vadd.f32 %v4928_v57, %v4763_v15  ;;  %v9089_v23 = vld [vmem:[#allocation88_spill] sm:$0xff]  ;;  %v4534_v15 = vadd.f32 %v8445_v49, %v8476_v5  ;;  %v4817_v5 = vld [vmem:[#allocation3 + $0x229] sm:$0xff] }
 0x625   : > { %v4765_v47 = vadd.f32 %v9089_v23, %v4532_v62  ;;  %v4834_v62 = vpack.c.bf16 %v4818_v33, %v4817_v5 }
 0x626   : > { %v5032_v36 = vadd.f32 %v8550_v11, %v4996_v22  ;;  %v4767_v39 = vadd.f32 %v8453_v35, %v4534_v15  ;;  %v4536_v35 = vadd.f32 %v8481_v44, %v8506_v7 }
 0x628   : > { %v5064_v14 = vadd.f32 %v5032_v36, %v2962_v63  ;;  %v4535_v63 = vadd.f32 %v8465_v30, %v8490_v27 }
 0x62a   : > { %v5096_v34 = vmax.f32 %v5064_v14, 0.0 }
 0x62b   : > { %v4930_v24 = vpop.f32.mrf.mxu2 }
 0x62c   : > { %v5127_v45 = vadd.f32 %v5126_v1, %v5096_v34  ;;  %v4997_v52 = vadd.f32 %v4930_v24, %v4764_v25  ;;  %v2966_v34 = vld [vmem:[#allocation2 + $0xe8] sm:$0xff]  ;;  %v4768_v24 = vadd.f32 %v8469_v38, %v4535_v63  ;;  %v4537_v38 = vadd.f32 %v8500_v4, %v8518_v26  ;;  %v2969_v4 = vld [vmem:[#allocation2 + $0x110] sm:$0xff] }
 0x62e   : > { %v5033_v48 = vadd.f32 %v8550_v11, %v4997_v52  ;;  %v4770_v44 = vadd.f32 %v8503_v58, %v4537_v38 }
 0x630   : > { %v5065_v61 = vadd.f32 %v5033_v48, %v2963_v18  ;;  %4972 = vmatmul.bf16.gmra.mxu2 %v8467_v41  ;;  %v6165_v41 = vld [vmem:[%s8713_s7 + $0x20] sm:$0xff]  ;;  %v2967_v18 = vld [vmem:[#allocation2 + $0xf0] sm:$0xff] }
 0x631   : > { %5227 = vmatpush.bf16.msrb.mxu3 %v6165_v41  ;;  %v4539_v41 = vadd.f32 %v8533_v32, %v8543_v55 }
 0x632   : > { %v5097_v28 = vmax.f32 %v5065_v61, 0.0  ;;  %v4769_v61 = vadd.f32 %v8486_v60, %v4536_v35  ;;  %v6164_v60 = vld [vmem:[%s8713_s7 + $0x18] sm:$0xff] }
 0x633   : > { %v4933_v43 = vpop.f32.mrf.mxu2 }
 0x634   : > { %v5128_v2 = vadd.f32 %v5127_v45, %v5097_v28  ;;  %v4998_v51 = vadd.f32 %v4933_v43, %v4765_v47 }
 0x635   : > { %5228 = vmatpush.bf16.msrb.mxu3 %v6164_v60 }
 0x636   : > { %v5034_v46 = vadd.f32 %v8550_v11, %v4998_v51 }
 0x638   : > { %v5066_v10 = vadd.f32 %v5034_v46, %v2964_v9 }
 0x63a   : > { %v5098_v17 = vmax.f32 %v5066_v10, 0.0  ;;  %v4538_v10 = vadd.f32 %v8515_v20, %v8527_v50  ;;  %v4772_v20 = vadd.f32 %v8538_v19, %v4539_v41  ;;  %v4260_v50 = vpop.f32.mrf.mxu3 }
 0x63b   : > { %v4935_v0 = vpop.f32.mrf.mxu2 }
 0x63c   : > { %v5129_v37 = vadd.f32 %v5128_v2, %v5098_v17  ;;  %v4999_v12 = vadd.f32 %v4935_v0, %v4766_v40  ;;  %v2968_v2 = vld [vmem:[#allocation2 + $0x108] sm:$0xff]  ;;  %v4771_v0 = vadd.f32 %v8523_v56, %v4538_v10  ;;  %v4540_v56 = vadd.f32 %v8552_v59, %v8559_v53 }
 0x63e   : > { %v5035_v57 = vadd.f32 %v8550_v11, %v4999_v12  ;;  %v4773_v55 = vadd.f32 %v8554_v3, %v4540_v56  ;;  %v6163_v3 = vld [vmem:[%s8713_s7 + $0x10] sm:$0xff] }
 0x63f   : > { %5229 = vmatpush.bf16.msrb.mxu3 %v6163_v3 }
 0x640   : > { %v5067_v42 = vadd.f32 %v5035_v57, %v2965_v29  ;;  %4977 = vmatmul.bf16.gmra.mxu2 %v8495_v13  ;;  %v2970_v57 = vld [vmem:[#allocation2 + $0x128] sm:$0xff] }
 0x642   : > { %v5099_v1 = vmax.f32 %v5067_v42, 0.0  ;;  %v4263_v19 = vpop.f32.mrf.mxu3 }
 0x643   : > { %v4938_v22 = vpop.f32.mrf.mxu2 }
 0x644   : > { %v5130_v8 = vadd.f32 %v5129_v37, %v5099_v1  ;;  %v5000_v36 = vadd.f32 %v4938_v22, %v4767_v39 }
 0x646   : > { %v5036_v14 = vadd.f32 %v8550_v11, %v5000_v36  ;;  %v2971_v36 = vld [vmem:[#allocation2 + $0x130] sm:$0xff] }
 0x648   : > { %v5068_v49 = vadd.f32 %v5036_v14, %v2966_v34  ;;  %v4494_v14 = vpop.f32.mrf.mxu0 }
 0x64a   : > { %v5100_v25 = vmax.f32 %v5068_v49, 0.0  ;;  %v4727_v49 = vpop.f32.mrf.mxu1 }
 0x64b   : > { %v4940_v45 = vpop.f32.mrf.mxu2 }
 0x64c   : > { %v5131_v13 = vadd.f32 %v5130_v8, %v5100_v25  ;;  %v5001_v52 = vadd.f32 %v4940_v45, %v4768_v24  ;;  %v4541_v25 = vadd.f32 %v8565_v21, %v8569_v6  ;;  %v2972_v45 = vld [vmem:[#allocation2 + $0x148] sm:$0xff]  ;;  %v4265_v21 = vpop.f32.mrf.mxu3  ;;  %v2973_v6 = vld [vmem:[#allocation2 + $0x150] sm:$0xff] }
 0x64e   : > { %v5037_v48 = vadd.f32 %v8550_v11, %v5001_v52 }
 0x650   : > { %v5069_v30 = vadd.f32 %v5037_v48, %v2967_v18  ;;  %4982 = vmatmul.bf16.gmra.mxu2 %v4834_v62  ;;  %v4497_v52 = vpop.f32.mrf.mxu0 }
 0x652   : > { %v5101_v27 = vmax.f32 %v5069_v30, 0.0  ;;  %v4730_v18 = vpop.f32.mrf.mxu1 }
 0x653   : > { %v4943_v28 = vpop.f32.mrf.mxu2 }
 0x654   : > { %v5132_v23 = vadd.f32 %v5131_v13, %v5101_v27  ;;  %v5002_v47 = vadd.f32 %v4943_v28, %v4769_v61  ;;  %v4774_v13 = vadd.f32 %v8571_v54, %v4541_v25  ;;  %v9090_v61 = vld [vmem:[#allocation86_spill] sm:$0xff]  ;;  %v6162_v25 = vld [vmem:[%s8713_s7 + $0x8] sm:$0xff] }
 0x655   : > { %v4309_v28 = vadd.f32 %v4260_v50, %v9090_v61  ;;  %5230 = vmatpush.bf16.msrb.mxu3 %v6162_v25 }
 0x656   : > { %v5038_v43 = vadd.f32 %v8550_v11, %v5002_v47 }
 0x658   : > { %v5070_v51 = vadd.f32 %v5038_v43, %v2968_v2  ;;  %v4499_v43 = vpop.f32.mrf.mxu0  ;;  %v4543_v2 = vadd.f32 %v4494_v14, %v4309_v28  ;;  %v9093_v14 = vld [vmem:[#allocation64_spill] sm:$0xff] }
 0x65a   : > { %v5102_v31 = vmax.f32 %v5070_v51, 0.0 }
 0x65b   : > { %v4945_v7 = vpop.f32.mrf.mxu2 }
 0x65c   : > { %v5133_v46 = vadd.f32 %v5132_v23, %v5102_v31  ;;  %v5003_v9 = vadd.f32 %v4945_v7, %v4770_v44  ;;  %v2974_v31 = vld [vmem:[#allocation2 + $0x168] sm:$0xff]  ;;  %v4732_v44 = vpop.f32.mrf.mxu1 }
 0x65e   : > { %v5039_v17 = vadd.f32 %v8550_v11, %v5003_v9  ;;  %v9091_v9 = vld [vmem:[#allocation63_spill] sm:$0xff] }
 0x65f   : > { %v4310_v60 = vadd.f32 %v4263_v19, %v9091_v9 }
 0x660   : > { %v5071_v26 = vadd.f32 %v5039_v17, %v2969_v4  ;;  %v4776_v17 = vadd.f32 %v4727_v49, %v4543_v2 }
 0x662   : > { %v5103_v40 = vmax.f32 %v5071_v26, 0.0 }
 0x663   : > { %v4948_v37 = vpop.f32.mrf.mxu2 }
 0x664   : > { %v5134_v58 = vadd.f32 %v5133_v46, %v5103_v40  ;;  %v5004_v12 = vadd.f32 %v4948_v37, %v4771_v0  ;;  %v4268_v46 = vpop.f32.mrf.mxu3  ;;  %v4544_v0 = vadd.f32 %v4497_v52, %v4310_v60  ;;  %v4735_v41 = vpop.f32.mrf.mxu1  ;;  %v9094_v52 = vld [vmem:[#allocation91_spill] sm:$0xff]  ;;  %v2979_v60 = vld [vmem:[#allocation2 + $0x1b0] sm:$0xff] }
 0x666   : > { %v5040_v15 = vadd.f32 %v8550_v11, %v5004_v12 }
 0x668   : > { %v5072_v29 = vadd.f32 %v5040_v15, %v2970_v57  ;;  %v9092_v15 = vld [vmem:[#allocation49_spill] sm:$0xff] }
 0x669   : > { %v4311_v57 = vadd.f32 %v4265_v21, %v9092_v15 }
 0x66a   : > { %v5104_v42 = vmax.f32 %v5072_v29, 0.0 }
 0x66b   : > { %v4950_v1 = vpop.f32.mrf.mxu2 }
 0x66c   : > { %v5135_v39 = vadd.f32 %v5134_v58, %v5104_v42  ;;  %v5005_v22 = vadd.f32 %v4950_v1, %v4772_v20  ;;  %v4502_v58 = vpop.f32.mrf.mxu0  ;;  %v4777_v42 = vadd.f32 %v4730_v18, %v4544_v0  ;;  %v4270_v20 = vpop.f32.mrf.mxu3 }
 0x66e   : > { %v5041_v8 = vadd.f32 %v8550_v11, %v5005_v22  ;;  %v4545_v22 = vadd.f32 %v4499_v43, %v4311_v57 }
 0x670   : > { %v5073_v63 = vadd.f32 %v5041_v8, %v2971_v36  ;;  %v2976_v8 = vld [vmem:[#allocation2 + $0x188] sm:$0xff] }
 0x672   : > { %v5105_v32 = vmax.f32 %v5073_v63, 0.0 }
 0x673   : > { %v4953_v34 = vpop.f32.mrf.mxu2 }
 0x674   : > { %v5136_v5 = vadd.f32 %v5135_v39, %v5105_v32  ;;  %v5006_v33 = vadd.f32 %v4953_v34, %v4773_v55  ;;  %v4504_v63 = vpop.f32.mrf.mxu0  ;;  %v4312_v32 = vadd.f32 %v4268_v46, %v9093_v14  ;;  %v4778_v34 = vadd.f32 %v4732_v44, %v4545_v22  ;;  %v6161_v14 = vld [vmem:[%s8713_s7] sm:$0xff] }
 0x675   : > { %5231 = vmatpush.bf16.msrb.mxu3 %v6161_v14 }
 0x676   : > { %v5042_v24 = vadd.f32 %v8550_v11, %v5006_v33 }
 0x678   : > { %v5074_v59 = vadd.f32 %v5042_v24, %v2972_v45  ;;  %v4273_v24 = vpop.f32.mrf.mxu3  ;;  %v4546_v45 = vadd.f32 %v4502_v58, %v4312_v32 }
 0x67a   : > { %v5106_v53 = vmax.f32 %v5074_v59, 0.0 }
 0x67b   : > { %v4955_v62 = vpop.f32.mrf.mxu2 }
 0x67c   : > { %v5137_v35 = vadd.f32 %v5136_v5, %v5106_v53  ;;  %v5007_v48 = vadd.f32 %v4955_v62, %v4774_v13  ;;  %v4737_v5 = vpop.f32.mrf.mxu1  ;;  %v2977_v53 = vld [vmem:[#allocation2 + $0x190] sm:$0xff]  ;;  %v4313_v62 = vadd.f32 %v4270_v20, %v9094_v52  ;;  %v4507_v3 = vpop.f32.mrf.mxu0 }
 0x67e   : > { %v5043_v30 = vadd.f32 %v8550_v11, %v5007_v48  ;;  %v4779_v48 = vadd.f32 %v4735_v41, %v4546_v45 }
 0x680   : > { %v5075_v27 = vadd.f32 %v5043_v30, %v2973_v6  ;;  %v4275_v28 = vpop.f32.mrf.mxu3 }
 0x682   : > { %v5107_v23 = vmax.f32 %v5075_v27, 0.0  ;;  %v4547_v27 = vadd.f32 %v4504_v63, %v4313_v62 }
 0x683   : > { %v4958_v47 = vpop.f32.mrf.mxu2 }
 0x684   : > { %v5138_v54 = vadd.f32 %v5137_v35, %v5107_v23  ;;  %v5008_v38 = vadd.f32 %v4958_v47, %v8585_v16  ;;  %v2975_v16 = vld [vmem:[#allocation2 + $0x170] sm:$0xff]  ;;  %v4740_v6 = vpop.f32.mrf.mxu1  ;;  %v2978_v23 = vld [vmem:[#allocation2 + $0x1a8] sm:$0xff]  ;;  %v4780_v2 = vadd.f32 %v4737_v5, %v4547_v27 }
 0x686   : > { %v5044_v51 = vadd.f32 %v8550_v11, %v5008_v38 }
 0x688   : > { %v5076_v7 = vadd.f32 %v5044_v51, %v2974_v31 }
 0x68a   : > { %v5108_v10 = vmax.f32 %v5076_v7, 0.0  ;;  %v4509_v7 = vpop.f32.mrf.mxu0 }
 0x68b   : > { %v4960_v4 = vpop.f32.mrf.mxu2 }
 0x68c   : > { %v5139_v26 = vadd.f32 %v5138_v54, %v5108_v10  ;;  %v5009_v40 = vadd.f32 %v4960_v4, %v4776_v17  ;;  %v9095_v54 = vld [vmem:[#allocation52_spill] sm:$0xff]  ;;  %v4742_v10 = vpop.f32.mrf.mxu1  ;;  %v4278_v4 = vpop.f32.mrf.mxu3 }
 0x68d   : > { %v4314_v38 = vadd.f32 %v4273_v24, %v9095_v54 }
 0x68e   : > { %v5045_v37 = vadd.f32 %v8550_v11, %v5009_v40 }
 0x68f   : > { %v4548_v46 = vadd.f32 %v4507_v3, %v4314_v38 }
 0x690   : > { %v5077_v12 = vadd.f32 %v5045_v37, %v2975_v16 }
 0x691   : > { %v4781_v37 = vadd.f32 %v4740_v6, %v4548_v46 }
 0x692   : > { %v5109_v29 = vmax.f32 %v5077_v12, 0.0  ;;  %v4512_v57 = vpop.f32.mrf.mxu0 }
 0x693   : > { %v4963_v50 = vpop.f32.mrf.mxu2 }
 0x694   : > { %v5140_v1 = vadd.f32 %v5139_v26, %v5109_v29  ;;  %v5010_v39 = vadd.f32 %v4963_v50, %v4777_v42  ;;  %v9096_v26 = vld [vmem:[#allocation65_spill] sm:$0xff]  ;;  %v4745_v20 = vpop.f32.mrf.mxu1 }
 0x695   : > { %v4315_v40 = vadd.f32 %v4275_v28, %v9096_v26  ;;  %v2980_v29 = vld [vmem:[#allocation2 + $0x1c8] sm:$0xff] }
 0x696   : > { %v5046_v56 = vadd.f32 %v8550_v11, %v5010_v39  ;;  %v9097_v50 = vld [vmem:[#allocation93_spill] sm:$0xff] }
 0x697   : > { %v4549_v41 = vadd.f32 %v4509_v7, %v4315_v40 }
 0x698   : > { %v5078_v36 = vadd.f32 %v5046_v56, %v2976_v8  ;;  %v4280_v56 = vpop.f32.mrf.mxu3 }
 0x699   : > { %v4782_v22 = vadd.f32 %v4742_v10, %v4549_v41 }
 0x69a   : > { %v5110_v55 = vmax.f32 %v5078_v36, 0.0  ;;  %v4514_v5 = vpop.f32.mrf.mxu0 }
 0x69b   : > { %v4965_v49 = vpop.f32.mrf.mxu2 }
 0x69c   : > { %v5141_v33 = vadd.f32 %v5140_v1, %v5110_v55  ;;  %v5011_v19 = vadd.f32 %v4965_v49, %v4778_v34  ;;  %v4316_v1 = vadd.f32 %v4278_v4, %v9097_v50  ;;  %v2981_v34 = vld [vmem:[#allocation2 + $0x1d0] sm:$0xff] }
 0x69e   : > { %v5047_v59 = vadd.f32 %v8550_v11, %v5011_v19  ;;  %v4550_v32 = vadd.f32 %v4512_v57, %v4316_v1 }
 0x6a0   : > { %v5079_v13 = vadd.f32 %v5047_v59, %v2977_v53  ;;  %v4783_v24 = vadd.f32 %v4745_v20, %v4550_v32  ;;  %v4283_v52 = vpop.f32.mrf.mxu3  ;;  %v5175_v32 = vld [vmem:[%s8714_s8] sm:$0x1] }
 0x6a2   : > { %v5111_v35 = vmax.f32 %v5079_v13, 0.0  ;;  %v4747_v13 = vpop.f32.mrf.mxu1 }
 0x6a3   : > { %v4968_v18 = vpop.f32.mrf.mxu2 }
 0x6a4   : > { %v5142_v30 = vadd.f32 %v5141_v33, %v5111_v35  ;;  %v5012_v21 = vadd.f32 %v4968_v18, %v4779_v48  ;;  %v9098_v33 = vld [vmem:[#allocation54_spill] sm:$0xff]  ;;  %v2982_v48 = vld [vmem:[#allocation2 + $0x1e8] sm:$0xff]  ;;  %v4517_v18 = vpop.f32.mrf.mxu0 }
 0x6a5   : > { %v4317_v19 = vadd.f32 %v4280_v56, %v9098_v33 }
 0x6a6   : > { %v5048_v61 = vadd.f32 %v8550_v11, %v5012_v21 }
 0x6a7   : > { %v4551_v62 = vadd.f32 %v4514_v5, %v4317_v19 }
 0x6a8   : > { %v5080_v47 = vadd.f32 %v5048_v61, %v2978_v23 }
 0x6a9   : > { %v4784_v27 = vadd.f32 %v4747_v13, %v4551_v62 }
 0x6aa   : > { %v5112_v43 = vmax.f32 %v5080_v47, 0.0  ;;  %v4750_v47 = vpop.f32.mrf.mxu1 }
 0x6ab   : > { %v4970_v51 = vpop.f32.mrf.mxu2 }
 0x6ac   : > { %v5143_v31 = vadd.f32 %v5142_v30, %v5112_v43  ;;  %v5013_v44 = vadd.f32 %v4970_v51, %v4780_v2  ;;  %v9099_v30 = vld [vmem:[#allocation66_spill] sm:$0xff]  ;;  %v4285_v43 = vpop.f32.mrf.mxu3 }
 0x6ad   : > { %v4318_v21 = vadd.f32 %v4283_v52, %v9099_v30  ;;  %v2983_v2 = vld [vmem:[#allocation2 + $0x1f0] sm:$0xff] }
 0x6ae   : > { %v5049_v9 = vadd.f32 %v8550_v11, %v5013_v44  ;;  %v9100_v44 = vld [vmem:[#allocation96_spill] sm:$0xff] }
 0x6af   : > { %v4552_v54 = vadd.f32 %v4517_v18, %v4318_v21  ;;  %v4319_v7 = vadd.f32 %v4285_v43, %v9100_v44 }
 0x6b0   : > { %v5081_v17 = vadd.f32 %v5049_v9, %v2979_v60  ;;  %v4519_v9 = vpop.f32.mrf.mxu0 }
 0x6b1   : > { %v4553_v4 = vadd.f32 %v4519_v9, %v4319_v7 }
 0x6b2   : > { %v5113_v0 = vmax.f32 %v5081_v17, 0.0  ;;  %v4752_v40 = vpop.f32.mrf.mxu1 }
 0x6b3   : > { %v4973_v58 = vpop.f32.mrf.mxu2 }
 0x6b4   : > { %v5144_v16 = vadd.f32 %v5143_v31, %v5113_v0  ;;  %v5014_v12 = vadd.f32 %v4973_v58, %v4781_v37  ;;  %v4785_v31 = vadd.f32 %v4750_v47, %v4552_v54  ;;  %v2984_v0 = vld [vmem:[#allocation2 + $0x208] sm:$0xff]  ;;  %v4786_v58 = vadd.f32 %v4752_v40, %v4553_v4 }
 0x6b6   : > { %v5050_v15 = vadd.f32 %v8550_v11, %v5014_v12 }
 0x6b8   : > { %v5082_v42 = vadd.f32 %v5050_v15, %v2980_v29  ;;  %v2985_v29 = vld [vmem:[#allocation2 + $0x210] sm:$0xff] }
 0x6ba   : > { %v5114_v39 = vmax.f32 %v5082_v42, 0.0 }
 0x6bb   : > { %v4975_v8 = vpop.f32.mrf.mxu2 }
 0x6bc   : > { %v5145_v36 = vadd.f32 %v5144_v16, %v5114_v39  ;;  %v5015_v63 = vadd.f32 %v4975_v8, %v4782_v22 }
 0x6be   : > { %v5051_v55 = vadd.f32 %v8550_v11, %v5015_v63 }
 0x6c0   : > { %v5083_v49 = vadd.f32 %v5051_v55, %v2981_v34 }
 0x6c2   : > { %v5115_v25 = vmax.f32 %v5083_v49, 0.0 }
 0x6c3   : > { %v4978_v45 = vpop.f32.mrf.mxu2 }
 0x6c4   : > { %v5146_v59 = vadd.f32 %v5145_v36, %v5115_v25  ;;  %v5016_v53 = vadd.f32 %v4978_v45, %v4783_v24 }
 0x6c6   : > { %v5052_v35 = vadd.f32 %v8550_v11, %v5016_v53 }
 0x6c8   : > { %v5084_v3 = vadd.f32 %v5052_v35, %v2982_v48 }
 0x6ca   : > { %v5116_v6 = vmax.f32 %v5084_v3, 0.0 }
 0x6cb   : > { %v4980_v61 = vpop.f32.mrf.mxu2 }
 0x6cc   : > { %v5147_v28 = vadd.f32 %v5146_v59, %v5116_v6  ;;  %v5017_v23 = vadd.f32 %v4980_v61, %v4784_v27 }
 0x6ce   : > { %v5053_v38 = vadd.f32 %v8550_v11, %v5017_v23 }
 0x6d0   : > { %v5085_v51 = vadd.f32 %v5053_v38, %v2983_v2 }
 0x6d2   : > { %v5117_v46 = vmax.f32 %v5085_v51, 0.0 }
 0x6d3   : > { %v4983_v60 = vpop.f32.mrf.mxu2 }
 0x6d4   : > { %v5148_v10 = vadd.f32 %v5147_v28, %v5117_v46  ;;  %v5018_v17 = vadd.f32 %v4983_v60, %v4785_v31 }
 0x6d6   : > { %v5054_v26 = vadd.f32 %v8550_v11, %v5018_v17 }
 0x6d8   : > { %v5086_v37 = vadd.f32 %v5054_v26, %v2984_v0 }
 0x6da   : > { %v5118_v16 = vmax.f32 %v5086_v37, 0.0 }
 0x6db   : > { %v4985_v12 = vpop.f32.mrf.mxu2 }
 0x6dc   : > { %v5149_v41 = vadd.f32 %v5148_v10, %v5118_v16  ;;  %v5019_v15 = vadd.f32 %v4985_v12, %v4786_v58 }
 0x6de   : > { %v5055_v57 = vadd.f32 %v8550_v11, %v5019_v15 }
 0x6e0   : > { %v5087_v42 = vadd.f32 %v5055_v57, %v2985_v29 }
 0x6e2   : > { %v5119_v20 = vmax.f32 %v5087_v42, 0.0 }
 0x6e4   : > { %v5150_v50 = vadd.f32 %v5149_v41, %v5119_v20 }
 0x6e6   : > { %v5151_v1 = vrot.slane %v5150_v50, 4 }
 0x6e8   : > { %v5152_v39 = vadd.f32 %v5151_v1, %v5150_v50 }
 0x6ea   : > { %v5153_v22 = vrot.slane %v5152_v39, 2 }
 0x6ec   : > { %v5154_v56 = vadd.f32 %v5153_v22, %v5152_v39 }
 0x6ee   : > { %v5155_v8 = vrot.slane %v5154_v56, 1 }
 0x6f0   : > { %v5156_v36 = vadd.f32 %v5155_v8, %v5154_v56 }
 0x6f2   : > { %v5157_v63 = vmul.f32 0.00390625, %v5156_v36 }
 0x6f4   : > { %v5158_v14 = vpack.c.bf16 %v5157_v63, %v5157_v63 }
 0x6f6   : > { %5232 = vmatmul.bf16.vlgmr.msrb.gmra.mxu3 %v5158_v14 }
 0x779   : > { %v5233_v55 = vpop.f32.mrf.mxu3 }
 0x77a   : > { %v5234_v11 = vadd.f32 %v5233_v55, %v5175_v32 }
 0x77c   : > { %v5237_v34 = vperm.slane %v5234_v11, 0 }
 0x77e   : > { %5238 = vst [vmem:[%s330_s17] sm:$0xff] %v5237_v34 }
 0x781   : > { %v5235_v49 = vpop.f32.mrf.mxu3 }
 0x782 PF: > { %s19_s30 = sadd.s32 1, %s6209_s30  }
 0x783   : > { %p16_p4 = scmp.ge.s32.totalorder %s19_s30, 4  }
 0x785   :  { %18 = sbr.rel (!%p16_p4) target bundleno = 1 (0x1), region = 90 }

</bundles_post_ra>
